<compile_context>
chip_gen: v5e
topology: v5e:2x2
jax: 0.10.0
libtpu: 0.0.40
codegen_flags: <defaults>
</compile_context>

<pallas_src>
import functools

import jax
import jax.numpy as jnp
from jax.experimental import pallas as pl
from jax.experimental.pallas import tpu as pltpu

BN_EPS = 1e-5
LANE = 128
M_CHUNK = 512  # rows of the conv output processed per fp32 accumulator chunk


def _conv3x3_stats_kernel(xf_ref, w_ref, y_ref, bsum_ref, bsq_ref, *,
                          wp, w_valid, m_chunk):
    """Pass 1: 3x3 conv as 9 shifted MXU matmuls + per-channel sum / sumsq.

    xf_ref:  (1, L_in, K)   bf16  zero-padded NHWC image, spatial flattened
                                  (K = tn for the group-sliced path, cin dense)
    w_ref:   (1, 9, K, TN)  bf16  per-tap weights (block-diagonal if grouped)
    y_ref:   (1, M, TN)     bf16  pre-BN conv output, M = H*(W+2)
    bsum_ref, bsq_ref: (1, TN) fp32, accumulated across the inner batch axis.
    """
    b = pl.program_id(1)
    m = y_ref.shape[1]
    tn = y_ref.shape[2]

    @pl.when(b == 0)
    def _init():
        bsum_ref[...] = jnp.zeros_like(bsum_ref)
        bsq_ref[...] = jnp.zeros_like(bsq_ref)

    s_tot = jnp.zeros((1, tn), jnp.float32)
    q_tot = jnp.zeros((1, tn), jnp.float32)

    # M-chunked accumulation: small fp32 accumulator, 9 taps innermost.
    for m0 in range(0, m, m_chunk):
        mc = min(m_chunk, m - m0)
        acc = jnp.zeros((mc, tn), jnp.float32)
        for kh in range(3):
            for kw in range(3):
                off = kh * wp + kw + m0                    # static row shift
                a = xf_ref[0, pl.ds(off, mc), :]           # bf16, no cast
                acc = acc + jnp.dot(a, w_ref[0, kh * 3 + kw, :, :],
                                    preferred_element_type=jnp.float32)

        y_ref[0, pl.ds(m0, mc), :] = acc.astype(y_ref.dtype)

        # The flattened rows still contain the 2 zero-pad columns per image
        # row; mask them out of the BatchNorm statistics.
        col = (jax.lax.broadcasted_iota(jnp.int32, (mc, tn), 0) + m0) % wp
        ym = jnp.where(col < w_valid, acc, 0.0)
        s_tot = s_tot + jnp.sum(ym, axis=0, keepdims=True)
        q_tot = q_tot + jnp.sum(ym * ym, axis=0, keepdims=True)

    # Only valid while the batch grid axis stays serial ("arbitrary").
    bsum_ref[...] += s_tot
    bsq_ref[...] += q_tot


def _bn_apply_kernel(y_ref, bsum_ref, bsq_ref, gamma_ref, beta_ref, o_ref, *,
                     count, relu):
    """Pass 2: y -> (y - mean) * rsqrt(var + eps) * gamma + beta (+ ReLU)."""
    inv_n = 1.0 / count
    mean = bsum_ref[...] * inv_n                              # (1, TN) fp32
    var = jnp.maximum(bsq_ref[...] * inv_n - mean * mean, 0.0)
    inv_std = jax.lax.rsqrt(var + BN_EPS)
    scale = gamma_ref[...] * inv_std
    shift = beta_ref[...] - mean * scale
    out = y_ref[0, :, :].astype(jnp.float32) * scale + shift  # bf16 -> fp32
    if relu:
        out = jnp.maximum(out, 0.0)
    o_ref[0, :, :] = out.astype(o_ref.dtype)


@functools.partial(jax.jit, static_argnames=("groups", "relu"))
def conv3x3_bn_act(x_nchw, w_oihw, gamma, beta, *, groups=1, relu=False):
    """Conv2d(3x3, s1, p1, bias=False, groups) + BatchNorm2d(train) [+ ReLU]."""
    n, cin, h, w = x_nchw.shape
    cout = w_oihw.shape[0]
    cin_g = cin // groups
    cout_g = cout // groups
    assert w_oihw.shape == (cout, cin_g, 3, 3)

    wp = w + 2                        # padded width kept inside the flat layout
    m_img = h * wp                    # conv-output rows per image (incl. pad cols)
    cout_p = ((cout + LANE - 1) // LANE) * LANE
    # v6e/v7x MXU is 2x256^2: use a 256-wide N tile when it divides evenly.
    tn = 256 if cout_p % 256 == 0 else LANE
    n_ctiles = cout_p // tn

    # ResNeXt-style grouped conv: Cout tile j only needs Cin channels
    # [j*tn, (j+1)*tn) when cin==cout and group boundaries align with tiles.
    group_sliced = (groups > 1 and cin == cout and cout == cout_p
                    and tn % cin_g == 0)

    # ---- glue: NCHW -> NHWC bf16, zero-pad H/W by 1, flatten spatial --------
    x_nhwc = jnp.transpose(x_nchw, (0, 2, 3, 1)).astype(jnp.bfloat16)
    xp = jnp.pad(x_nhwc, ((0, 0), (1, 1), (1, 1), (0, 0)))
    xf = xp.reshape(n, (h + 2) * wp, cin)
    xf = jnp.pad(xf, ((0, 0), (0, 8), (0, 0)))   # slack rows for the largest shift
    l_in = xf.shape[1]

    # ---- weights: OIHW -> per-tap matrices, bf16 -----------------------------
    w_taps = jnp.transpose(w_oihw.astype(jnp.float32), (2, 3, 1, 0)).reshape(
        9, cin_g, cout)
    if group_sliced:
        gpt = tn // cin_g             # groups per Cout tile
        w_t = w_taps.reshape(9, cin_g, n_ctiles, gpt, cout_g)
        eye = jnp.eye(gpt, dtype=jnp.float32)
        # (n_ctiles, 9, tn, tn) block-diagonal within each tile.
        w_pack = jnp.einsum("tkjao,ba->jtbkao", w_t, eye).reshape(
            n_ctiles, 9, tn, tn).astype(jnp.bfloat16)
        k_dim = tn
        w_spec = pl.BlockSpec((1, 9, tn, tn), lambda j, b: (j, 0, 0, 0))
        x_spec = pl.BlockSpec((1, l_in, tn), lambda j, b: (b, 0, j))
        act_reads = xf.size * 2                       # whole input read once
    else:
        w_tg = w_taps.reshape(9, cin_g, groups, cout_g)
        eye = jnp.eye(groups, dtype=jnp.float32)
        w_dense = jnp.einsum("tkgo,hg->thkgo", w_tg, eye).reshape(9, cin, cout)
        w_dense = jnp.pad(w_dense, ((0, 0), (0, 0), (0, cout_p - cout)))
        w_pack = w_dense.reshape(1, 9, cin, cout_p).astype(jnp.bfloat16)
        k_dim = cin
        w_spec = pl.BlockSpec((1, 9, cin, tn), lambda j, b: (0, 0, 0, j))
        x_spec = pl.BlockSpec((1, l_in, cin), lambda j, b: (b, 0, 0))
        act_reads = xf.size * 2 * n_ctiles

    gamma_p = jnp.pad(gamma.astype(jnp.float32), (0, cout_p - cout)).reshape(1, cout_p)
    beta_p = jnp.pad(beta.astype(jnp.float32), (0, cout_p - cout)).reshape(1, cout_p)

    flops1 = 2 * n * m_img * 9 * k_dim * cout_p
    bytes1 = int(act_reads + w_pack.size * 2
                 + n * m_img * cout_p * 2 + 2 * cout_p * 4)

    # ---- pass 1: conv + BN partial sums --------------------------------------
    kern_a = functools.partial(_conv3x3_stats_kernel, wp=wp, w_valid=w,
                               m_chunk=M_CHUNK)
    y, bsum, bsq = pl.pallas_call(
        kern_a,
        grid=(n_ctiles, n),   # (Cout tiles, batch); batch innermost = stats reduction
        in_specs=[x_spec, w_spec],   # weight index_map is batch-invariant (resident)
        out_specs=[
            pl.BlockSpec((1, m_img, tn), lambda j, b: (b, 0, j)),
            pl.BlockSpec((1, tn), lambda j, b: (0, j)),
            pl.BlockSpec((1, tn), lambda j, b: (0, j)),
        ],
        out_shape=[
            jax.ShapeDtypeStruct((n, m_img, cout_p), jnp.bfloat16),
            jax.ShapeDtypeStruct((1, cout_p), jnp.float32),
            jax.ShapeDtypeStruct((1, cout_p), jnp.float32),
        ],
        compiler_params=pltpu.CompilerParams(
            dimension_semantics=("parallel", "arbitrary"),
            vmem_limit_bytes=32 * 1024 * 1024),
        cost_estimate=pl.CostEstimate(
            flops=flops1, transcendentals=0, bytes_accessed=bytes1),
    )(xf, w_pack)

    # ---- pass 2: normalize + affine (+ ReLU) ---------------------------------
    kern_b = functools.partial(_bn_apply_kernel, count=float(n * h * w), relu=relu)
    out_flat = pl.pallas_call(
        kern_b,
        grid=(n, n_ctiles),
        in_specs=[
            pl.BlockSpec((1, m_img, tn), lambda b, j: (b, 0, j)),
            pl.BlockSpec((1, tn), lambda b, j: (0, j)),
            pl.BlockSpec((1, tn), lambda b, j: (0, j)),
            pl.BlockSpec((1, tn), lambda b, j: (0, j)),
            pl.BlockSpec((1, tn), lambda b, j: (0, j)),
        ],
        out_specs=pl.BlockSpec((1, m_img, tn), lambda b, j: (b, 0, j)),
        out_shape=jax.ShapeDtypeStruct((n, m_img, cout_p), jnp.float32),
        compiler_params=pltpu.CompilerParams(
            dimension_semantics=("parallel", "parallel"),
            vmem_limit_bytes=32 * 1024 * 1024),
        cost_estimate=pl.CostEstimate(
            flops=3 * n * m_img * cout_p, transcendentals=2 * cout_p,
            bytes_accessed=int(n * m_img * cout_p * 6 + 4 * cout_p * 4)),
    )(y, bsum, bsq, gamma_p, beta_p)

    # ---- glue: strip pad columns / pad channels, back to NCHW ----------------
    out = out_flat.reshape(n, h, wp, cout_p)[:, :, :w, :cout]
    return jnp.transpose(out, (0, 3, 1, 2))
    # TODO(synk): BatchNorm running_mean/running_var side-effect updates, eval
    # mode, stride-2 / 1x1 / 7x7 convs, the SE module and the rest of the
    # SEResNeXt101 graph are not reproduced here.


def _reference(x_nchw, w_oihw, gamma, beta, groups, relu):
    """Pure-JAX reference matching PyTorch Conv2d + BatchNorm2d(train) [+ ReLU]."""
    y = jax.lax.conv_general_dilated(
        x_nchw, w_oihw, window_strides=(1, 1), padding=((1, 1), (1, 1)),
        dimension_numbers=("NCHW", "OIHW", "NCHW"), feature_group_count=groups)
    mean = jnp.mean(y, axis=(0, 2, 3), keepdims=True)
    var = jnp.mean(jnp.square(y - mean), axis=(0, 2, 3), keepdims=True)
    out = ((y - mean) / jnp.sqrt(var + BN_EPS) * gamma.reshape(1, -1, 1, 1)
           + beta.reshape(1, -1, 1, 1))
    if relu:
        out = jnp.maximum(out, 0.0)
    return out


if __name__ == "__main__":
    key = jax.random.PRNGKey(0)
    ks = jax.random.split(key, 12)

    # Case 1: dense 3x3 Conv + BN (groups=1, no ReLU) -- ConvBn-style layer.
    n, cin, cout, h, w = 2, 8, 16, 16, 16
    x1 = jax.random.normal(ks[0], (n, cin, h, w), jnp.float32)
    w1 = 0.1 * jax.random.normal(ks[1], (cout, cin, 3, 3), jnp.float32)
    g1 = 1.0 + 0.1 * jax.random.normal(ks[2], (cout,), jnp.float32)
    b1 = 0.1 * jax.random.normal(ks[3], (cout,), jnp.float32)
    out1 = jax.block_until_ready(
        conv3x3_bn_act(x1, w1, g1, b1, groups=1, relu=False))
    ref1 = _reference(x1, w1, g1, b1, 1, False)
    assert out1.shape == (n, cout, h, w), out1.shape
    err1 = float(jnp.max(jnp.abs(out1 - ref1)))
    assert jnp.allclose(out1, ref1, atol=2e-2, rtol=2e-2), err1

    # Case 2: grouped 3x3 where cin != cout (falls back to the dense path).
    n, cin, cout, h, w, groups = 2, 16, 32, 16, 16, 4
    x2 = jax.random.normal(ks[4], (n, cin, h, w), jnp.float32)
    w2 = 0.1 * jax.random.normal(ks[5], (cout, cin // groups, 3, 3), jnp.float32)
    g2 = 1.0 + 0.1 * jax.random.normal(ks[6], (cout,), jnp.float32)
    b2 = 0.1 * jax.random.normal(ks[7], (cout,), jnp.float32)
    out2 = jax.block_until_ready(
        conv3x3_bn_act(x2, w2, g2, b2, groups=groups, relu=True))
    ref2 = _reference(x2, w2, g2, b2, groups, True)
    assert out2.shape == (n, cout, h, w), out2.shape
    err2 = float(jnp.max(jnp.abs(out2 - ref2)))
    assert jnp.allclose(out2, ref2, atol=2e-2, rtol=2e-2), err2

    # Case 3: SEResNeXt conv2 -> bn2 -> relu shape (cin == cout, groups=32),
    # exercises the group-sliced weight packing with 2 Cout tiles (tn=256).
    n, cin, cout, h, w, groups = 2, 512, 512, 8, 8, 32
    x3 = jax.random.normal(ks[8], (n, cin, h, w), jnp.float32)
    w3 = 0.1 * jax.random.normal(ks[9], (cout, cin // groups, 3, 3), jnp.float32)
    g3 = 1.0 + 0.1 * jax.random.normal(ks[10], (cout,), jnp.float32)
    b3 = 0.1 * jax.random.normal(ks[11], (cout,), jnp.float32)
    out3 = jax.block_until_ready(
        conv3x3_bn_act(x3, w3, g3, b3, groups=groups, relu=True))
    ref3 = _reference(x3, w3, g3, b3, groups, True)
    assert out3.shape == (n, cout, h, w), out3.shape
    err3 = float(jnp.max(jnp.abs(out3 - ref3)))
    # Slightly looser: bf16 activation / intermediate streams (fp32 accumulate).
    assert jnp.allclose(out3, ref3, atol=3e-2, rtol=3e-2), err3

    print("KERNEL_OK")
</pallas_src>

<mosaic_0001>
module attributes {stable_mosaic.version = 11 : i64} {
  func.func @_bn_apply_kernel(%arg0: i32, %arg1: i32, %arg2: memref<1x288x128xbf16, #tpu.memory_space<vmem>>, %arg3: memref<1x128xf32, #tpu.memory_space<vmem>>, %arg4: memref<1x128xf32, #tpu.memory_space<vmem>>, %arg5: memref<1x128xf32, #tpu.memory_space<vmem>>, %arg6: memref<1x128xf32, #tpu.memory_space<vmem>>, %arg7: memref<1x288x128xf32, #tpu.memory_space<vmem>>) attributes {dimension_semantics = [#tpu.dimension_semantics<parallel>, #tpu.dimension_semantics<parallel>], iteration_bounds = array<i64: 2, 1>, scalar_prefetch = 0 : i64, scratch_operands = 0 : i64, tpu.core_type = #tpu.core_type<tc>, window_params = [{transform_indices = @transform_0, window_bounds = array<i64: 1, 288, 128>}, {transform_indices = @transform_1, window_bounds = array<i64: 1, 128>}, {transform_indices = @transform_2, window_bounds = array<i64: 1, 128>}, {transform_indices = @transform_3, window_bounds = array<i64: 1, 128>}, {transform_indices = @transform_4, window_bounds = array<i64: 1, 128>}, {transform_indices = @transform_5, window_bounds = array<i64: 1, 288, 128>}]} {
    %c0 = arith.constant 0 : index
    %c0_0 = arith.constant 0 : index
    %0 = vector.load %arg3[%c0, %c0_0] : memref<1x128xf32, #tpu.memory_space<vmem>>, vector<1x128xf32>
    %cst = arith.constant 0.001953125 : f32
    %1 = vector.broadcast %cst : f32 to vector<1x128xf32>
    %2 = arith.mulf %0, %1 : vector<1x128xf32>
    %c0_1 = arith.constant 0 : index
    %c0_2 = arith.constant 0 : index
    %3 = vector.load %arg4[%c0_1, %c0_2] : memref<1x128xf32, #tpu.memory_space<vmem>>, vector<1x128xf32>
    %cst_3 = arith.constant 0.001953125 : f32
    %4 = vector.broadcast %cst_3 : f32 to vector<1x128xf32>
    %5 = arith.mulf %3, %4 : vector<1x128xf32>
    %6 = arith.mulf %2, %2 : vector<1x128xf32>
    %7 = arith.subf %5, %6 : vector<1x128xf32>
    %cst_4 = arith.constant 0.000000e+00 : f32
    %8 = vector.broadcast %cst_4 : f32 to vector<1x128xf32>
    %9 = arith.maximumf %7, %8 : vector<1x128xf32>
    %cst_5 = arith.constant 9.99999974E-6 : f32
    %10 = vector.broadcast %cst_5 : f32 to vector<1x128xf32>
    %11 = arith.addf %9, %10 : vector<1x128xf32>
    %12 = math.rsqrt %11 : vector<1x128xf32>
    %c0_6 = arith.constant 0 : index
    %c0_7 = arith.constant 0 : index
    %13 = vector.load %arg5[%c0_6, %c0_7] : memref<1x128xf32, #tpu.memory_space<vmem>>, vector<1x128xf32>
    %14 = arith.mulf %13, %12 : vector<1x128xf32>
    %c0_8 = arith.constant 0 : index
    %c0_9 = arith.constant 0 : index
    %15 = vector.load %arg6[%c0_8, %c0_9] : memref<1x128xf32, #tpu.memory_space<vmem>>, vector<1x128xf32>
    %16 = arith.mulf %2, %14 : vector<1x128xf32>
    %17 = arith.subf %15, %16 : vector<1x128xf32>
    %c0_10 = arith.constant 0 : index
    %c0_11 = arith.constant 0 : index
    %c0_12 = arith.constant 0 : index
    %18 = vector.load %arg2[%c0_10, %c0_11, %c0_12] : memref<1x288x128xbf16, #tpu.memory_space<vmem>>, vector<1x288x128xbf16>
    %19 = vector.shape_cast %18 : vector<1x288x128xbf16> to vector<288x128xbf16>
    %20 = arith.extf %19 : vector<288x128xbf16> to vector<288x128xf32>
    %21 = vector.broadcast %14 : vector<1x128xf32> to vector<288x128xf32>
    %22 = arith.mulf %20, %21 : vector<288x128xf32>
    %23 = vector.broadcast %17 : vector<1x128xf32> to vector<288x128xf32>
    %24 = arith.addf %22, %23 : vector<288x128xf32>
    %c0_13 = arith.constant 0 : index
    %c0_14 = arith.constant 0 : index
    %c0_15 = arith.constant 0 : index
    %25 = vector.load %arg7[%c0_13, %c0_14, %c0_15] : memref<1x288x128xf32, #tpu.memory_space<vmem>>, vector<1x288x128xf32>
    %26 = vector.shape_cast %25 : vector<1x288x128xf32> to vector<288x128xf32>
    %27 = vector.shape_cast %24 : vector<288x128xf32> to vector<1x288x128xf32>
    tpu.vector_store %arg7[%c0_13, %c0_14, %c0_15], %27 {strides = array<i32>} : memref<1x288x128xf32, #tpu.memory_space<vmem>>, vector<1x288x128xf32>,
    return
  }
  func.func @transform_0(%arg0: i32, %arg1: i32) -> (i32, i32, i32) {
    %c0_i32 = arith.constant 0 : i32
    %c0_i32_0 = arith.constant 0 : i32
    return %arg0, %c0_i32, %arg1 : i32, i32, i32
  }
  func.func @transform_1(%arg0: i32, %arg1: i32) -> (i32, i32) {
    %c0_i32 = arith.constant 0 : i32
    %c0_i32_0 = arith.constant 0 : i32
    return %c0_i32, %arg1 : i32, i32
  }
  func.func @transform_2(%arg0: i32, %arg1: i32) -> (i32, i32) {
    %c0_i32 = arith.constant 0 : i32
    %c0_i32_0 = arith.constant 0 : i32
    return %c0_i32, %arg1 : i32, i32
  }
  func.func @transform_3(%arg0: i32, %arg1: i32) -> (i32, i32) {
    %c0_i32 = arith.constant 0 : i32
    %c0_i32_0 = arith.constant 0 : i32
    return %c0_i32, %arg1 : i32, i32
  }
  func.func @transform_4(%arg0: i32, %arg1: i32) -> (i32, i32) {
    %c0_i32 = arith.constant 0 : i32
    %c0_i32_0 = arith.constant 0 : i32
    return %c0_i32, %arg1 : i32, i32
  }
  func.func @transform_5(%arg0: i32, %arg1: i32) -> (i32, i32, i32) {
    %c0_i32 = arith.constant 0 : i32
    %c0_i32_0 = arith.constant 0 : i32
    return %arg0, %c0_i32, %arg1 : i32, i32, i32
  }
}

module attributes {stable_mosaic.version = 11 : i64} {
  func.func @_conv3x3_stats_kernel(%arg0: i32, %arg1: i32, %arg2: memref<1x332x8xbf16, #tpu.memory_space<vmem>>, %arg3: memref<1x9x8x128xbf16, #tpu.memory_space<vmem>>, %arg4: memref<1x288x128xbf16, #tpu.memory_space<vmem>>, %arg5: memref<1x128xf32, #tpu.memory_space<vmem>>, %arg6: memref<1x128xf32, #tpu.memory_space<vmem>>) attributes {dimension_semantics = [#tpu.dimension_semantics<parallel>, #tpu.dimension_semantics<arbitrary>], iteration_bounds = array<i64: 1, 2>, scalar_prefetch = 0 : i64, scratch_operands = 0 : i64, tpu.core_type = #tpu.core_type<tc>, window_params = [{transform_indices = @transform_0, window_bounds = array<i64: 1, 332, 8>}, {transform_indices = @transform_1, window_bounds = array<i64: 1, 9, 8, 128>}, {transform_indices = @transform_2, window_bounds = array<i64: 1, 288, 128>}, {transform_indices = @transform_3, window_bounds = array<i64: 1, 128>}, {transform_indices = @transform_4, window_bounds = array<i64: 1, 128>}]} {
    %c0_i32 = arith.constant 0 : i32
    %0 = arith.cmpi eq, %arg1, %c0_i32 : i32
    %1 = arith.extui %0 : i1 to i32
    %c0_i32_0 = arith.constant 0 : i32
    %2 = arith.cmpi ne, %1, %c0_i32_0 : i32
    scf.if %2 {
      %cst_79 = arith.constant 0.000000e+00 : f32
      %100 = vector.broadcast %cst_79 : f32 to vector<1x128xf32>
      %c0_80 = arith.constant 0 : index
      %c0_81 = arith.constant 0 : index
      %101 = vector.load %arg5[%c0_80, %c0_81] : memref<1x128xf32, #tpu.memory_space<vmem>>, vector<1x128xf32>
      tpu.vector_store %arg5[%c0_80, %c0_81], %100 {strides = array<i32>} : memref<1x128xf32, #tpu.memory_space<vmem>>, vector<1x128xf32>,
      %cst_82 = arith.constant 0.000000e+00 : f32
      %102 = vector.broadcast %cst_82 : f32 to vector<1x128xf32>
      %c0_83 = arith.constant 0 : index
      %c0_84 = arith.constant 0 : index
      %103 = vector.load %arg6[%c0_83, %c0_84] : memref<1x128xf32, #tpu.memory_space<vmem>>, vector<1x128xf32>
      tpu.vector_store %arg6[%c0_83, %c0_84], %102 {strides = array<i32>} : memref<1x128xf32, #tpu.memory_space<vmem>>, vector<1x128xf32>,
    } else {
    }
    %cst = arith.constant 0.000000e+00 : f32
    %3 = vector.broadcast %cst : f32 to vector<1x128xf32>
    %cst_1 = arith.constant 0.000000e+00 : f32
    %4 = vector.broadcast %cst_1 : f32 to vector<1x128xf32>
    %cst_2 = arith.constant 0.000000e+00 : f32
    %5 = vector.broadcast %cst_2 : f32 to vector<288x128xf32>
    %c0 = arith.constant 0 : index
    %c0_3 = arith.constant 0 : index
    %c0_4 = arith.constant 0 : index
    %6 = vector.load %arg2[%c0, %c0_3, %c0_4] : memref<1x332x8xbf16, #tpu.memory_space<vmem>>, vector<1x288x8xbf16>
    %7 = vector.shape_cast %6 : vector<1x288x8xbf16> to vector<288x8xbf16>
    %c0_5 = arith.constant 0 : index
    %c0_6 = arith.constant 0 : index
    %c0_7 = arith.constant 0 : index
    %c0_8 = arith.constant 0 : index
    %8 = vector.load %arg3[%c0_5, %c0_6, %c0_7, %c0_8] : memref<1x9x8x128xbf16, #tpu.memory_space<vmem>>, vector<1x1x8x128xbf16>
    %9 = vector.shape_cast %8 : vector<1x1x8x128xbf16> to vector<8x128xbf16>
    %cst_9 = arith.constant dense<0.000000e+00> : vector<288x128xf32>
    %10 = tpu.matmul %7, %9, %cst_9 {dimension_numbers = #tpu.dot_dimension_numbers<[1], [0], [0], [1], [0, 0, 1, 1], [], []>} : vector<288x8xbf16>, vector<8x128xbf16>, vector<288x128xf32> -> vector<288x128xf32>
    %11 = arith.addf %5, %10 : vector<288x128xf32>
    %c0_10 = arith.constant 0 : index
    %c1 = arith.constant 1 : index
    %c0_11 = arith.constant 0 : index
    %12 = vector.load %arg2[%c0_10, %c1, %c0_11] : memref<1x332x8xbf16, #tpu.memory_space<vmem>>, vector<1x288x8xbf16>
    %13 = vector.shape_cast %12 : vector<1x288x8xbf16> to vector<288x8xbf16>
    %c0_12 = arith.constant 0 : index
    %c1_13 = arith.constant 1 : index
    %c0_14 = arith.constant 0 : index
    %c0_15 = arith.constant 0 : index
    %14 = vector.load %arg3[%c0_12, %c1_13, %c0_14, %c0_15] : memref<1x9x8x128xbf16, #tpu.memory_space<vmem>>, vector<1x1x8x128xbf16>
    %15 = vector.shape_cast %14 : vector<1x1x8x128xbf16> to vector<8x128xbf16>
    %cst_16 = arith.constant dense<0.000000e+00> : vector<288x128xf32>
    %16 = tpu.matmul %13, %15, %cst_16 {dimension_numbers = #tpu.dot_dimension_numbers<[1], [0], [0], [1], [0, 0, 1, 1], [], []>} : vector<288x8xbf16>, vector<8x128xbf16>, vector<288x128xf32> -> vector<288x128xf32>
    %17 = arith.addf %11, %16 : vector<288x128xf32>
    %c0_17 = arith.constant 0 : index
    %c2 = arith.constant 2 : index
    %c0_18 = arith.constant 0 : index
    %18 = vector.load %arg2[%c0_17, %c2, %c0_18] : memref<1x332x8xbf16, #tpu.memory_space<vmem>>, vector<1x288x8xbf16>
    %19 = vector.shape_cast %18 : vector<1x288x8xbf16> to vector<288x8xbf16>
    %c0_19 = arith.constant 0 : index
    %c2_20 = arith.constant 2 : index
    %c0_21 = arith.constant 0 : index
    %c0_22 = arith.constant 0 : index
    %20 = vector.load %arg3[%c0_19, %c2_20, %c0_21, %c0_22] : memref<1x9x8x128xbf16, #tpu.memory_space<vmem>>, vector<1x1x8x128xbf16>
    %21 = vector.shape_cast %20 : vector<1x1x8x128xbf16> to vector<8x128xbf16>
    %cst_23 = arith.constant dense<0.000000e+00> : vector<288x128xf32>
    %22 = tpu.matmul %19, %21, %cst_23 {dimension_numbers = #tpu.dot_dimension_numbers<[1], [0], [0], [1], [0, 0, 1, 1], [], []>} : vector<288x8xbf16>, vector<8x128xbf16>, vector<288x128xf32> -> vector<288x128xf32>
    %23 = arith.addf %17, %22 : vector<288x128xf32>
    %c0_24 = arith.constant 0 : index
    %c18 = arith.constant 18 : index
    %c0_25 = arith.constant 0 : index
    %24 = vector.load %arg2[%c0_24, %c18, %c0_25] : memref<1x332x8xbf16, #tpu.memory_space<vmem>>, vector<1x288x8xbf16>
    %25 = vector.shape_cast %24 : vector<1x288x8xbf16> to vector<288x8xbf16>
    %c0_26 = arith.constant 0 : index
    %c3 = arith.constant 3 : index
    %c0_27 = arith.constant 0 : index
    %c0_28 = arith.constant 0 : index
    %26 = vector.load %arg3[%c0_26, %c3, %c0_27, %c0_28] : memref<1x9x8x128xbf16, #tpu.memory_space<vmem>>, vector<1x1x8x128xbf16>
    %27 = vector.shape_cast %26 : vector<1x1x8x128xbf16> to vector<8x128xbf16>
    %cst_29 = arith.constant dense<0.000000e+00> : vector<288x128xf32>
    %28 = tpu.matmul %25, %27, %cst_29 {dimension_numbers = #tpu.dot_dimension_numbers<[1], [0], [0], [1], [0, 0, 1, 1], [], []>} : vector<288x8xbf16>, vector<8x128xbf16>, vector<288x128xf32> -> vector<288x128xf32>
    %29 = arith.addf %23, %28 : vector<288x128xf32>
    %c0_30 = arith.constant 0 : index
    %c19 = arith.constant 19 : index
    %c0_31 = arith.constant 0 : index
    %30 = vector.load %arg2[%c0_30, %c19, %c0_31] : memref<1x332x8xbf16, #tpu.memory_space<vmem>>, vector<1x288x8xbf16>
    %31 = vector.shape_cast %30 : vector<1x288x8xbf16> to vector<288x8xbf16>
    %c0_32 = arith.constant 0 : index
    %c4 = arith.constant 4 : index
    %c0_33 = arith.constant 0 : index
    %c0_34 = arith.constant 0 : index
    %32 = vector.load %arg3[%c0_32, %c4, %c0_33, %c0_34] : memref<1x9x8x128xbf16, #tpu.memory_space<vmem>>, vector<1x1x8x128xbf16>
    %33 = vector.shape_cast %32 : vector<1x1x8x128xbf16> to vector<8x128xbf16>
    %cst_35 = arith.constant dense<0.000000e+00> : vector<288x128xf32>
    %34 = tpu.matmul %31, %33, %cst_35 {dimension_numbers = #tpu.dot_dimension_numbers<[1], [0], [0], [1], [0, 0, 1, 1], [], []>} : vector<288x8xbf16>, vector<8x128xbf16>, vector<288x128xf32> -> vector<288x128xf32>
    %35 = arith.addf %29, %34 : vector<288x128xf32>
    %c0_36 = arith.constant 0 : index
    %c20 = arith.constant 20 : index
    %c0_37 = arith.constant 0 : index
    %36 = vector.load %arg2[%c0_36, %c20, %c0_37] : memref<1x332x8xbf16, #tpu.memory_space<vmem>>, vector<1x288x8xbf16>
    %37 = vector.shape_cast %36 : vector<1x288x8xbf16> to vector<288x8xbf16>
    %c0_38 = arith.constant 0 : index
    %c5 = arith.constant 5 : index
    %c0_39 = arith.constant 0 : index
    %c0_40 = arith.constant 0 : index
    %38 = vector.load %arg3[%c0_38, %c5, %c0_39, %c0_40] : memref<1x9x8x128xbf16, #tpu.memory_space<vmem>>, vector<1x1x8x128xbf16>
    %39 = vector.shape_cast %38 : vector<1x1x8x128xbf16> to vector<8x128xbf16>
    %cst_41 = arith.constant dense<0.000000e+00> : vector<288x128xf32>
    %40 = tpu.matmul %37, %39, %cst_41 {dimension_numbers = #tpu.dot_dimension_numbers<[1], [0], [0], [1], [0, 0, 1, 1], [], []>} : vector<288x8xbf16>, vector<8x128xbf16>, vector<288x128xf32> -> vector<288x128xf32>
    %41 = arith.addf %35, %40 : vector<288x128xf32>
    %c0_42 = arith.constant 0 : index
    %c36 = arith.constant 36 : index
    %c0_43 = arith.constant 0 : index
    %42 = vector.load %arg2[%c0_42, %c36, %c0_43] : memref<1x332x8xbf16, #tpu.memory_space<vmem>>, vector<1x288x8xbf16>
    %43 = vector.shape_cast %42 : vector<1x288x8xbf16> to vector<288x8xbf16>
    %c0_44 = arith.constant 0 : index
    %c6 = arith.constant 6 : index
    %c0_45 = arith.constant 0 : index
    %c0_46 = arith.constant 0 : index
    %44 = vector.load %arg3[%c0_44, %c6, %c0_45, %c0_46] : memref<1x9x8x128xbf16, #tpu.memory_space<vmem>>, vector<1x1x8x128xbf16>
    %45 = vector.shape_cast %44 : vector<1x1x8x128xbf16> to vector<8x128xbf16>
    %cst_47 = arith.constant dense<0.000000e+00> : vector<288x128xf32>
    %46 = tpu.matmul %43, %45, %cst_47 {dimension_numbers = #tpu.dot_dimension_numbers<[1], [0], [0], [1], [0, 0, 1, 1], [], []>} : vector<288x8xbf16>, vector<8x128xbf16>, vector<288x128xf32> -> vector<288x128xf32>
    %47 = arith.addf %41, %46 : vector<288x128xf32>
    %c0_48 = arith.constant 0 : index
    %c37 = arith.constant 37 : index
    %c0_49 = arith.constant 0 : index
    %48 = vector.load %arg2[%c0_48, %c37, %c0_49] : memref<1x332x8xbf16, #tpu.memory_space<vmem>>, vector<1x288x8xbf16>
    %49 = vector.shape_cast %48 : vector<1x288x8xbf16> to vector<288x8xbf16>
    %c0_50 = arith.constant 0 : index
    %c7 = arith.constant 7 : index
    %c0_51 = arith.constant 0 : index
    %c0_52 = arith.constant 0 : index
    %50 = vector.load %arg3[%c0_50, %c7, %c0_51, %c0_52] : memref<1x9x8x128xbf16, #tpu.memory_space<vmem>>, vector<1x1x8x128xbf16>
    %51 = vector.shape_cast %50 : vector<1x1x8x128xbf16> to vector<8x128xbf16>
    %cst_53 = arith.constant dense<0.000000e+00> : vector<288x128xf32>
    %52 = tpu.matmul %49, %51, %cst_53 {dimension_numbers = #tpu.dot_dimension_numbers<[1], [0], [0], [1], [0, 0, 1, 1], [], []>} : vector<288x8xbf16>, vector<8x128xbf16>, vector<288x128xf32> -> vector<288x128xf32>
    %53 = arith.addf %47, %52 : vector<288x128xf32>
    %c0_54 = arith.constant 0 : index
    %c38 = arith.constant 38 : index
    %c0_55 = arith.constant 0 : index
    %54 = vector.load %arg2[%c0_54, %c38, %c0_55] : memref<1x332x8xbf16, #tpu.memory_space<vmem>>, vector<1x288x8xbf16>
    %55 = vector.shape_cast %54 : vector<1x288x8xbf16> to vector<288x8xbf16>
    %c0_56 = arith.constant 0 : index
    %c8 = arith.constant 8 : index
    %c0_57 = arith.constant 0 : index
    %c0_58 = arith.constant 0 : index
    %56 = vector.load %arg3[%c0_56, %c8, %c0_57, %c0_58] : memref<1x9x8x128xbf16, #tpu.memory_space<vmem>>, vector<1x1x8x128xbf16>
    %57 = vector.shape_cast %56 : vector<1x1x8x128xbf16> to vector<8x128xbf16>
    %cst_59 = arith.constant dense<0.000000e+00> : vector<288x128xf32>
    %58 = tpu.matmul %55, %57, %cst_59 {dimension_numbers = #tpu.dot_dimension_numbers<[1], [0], [0], [1], [0, 0, 1, 1], [], []>} : vector<288x8xbf16>, vector<8x128xbf16>, vector<288x128xf32> -> vector<288x128xf32>
    %59 = arith.addf %53, %58 : vector<288x128xf32>
    %60 = arith.truncf %59 : vector<288x128xf32> to vector<288x128xbf16>
    %c0_60 = arith.constant 0 : index
    %c0_61 = arith.constant 0 : index
    %c0_62 = arith.constant 0 : index
    %61 = vector.load %arg4[%c0_60, %c0_61, %c0_62] : memref<1x288x128xbf16, #tpu.memory_space<vmem>>, vector<1x288x128xbf16>
    %62 = vector.shape_cast %61 : vector<1x288x128xbf16> to vector<288x128xbf16>
    %63 = vector.shape_cast %60 : vector<288x128xbf16> to vector<1x288x128xbf16>
    tpu.vector_store %arg4[%c0_60, %c0_61, %c0_62], %63 {strides = array<i32>} : memref<1x288x128xbf16, #tpu.memory_space<vmem>>, vector<1x288x128xbf16>,
    %64 = tpu.iota {dimensions = array<i32: 0>} : vector<288x128xi32>
    %c0_i32_63 = arith.constant 0 : i32
    %65 = vector.broadcast %c0_i32_63 : i32 to vector<288x128xi32>
    %66 = arith.addi %64, %65 : vector<288x128xi32>
    %c18_i32 = arith.constant 18 : i32
    %c0_i32_64 = arith.constant 0 : i32
    %67 = arith.cmpi eq, %c18_i32, %c0_i32_64 : i32
    %c1_i32 = arith.constant 1 : i32
    %68 = arith.select %67, %c1_i32, %c18_i32 : i32
    %69 = vector.broadcast %68 : i32 to vector<288x128xi32>
    %70 = arith.remsi %66, %69 : vector<288x128xi32>
    %c0_i32_65 = arith.constant 0 : i32
    %71 = vector.broadcast %c0_i32_65 : i32 to vector<288x128xi32>
    %72 = arith.cmpi ne, %70, %71 : vector<288x128xi32>
    %c0_i32_66 = arith.constant 0 : i32
    %73 = vector.broadcast %c0_i32_66 : i32 to vector<288x128xi32>
    %74 = arith.cmpi slt, %70, %73 : vector<288x128xi32>
    %c0_i32_67 = arith.constant 0 : i32
    %75 = arith.cmpi slt, %68, %c0_i32_67 : i32
    %76 = vector.broadcast %75 : i1 to vector<288x128xi1>
    %77 = vector.broadcast %76 : vector<288x128xi1> to vector<288x128xi1>
    %78 = arith.xori %74, %77 : vector<288x128xi1>
    %79 = arith.andi %78, %72 : vector<288x128xi1>
    %80 = vector.broadcast %68 : i32 to vector<288x128xi32>
    %81 = arith.addi %70, %80 : vector<288x128xi32>
    %82 = arith.select %79, %81, %70 : vector<288x128xi1>, vector<288x128xi32>
    %c16_i32 = arith.constant 16 : i32
    %83 = vector.broadcast %c16_i32 : i32 to vector<288x128xi32>
    %84 = arith.cmpi slt, %82, %83 : vector<288x128xi32>
    %cst_68 = arith.constant 0.000000e+00 : f32
    %85 = vector.broadcast %cst_68 : f32 to vector<288x128xf32>
    %86 = arith.select %84, %59, %85 : vector<288x128xi1>, vector<288x128xf32>
    %cst_69 = arith.constant dense<0.000000e+00> : vector<128xf32>
    %87 = vector.multi_reduction <add>, %86, %cst_69 [0] : vector<288x128xf32> to vector<128xf32>
    %88 = vector.shape_cast %87 : vector<128xf32> to vector<1x128xf32>
    %89 = arith.addf %3, %88 : vector<1x128xf32>
    %90 = arith.mulf %86, %86 : vector<288x128xf32>
    %cst_70 = arith.constant dense<0.000000e+00> : vector<128xf32>
    %91 = vector.multi_reduction <add>, %90, %cst_70 [0] : vector<288x128xf32> to vector<128xf32>
    %92 = vector.shape_cast %91 : vector<128xf32> to vector<1x128xf32>
    %93 = arith.addf %4, %92 : vector<1x128xf32>
    %c0_71 = arith.constant 0 : index
    %c0_72 = arith.constant 0 : index
    %94 = vector.load %arg5[%c0_71, %c0_72] : memref<1x128xf32, #tpu.memory_space<vmem>>, vector<1x128xf32>
    %95 = arith.addf %94, %89 : vector<1x128xf32>
    %c0_73 = arith.constant 0 : index
    %c0_74 = arith.constant 0 : index
    %96 = vector.load %arg5[%c0_73, %c0_74] : memref<1x128xf32, #tpu.memory_space<vmem>>, vector<1x128xf32>
    tpu.vector_store %arg5[%c0_73, %c0_74], %95 {strides = array<i32>} : memref<1x128xf32, #tpu.memory_space<vmem>>, vector<1x128xf32>,
    %c0_75 = arith.constant 0 : index
    %c0_76 = arith.constant 0 : index
    %97 = vector.load %arg6[%c0_75, %c0_76] : memref<1x128xf32, #tpu.memory_space<vmem>>, vector<1x128xf32>
    %98 = arith.addf %97, %93 : vector<1x128xf32>
    %c0_77 = arith.constant 0 : index
    %c0_78 = arith.constant 0 : index
    %99 = vector.load %arg6[%c0_77, %c0_78] : memref<1x128xf32, #tpu.memory_space<vmem>>, vector<1x128xf32>
    tpu.vector_store %arg6[%c0_77, %c0_78], %98 {strides = array<i32>} : memref<1x128xf32, #tpu.memory_space<vmem>>, vector<1x128xf32>,
    return
  }
  func.func @transform_0(%arg0: i32, %arg1: i32) -> (i32, i32, i32) {
    %c0_i32 = arith.constant 0 : i32
    %c0_i32_0 = arith.constant 0 : i32
    %c0_i32_1 = arith.constant 0 : i32
    return %arg1, %c0_i32, %c0_i32_0 : i32, i32, i32
  }
  func.func @transform_1(%arg0: i32, %arg1: i32) -> (i32, i32, i32, i32) {
    %c0_i32 = arith.constant 0 : i32
    %c0_i32_0 = arith.constant 0 : i32
    %c0_i32_1 = arith.constant 0 : i32
    %c0_i32_2 = arith.constant 0 : i32
    return %c0_i32, %c0_i32_0, %c0_i32_1, %arg0 : i32, i32, i32, i32
  }
  func.func @transform_2(%arg0: i32, %arg1: i32) -> (i32, i32, i32) {
    %c0_i32 = arith.constant 0 : i32
    %c0_i32_0 = arith.constant 0 : i32
    return %arg1, %c0_i32, %arg0 : i32, i32, i32
  }
  func.func @transform_3(%arg0: i32, %arg1: i32) -> (i32, i32) {
    %c0_i32 = arith.constant 0 : i32
    %c0_i32_0 = arith.constant 0 : i32
    return %c0_i32, %arg0 : i32, i32
  }
  func.func @transform_4(%arg0: i32, %arg1: i32) -> (i32, i32) {
    %c0_i32 = arith.constant 0 : i32
    %c0_i32_0 = arith.constant 0 : i32
    return %c0_i32, %arg0 : i32, i32
  }
}

</mosaic_0001>

<bundles_post_ra>
// kernel: conv3x3_bn_act.3
= control target key start
LH: loop header
LB: loop body
LE: loop exit
PB: predicated region body
PF: predicated region fallthrough
CT: control target
= control target key end

     0   :  { %s837_s18 = smov 0   ;;  %s839_s19 = smov 0   ;;  %s1020_s0 = inlined_call_operand.vmem [shape: bf16[2,288,128], index: 0, kind: input, shape index: {}]   ;;  %s1021_s1 = inlined_call_operand.vmem [shape: f32[1,128], index: 1, kind: input, shape index: {}]   ;;  %s1022_s2 = inlined_call_operand.vmem [shape: f32[1,128], index: 2, kind: input, shape index: {}]   ;;  %s1023_s3 = inlined_call_operand.vmem [shape: f32[1,128], index: 3, kind: input, shape index: {}]   ;;  %s1024_s4 = inlined_call_operand.vmem [shape: f32[1,128], index: 4, kind: input, shape index: {}]   ;;  %s1025_s5 = inlined_call_operand.vmem [shape: f32[2,288,128], index: 5, kind: output, shape index: {}]  }
   0x1   :  { %s841_s20 = smov 0  }
   0x2 LB: > { %s27_s21 = sadd.s32 1, %s801_s19  ;;  %p661_p0 = scmp.ge.s32.totalorder %s805_s20, 1  ;;  %s805_s20 = sphi %s841_s20, %s15_s20   ;;  %s801_s19 = sphi %s839_s19, %s1027_s19   ;;  %s797_s18 = sphi %s837_s18, %s1026_s18  }
   0x3   : > { %p29_p1 = scmp.ge.s32.totalorder %s27_s21, 2  ;;  %p238_p2 = scmp.lt.s32.totalorder %s805_s20, 3 }
   0x5   : > { %s1029_s21 = smov (%p29_p1, %s27_s21), 0  ;;  %p239_p3 = pnand %p661_p0, %p238_p2 }
   0x6   : > { %p284_p4 = scmp.lt.s32.totalorder (!%p239_p3), %s797_s18, 1 }
   0x7   : > { %242 = sbr.rel (%p239_p3) target bundleno = 87 (0x57), region = 40 }
   0xc   : > { %v312_v0 = vld [vmem:[%s1021_s1] sm:$0x1]  ;;  %s1031_s18 = smov (!%p284_p4, %s797_s18), 1 }
   0xd   : > { %v314_v1 = vld [vmem:[%s1022_s2] sm:$0x1]  ;;  %v313_v2 = vmul.f32 0.001953125, %v312_v0  ;;  %s755_s26 = smul.u32 144, %s1031_s18 }
   0xe   : > { %v315_v3 = vmul.f32 0.001953125, %v314_v1  ;;  %v330_v14 = vld [vmem:[%s1023_s3] sm:$0x1]  ;;  %s756_s9 = smul.u32 288, %s1031_s18 }
   0xf   : > { %v316_v4 = vmul.f32 %v313_v2, %v313_v2  ;;  %s867_s29 = scalar_lea.vmem %s1020_s0, %s755_s26  ;;  %v332_v24 = vld [vmem:[%s1024_s4] sm:$0x1] }
  0x10   : > { %v667_v15 = vld [vmem:[%s867_s29] sm:$0xff]   ;;  %v738_v16 = vld [vmem:[%s867_s29 + $0x8] sm:$0xff]   ;;  %v739_v18 = vld [vmem:[%s867_s29 + $0x10] sm:$0xff]   ;;  %s894_s12 = scalar_lea.vmem %s1025_s5, %s756_s9 }
  0x11   : > { %v317_v5 = vsub.f32 %v315_v3, %v316_v4  ;;  %v668_v20 = vunpack.c.l.bf16 %v667_v15  ;;  %v669_v21 = vunpack.c.h.bf16 %v667_v15  ;;  %v672_v22 = vunpack.c.l.bf16 %v738_v16  ;;  %v740_v23 = vld [vmem:[%s867_s29 + $0x18] sm:$0xff]   ;;  %v741_v31 = vld [vmem:[%s867_s29 + $0x20] sm:$0xff]   ;;  %v742_v36 = vld [vmem:[%s867_s29 + $0x28] sm:$0xff]  }
  0x12   : > { %v673_v25 = vunpack.c.h.bf16 %v738_v16  ;;  %v676_v28 = vunpack.c.l.bf16 %v739_v18  ;;  %v677_v29 = vunpack.c.h.bf16 %v739_v18  ;;  %v680_v30 = vunpack.c.l.bf16 %v740_v23  ;;  %v743_v45 = vld [vmem:[%s867_s29 + $0x30] sm:$0xff]   ;;  %v744_v53 = vld [vmem:[%s867_s29 + $0x38] sm:$0xff]   ;;  %v745_v60 = vld [vmem:[%s867_s29 + $0x40] sm:$0xff]  }
  0x13   : > { %v318_v6 = vmax.f32 %v317_v5, 0.0  ;;  %v681_v38 = vunpack.c.h.bf16 %v740_v23  ;;  %v684_v41 = vunpack.c.l.bf16 %v741_v31  ;;  %v685_v43 = vunpack.c.h.bf16 %v741_v31  ;;  %v746_v3 = vld [vmem:[%s867_s29 + $0x48] sm:$0xff]  }
  0x14   : > { %v688_v44 = vunpack.c.l.bf16 %v742_v36  ;;  %v689_v52 = vunpack.c.h.bf16 %v742_v36  ;;  %v692_v56 = vunpack.c.l.bf16 %v743_v45  ;;  %v693_v59 = vunpack.c.h.bf16 %v743_v45 }
  0x15   : > { %v319_v7 = vadd.f32 1e-05, %v318_v6  ;;  %v696_v63 = vunpack.c.l.bf16 %v744_v53  ;;  %v700_v6 = vunpack.c.l.bf16 %v745_v60  ;;  %v705_v16 = vunpack.c.h.bf16 %v746_v3 }
  0x17   : > { %781 = vrsqrt.f32 %v319_v7  ;;  %vm326_vm0 = vweird.f32 %v319_v7 }
  0x1d   : > { %v782_v8 = vpop.eup %781 }
  0x1e   : > { %v321_v9 = vmul.f32 %v782_v8, %v319_v7  ;;  %vm327_vm1 = vweird.f32 %v782_v8 }
  0x1f   : > { %vm328_vm2 = vmor %vm326_vm0, %vm327_vm1 }
  0x20   : > { %v322_v10 = vmul.f32 %v782_v8, %v321_v9  ;;  %v701_v9 = vunpack.c.h.bf16 %v745_v60 }
  0x22   : > { %v323_v11 = vmul.f32 0.5, %v322_v10  ;;  %v747_v10 = vld [vmem:[%s867_s29 + $0x50] sm:$0xff]  }
  0x23   : > { %v709_v23 = vunpack.c.h.bf16 %v747_v10 }
  0x24   : > { %v324_v12 = vsub.f32 1.5, %v323_v11 }
  0x26   : > { %v325_v13 = vmul.f32 %v782_v8, %v324_v12 }
  0x28   : > { %v329_v17 = vsel %vm328_vm2, %v782_v8, %v325_v13  ;;  %v704_v13 = vunpack.c.l.bf16 %v746_v3 }
  0x29   : > { %v331_v19 = vmul.f32 %v330_v14, %v329_v17  ;;  %v748_v17 = vld [vmem:[%s867_s29 + $0x58] sm:$0xff]  }
  0x2a   : > { %v713_v31 = vunpack.c.h.bf16 %v748_v17 }
  0x2b   : > { %v333_v26 = vmul.f32 %v331_v19, %v313_v2  ;;  %v879_v27 = vperm.slane %v331_v19, 0  ;;  %v697_v2 = vunpack.c.h.bf16 %v744_v53 }
  0x2d   : > { %v334_v32 = vsub.f32 %v332_v24, %v333_v26  ;;  %v410_v33 = vmul.f32 %v668_v20, %v879_v27  ;;  %v411_v34 = vmul.f32 %v669_v21, %v879_v27  ;;  %v412_v35 = vmul.f32 %v672_v22, %v879_v27  ;;  %v749_v24 = vld [vmem:[%s867_s29 + $0x60] sm:$0xff]  }
  0x2e   : > { %v413_v37 = vmul.f32 %v673_v25, %v879_v27  ;;  %v414_v40 = vmul.f32 %v676_v28, %v879_v27  ;;  %v415_v42 = vmul.f32 %v677_v29, %v879_v27  ;;  %v416_v49 = vmul.f32 %v680_v30, %v879_v27 }
  0x2f   : > { %v888_v39 = vperm.slane %v334_v32, 0  ;;  %v417_v51 = vmul.f32 %v681_v38, %v879_v27  ;;  %v418_v55 = vmul.f32 %v684_v41, %v879_v27  ;;  %v419_v58 = vmul.f32 %v685_v43, %v879_v27  ;;  %v750_v32 = vld [vmem:[%s867_s29 + $0x68] sm:$0xff]  }
  0x30   : > { %v420_v62 = vmul.f32 %v688_v44, %v879_v27  ;;  %v421_v1 = vmul.f32 %v689_v52, %v879_v27  ;;  %v422_v5 = vmul.f32 %v692_v56, %v879_v27  ;;  %v423_v8 = vmul.f32 %v693_v59, %v879_v27 }
  0x31   : > { %v449_v46 = vadd.f32 %v888_v39, %v410_v33  ;;  %v450_v47 = vadd.f32 %v888_v39, %v411_v34  ;;  %v451_v48 = vadd.f32 %v888_v39, %v412_v35  ;;  %v452_v50 = vadd.f32 %v888_v39, %v413_v37 }
  0x32   : > { %v453_v54 = vadd.f32 %v888_v39, %v414_v40  ;;  %v454_v57 = vadd.f32 %v888_v39, %v415_v42  ;;  %v455_v61 = vadd.f32 %v888_v39, %v416_v49  ;;  %v456_v0 = vadd.f32 %v888_v39, %v417_v51  ;;  %v751_v40 = vld [vmem:[%s867_s29 + $0x70] sm:$0xff]  }
  0x33   : > { %485 = vst [vmem:[%s894_s12] sm:$0xff] %v449_v46  ;;  %v457_v4 = vadd.f32 %v888_v39, %v418_v55  ;;  %v458_v7 = vadd.f32 %v888_v39, %v419_v58  ;;  %v459_v11 = vadd.f32 %v888_v39, %v420_v62  ;;  %v424_v12 = vmul.f32 %v696_v63, %v879_v27 }
  0x34   : > { %486 = vst [vmem:[%s894_s12 + $0x8] sm:$0xff] %v450_v47  ;;  %v460_v14 = vadd.f32 %v888_v39, %v421_v1  ;;  %v425_v15 = vmul.f32 %v697_v2, %v879_v27  ;;  %v461_v18 = vadd.f32 %v888_v39, %v422_v5  ;;  %v426_v19 = vmul.f32 %v700_v6, %v879_v27  ;;  %v752_v47 = vld [vmem:[%s867_s29 + $0x78] sm:$0xff]  }
  0x35   : > { %487 = vst [vmem:[%s894_s12 + $0x10] sm:$0xff] %v451_v48  ;;  %v708_v20 = vunpack.c.l.bf16 %v747_v10  ;;  %v462_v21 = vadd.f32 %v888_v39, %v423_v8  ;;  %v427_v22 = vmul.f32 %v701_v9, %v879_v27  ;;  %v463_v25 = vadd.f32 %v888_v39, %v424_v12 }
  0x36   : > { %488 = vst [vmem:[%s894_s12 + $0x18] sm:$0xff] %v452_v50  ;;  %v428_v26 = vmul.f32 %v704_v13, %v879_v27  ;;  %v712_v28 = vunpack.c.l.bf16 %v748_v17  ;;  %v464_v29 = vadd.f32 %v888_v39, %v425_v15  ;;  %v429_v30 = vmul.f32 %v705_v16, %v879_v27 }
  0x37   : > { %489 = vst [vmem:[%s894_s12 + $0x20] sm:$0xff] %v453_v54  ;;  %v465_v33 = vadd.f32 %v888_v39, %v426_v19  ;;  %v430_v34 = vmul.f32 %v708_v20, %v879_v27  ;;  %v716_v35 = vunpack.c.l.bf16 %v749_v24  ;;  %v466_v36 = vadd.f32 %v888_v39, %v427_v22  ;;  %v753_v54 = vld [vmem:[%s867_s29 + $0x80] sm:$0xff]  }
  0x38   : > { %490 = vst [vmem:[%s894_s12 + $0x28] sm:$0xff] %v454_v57  ;;  %v431_v37 = vmul.f32 %v709_v23, %v879_v27  ;;  %v717_v38 = vunpack.c.h.bf16 %v749_v24  ;;  %v467_v41 = vadd.f32 %v888_v39, %v428_v26  ;;  %v432_v42 = vmul.f32 %v712_v28, %v879_v27 }
  0x39   : > { %491 = vst [vmem:[%s894_s12 + $0x30] sm:$0xff] %v455_v61  ;;  %v720_v43 = vunpack.c.l.bf16 %v750_v32  ;;  %v468_v44 = vadd.f32 %v888_v39, %v429_v30  ;;  %v433_v45 = vmul.f32 %v713_v31, %v879_v27  ;;  %v721_v46 = vunpack.c.h.bf16 %v750_v32  ;;  %v754_v61 = vld [vmem:[%s867_s29 + $0x88] sm:$0xff]  }
  0x3a   : > { %492 = vst [vmem:[%s894_s12 + $0x38] sm:$0xff] %v456_v0  ;;  %v469_v48 = vadd.f32 %v888_v39, %v430_v34  ;;  %v434_v49 = vmul.f32 %v716_v35, %v879_v27  ;;  %v724_v50 = vunpack.c.l.bf16 %v751_v40  ;;  %v470_v51 = vadd.f32 %v888_v39, %v431_v37 }
  0x3b   : > { %493 = vst [vmem:[%s894_s12 + $0x40] sm:$0xff] %v457_v4  ;;  %v435_v52 = vmul.f32 %v717_v38, %v879_v27  ;;  %v725_v53 = vunpack.c.h.bf16 %v751_v40  ;;  %v471_v55 = vadd.f32 %v888_v39, %v432_v42  ;;  %v436_v56 = vmul.f32 %v720_v43, %v879_v27 }
  0x3c   : > { %494 = vst [vmem:[%s894_s12 + $0x48] sm:$0xff] %v458_v7  ;;  %v728_v57 = vunpack.c.l.bf16 %v752_v47  ;;  %v472_v58 = vadd.f32 %v888_v39, %v433_v45  ;;  %v437_v59 = vmul.f32 %v721_v46, %v879_v27  ;;  %v729_v60 = vunpack.c.h.bf16 %v752_v47 }
  0x3d   : > { %495 = vst [vmem:[%s894_s12 + $0x50] sm:$0xff] %v459_v11  ;;  %v473_v62 = vadd.f32 %v888_v39, %v434_v49  ;;  %v438_v63 = vmul.f32 %v724_v50, %v879_v27  ;;  %v732_v0 = vunpack.c.l.bf16 %v753_v54  ;;  %v474_v1 = vadd.f32 %v888_v39, %v435_v52 }
  0x3e   : > { %496 = vst [vmem:[%s894_s12 + $0x58] sm:$0xff] %v460_v14  ;;  %v439_v2 = vmul.f32 %v725_v53, %v879_v27  ;;  %v733_v3 = vunpack.c.h.bf16 %v753_v54  ;;  %v475_v4 = vadd.f32 %v888_v39, %v436_v56  ;;  %v440_v5 = vmul.f32 %v728_v57, %v879_v27 }
  0x3f   : > { %497 = vst [vmem:[%s894_s12 + $0x60] sm:$0xff] %v461_v18  ;;  %v736_v6 = vunpack.c.l.bf16 %v754_v61  ;;  %v476_v7 = vadd.f32 %v888_v39, %v437_v59  ;;  %v441_v8 = vmul.f32 %v729_v60, %v879_v27  ;;  %v737_v9 = vunpack.c.h.bf16 %v754_v61 }
  0x40   : > { %498 = vst [vmem:[%s894_s12 + $0x68] sm:$0xff] %v462_v21  ;;  %v477_v10 = vadd.f32 %v888_v39, %v438_v63  ;;  %v442_v11 = vmul.f32 %v732_v0, %v879_v27  ;;  %v478_v12 = vadd.f32 %v888_v39, %v439_v2  ;;  %v443_v13 = vmul.f32 %v733_v3, %v879_v27 }
  0x41   : > { %499 = vst [vmem:[%s894_s12 + $0x70] sm:$0xff] %v463_v25  ;;  %v479_v14 = vadd.f32 %v888_v39, %v440_v5  ;;  %v444_v15 = vmul.f32 %v736_v6, %v879_v27  ;;  %v480_v16 = vadd.f32 %v888_v39, %v441_v8  ;;  %v445_v17 = vmul.f32 %v737_v9, %v879_v27 }
  0x42   : > { %500 = vst [vmem:[%s894_s12 + $0x78] sm:$0xff] %v464_v29  ;;  %v481_v18 = vadd.f32 %v888_v39, %v442_v11  ;;  %v482_v19 = vadd.f32 %v888_v39, %v443_v13 }
  0x43   : > { %501 = vst [vmem:[%s894_s12 + $0x80] sm:$0xff] %v465_v33  ;;  %v483_v20 = vadd.f32 %v888_v39, %v444_v15  ;;  %v484_v21 = vadd.f32 %v888_v39, %v445_v17 }
  0x44   : > { %502 = vst [vmem:[%s894_s12 + $0x88] sm:$0xff] %v466_v36 }
  0x45   : > { %503 = vst [vmem:[%s894_s12 + $0x90] sm:$0xff] %v467_v41 }
  0x46   : > { %504 = vst [vmem:[%s894_s12 + $0x98] sm:$0xff] %v468_v44 }
  0x47   : > { %505 = vst [vmem:[%s894_s12 + $0xa0] sm:$0xff] %v469_v48 }
  0x48   : > { %506 = vst [vmem:[%s894_s12 + $0xa8] sm:$0xff] %v470_v51 }
  0x49   : > { %507 = vst [vmem:[%s894_s12 + $0xb0] sm:$0xff] %v471_v55 }
  0x4a   : > { %508 = vst [vmem:[%s894_s12 + $0xb8] sm:$0xff] %v472_v58 }
  0x4b   : > { %509 = vst [vmem:[%s894_s12 + $0xc0] sm:$0xff] %v473_v62 }
  0x4c   : > { %510 = vst [vmem:[%s894_s12 + $0xc8] sm:$0xff] %v474_v1 }
  0x4d   : > { %511 = vst [vmem:[%s894_s12 + $0xd0] sm:$0xff] %v475_v4 }
  0x4e   : > { %512 = vst [vmem:[%s894_s12 + $0xd8] sm:$0xff] %v476_v7 }
  0x4f   : > { %513 = vst [vmem:[%s894_s12 + $0xe0] sm:$0xff] %v477_v10 }
  0x50   : > { %514 = vst [vmem:[%s894_s12 + $0xe8] sm:$0xff] %v478_v12 }
  0x51   : > { %515 = vst [vmem:[%s894_s12 + $0xf0] sm:$0xff] %v479_v14 }
  0x52   : > { %516 = vst [vmem:[%s894_s12 + $0xf8] sm:$0xff] %v480_v16 }
  0x53   : > { %517 = vst [vmem:[%s894_s12 + $0x100] sm:$0xff] %v481_v18 }
  0x54   : > { %518 = vst [vmem:[%s894_s12 + $0x108] sm:$0xff] %v482_v19 }
  0x55   : > { %519 = vst [vmem:[%s894_s12 + $0x110] sm:$0xff] %v483_v20 }
  0x56   : > { %520 = vst [vmem:[%s894_s12 + $0x118] sm:$0xff] %v484_v21 }
  0x57 PF: > { %s15_s20 = sadd.s32 1, %s805_s20   ;;  %s1026_s18 = smov %s801_s19 }
  0x58   : > { %p12_p5 = scmp.ge.s32.totalorder %s15_s20, 4   ;;  %s1027_s19 = smov %s1029_s21 }
  0x5a   :  { %14 = sbr.rel (!%p12_p5) target bundleno = 2 (0x2), region = 82 }

// kernel: conv3x3_bn_act.2
= control target key start
LH: loop header
LB: loop body
LE: loop exit
PB: predicated region body
PF: predicated region fallthrough
CT: control target
= control target key end

     0   :  { %s5327_s15 = smov 0   ;;  %s5329_s16 = smov 0   ;;  %s7285_s0 = inlined_call_operand.vmem [shape: bf16[2,332,8], index: 0, kind: input, shape index: {}]   ;;  %s7286_s1 = inlined_call_operand.vmem [shape: bf16[1,9,8,128], index: 1, kind: input, shape index: {}]   ;;  %s7287_s2 = inlined_call_operand.vmem [shape: bf16[2,288,128], index: 2, kind: output, shape index: {0}]   ;;  %s7288_s3 = inlined_call_operand.vmem [shape: f32[1,128], index: 3, kind: output, shape index: {1}]   ;;  %s7289_s4 = inlined_call_operand.vmem [shape: f32[1,128], index: 4, kind: output, shape index: {2}]  }
   0x1   :  { %s5331_s17 = smov 0  }
   0x2 LB: > { %s24_s18 = sadd.s32 1, %s5294_s16  ;;  %p4678_p0 = scmp.ge.s32.totalorder %s5298_s17, 1  ;;  %s5298_s17 = sphi %s5331_s17, %s15_s17   ;;  %s5294_s16 = sphi %s5329_s16, %s7439_s16   ;;  %s5290_s15 = sphi %s5327_s15, %s7438_s15  }
   0x3   : > { %p25_p1 = scmp.ge.s32.totalorder %s24_s18, 2  ;;  %p190_p2 = scmp.lt.s32.totalorder %s5298_s17, 3 }
   0x5   : > { %s7441_s18 = smov (%p25_p1, %s24_s18), 0  ;;  %p191_p3 = pnand %p4678_p0, %p190_p2 }
   0x7   : > { %194 = sbr.rel (%p191_p3) target bundleno = 883 (0x373), region = 28 }
   0xc   : > { %p229_p4 = scmp.lt.s32.totalorder %s5290_s15, 1  ;;  %p4681_p5 = scmp.ne.s32.totalorder %s5290_s15, 0 }
   0xe   : > { %s230_s19 = scalar_select %p229_p4, %s5290_s15, 1 }
   0xf   : > { %256 = sbr.rel (%p4681_p5) target bundleno = 23 (0x17), region = 32 }
  0x10   : > { %s5228_s20 = smul.u32 168, %s230_s19 }
  0x11   : > { %s5229_s21 = smul.u32 144, %s230_s19 }
  0x12   : > { %s5348_s24 = scalar_lea.vmem %s7285_s0, %s5228_s20 }
  0x13   : > { %s5353_s27 = scalar_lea.vmem %s7287_s2, %s5229_s21 }
  0x14   : > { %v5300_v0 = vmov 0.0  }
  0x15   : > { %257 = vst [vmem:[%s7288_s3] sm:$0x1] %v5300_v0 }
  0x16   : > { %258 = vst [vmem:[%s7289_s4] sm:$0x1] %v5300_v0 }
  0x17 PF: > { %v4682_v1 = vld [vmem:[%s7286_s1 + $0x4] sm:$0xf]  ;;  %vm596_vm0 = vcmask 1043456   ;;  %v5365_v2 = vld [vmem:[%s5348_s24 + $0x28] sm:$0xff]  ;;  %v5368_v3 = vld [vmem:[%s5348_s24 + $0x30] sm:$0xff]  ;;  %vm541_vm2 = vcmask 64512  }
  0x18   : > { %v598_v4 = vsel %vm596_vm0, %v4682_v1, 0  ;;  %vm392_vm1 = vsmask.f32 7424  ;;  %v5372_v5 = vld [vmem:[%s5348_s24 + $0x50] sm:$0xff]  ;;  %v5375_v6 = vld [vmem:[%s5348_s24 + $0x58] sm:$0xff]  ;;  %v5378_v7 = vld [vmem:[%s5348_s24] sm:$0xff]  }
  0x19   : > { %5225 = vmatpush.bf16.msra.mxu1 %v598_v4  ;;  %5226 = vmatpush.bf16.msra.mxu2 %v598_v4  ;;  %v433_v8 = vshll.u32 %v5365_v2, 16  ;;  %v437_v9 = vshrl.u32 %v5365_v2, 16  ;;  %v441_v10 = vshll.u32 %v5368_v3, 16  ;;  %v4787_v11 = vld [vmem:[%s7286_s1 + $0x8] sm:$0xf]  ;;  %v473_v13 = vshll.u32 %v5372_v5, 16 }
  0x1a   : > { %v5387_v12 = vld [vmem:[%s5348_s24 + $0x8] sm:$0xff]  ;;  %607 = vmatpush.bf16.msra.mxu0 %v598_v4  ;;  %v477_v14 = vshrl.u32 %v5372_v5, 16  ;;  %v481_v15 = vshll.u32 %v5375_v6, 16  ;;  %v936_v16 = vsel %vm596_vm0, %v4787_v11, 0  ;;  %v295_v17 = vld [vmem:[%s7286_s1] sm:$0xf]  ;;  %5227 = vmatpush.bf16.msra.mxu3 %v598_v4 }
  0x1b   : > { %v5396_v18 = vrot.slane %v433_v8, 1  ;;  %v443_v19 = vrot.slane %v441_v10, 1  ;;  %v394_v20 = vshrl.u32 %v5378_v7, 16  ;;  %v396_v21 = vshll.u32 %v5378_v7, 16  ;;  %v4893_v22 = vld [vmem:[%s7286_s1 + $0x10] sm:$0xf] }
  0x1c   : > { %v5403_v23 = vrot.slane %v473_v13, 1  ;;  %v483_v24 = vrot.slane %v481_v15, 1  ;;  %v401_v25 = vshll.u32 %v5387_v12, 16  ;;  %v736_v26 = vsel %vm596_vm0, %v295_v17, 0  ;;  %v5410_v30 = vld [vmem:[%s5348_s24 + $0x78] sm:$0xff]  ;;  %v5075_v33 = vld [vmem:[%s5348_s24 + $0x80] sm:$0xff] }
  0x1d   : > { %945 = vmatpush.bf16.msrb.mxu2 %v936_v16  ;;  %v439_v27 = vor.u32 %v437_v9, %v5396_v18  ;;  %v398_v28 = vrot.slane %v396_v21, 1  ;;  %745 = vmatpush.bf16.msrb.mxu1 %v736_v26  ;;  %v1666_v29 = vsel %vm596_vm0, %v4893_v22, 0  ;;  %v5420_v38 = vld [vmem:[%s5348_s24 + $0x38] sm:$0xff]  ;;  %v513_v39 = vshll.u32 %v5410_v30, 16  ;;  %v5425_v40 = vld [vmem:[%s5348_s24 + $0x60] sm:$0xff]  ;;  %v5429_v43 = vld [vmem:[%s5348_s24 + $0x10] sm:$0xff] }
  0x1e   : > { %v479_v31 = vor.u32 %v477_v14, %v5403_v23  ;;  %v403_v32 = vrot.slane %v401_v25, 1  ;;  %1675 = vmatpush.bf16.msrb.mxu0 %v1666_v29  ;;  %v517_v41 = vshrl.u32 %v5410_v30, 16  ;;  %v521_v42 = vshll.u32 %v5075_v33, 16  ;;  %v4806_v46 = vld [vmem:[%s7286_s1 + $0xc] sm:$0xf]  ;;  %v5457_v11 = vld [vmem:[%s5348_s24 + $0x40] sm:$0xff] }
  0x1f   : > { %v444_v34 = vsel %vm392_vm1, %v439_v27, %v443_v19  ;;  %v399_v35 = vor.u32 %v398_v28, %v394_v20  ;;  %v5431_v44 = vrot.slane %v513_v39, 1  ;;  %v445_v47 = vshrl.u32 %v5368_v3, 16  ;;  %v5076_v58 = vld [vmem:[%s5348_s24 + $0x88] sm:$0xff]  ;;  %v296_v17 = vld [vmem:[%s5348_s24 + $0x90] sm:$0x1]  ;;  %v5466_v20 = vld [vmem:[%s5348_s24 + $0x18] sm:$0xff] }
  0x20   : > { %4756 = vmatmul.msk.bf16.vlgmr.msra.gmra.mxu1 %vm541_vm2, %v444_v34  ;;  %v484_v36 = vsel %vm392_vm1, %v479_v31, %v483_v24  ;;  %v523_v45 = vrot.slane %v521_v42, 1  ;;  %v449_v48 = vshll.u32 %v5420_v38, 16  ;;  %v485_v50 = vshrl.u32 %v5375_v6, 16  ;;  %v5448_v61 = vld [vmem:[%s5348_s24 + $0x48] sm:$0xff]  ;;  %v5474_v29 = vld [vmem:[%s5348_s24 + $0x20] sm:$0xff] }
  0x21   : > { %4761 = vmatmul.msk.bf16.vlgmr.msra.gmra.mxu2 %vm541_vm2, %v484_v36  ;;  %v404_v37 = vsel %vm392_vm1, %v399_v35, %v403_v32  ;;  %v519_v49 = vor.u32 %v517_v41, %v5431_v44  ;;  %v489_v51 = vshll.u32 %v5425_v40, 16  ;;  %v405_v52 = vshrl.u32 %v5387_v12, 16  ;;  %v5461_v15 = vld [vmem:[%s5348_s24 + $0x68] sm:$0xff] }
  0x22   : > { %4751 = vmatmul.msk.bf16.vlgmr.msra.gmra.mxu0 %vm541_vm2, %v404_v37  ;;  %v409_v53 = vshll.u32 %v5429_v43, 16  ;;  %v1297_v55 = vsel %vm596_vm0, %v4806_v46, 0  ;;  %v447_v56 = vor.u32 %v445_v47, %v443_v19  ;;  %v451_v57 = vrot.slane %v449_v48, 1 }
  0x23   : > { %v524_v54 = vsel %vm392_vm1, %v519_v49, %v523_v45  ;;  %1306 = vmatpush.bf16.msrb.mxu3 %v1297_v55  ;;  %v487_v59 = vor.u32 %v485_v50, %v483_v24  ;;  %v491_v60 = vrot.slane %v489_v51, 1  ;;  %v407_v62 = vor.u32 %v405_v52, %v403_v32  ;;  %v5495_v55 = vld [vmem:[%s5348_s24 + $0x70] sm:$0xff] }
  0x24   : > { %4766 = vmatmul.msk.bf16.vlgmr.msra.gmra.mxu3 %vm541_vm2, %v524_v54  ;;  %v411_v63 = vrot.slane %v409_v53, 1  ;;  %v452_v0 = vsel %vm392_vm1, %v447_v56, %v451_v57  ;;  %v525_v1 = vshrl.u32 %v5075_v33, 16  ;;  %v529_v4 = vshll.u32 %v5076_v58, 16 }
  0x25   : > { %v492_v8 = vsel %vm392_vm1, %v487_v59, %v491_v60  ;;  %v465_v9 = vshll.u32 %v5448_v61, 16  ;;  %v469_v19 = vshrl.u32 %v5448_v61, 16  ;;  %v453_v22 = vshrl.u32 %v5420_v38, 16 }
  0x26   : > { %v412_v10 = vsel %vm392_vm1, %v407_v62, %v411_v63  ;;  %v527_v13 = vor.u32 %v525_v1, %v523_v45  ;;  %v531_v14 = vrot.slane %v529_v4, 1  ;;  %v457_v24 = vshll.u32 %v5457_v11, 16  ;;  %v1073_v62 = vld [vmem:[%s5348_s24 + $0x8] sm:$0xe] }
  0x27   : > { %v467_v16 = vrot.slane %v465_v9, 1  ;;  %v372_v26 = vunpack.c.l.b16 %v296_v17  ;;  %v493_v27 = vshrl.u32 %v5425_v40, 16  ;;  %v497_v28 = vshll.u32 %v5461_v15, 16 }
  0x28   : > { %v532_v25 = vsel %vm392_vm1, %v527_v13, %v531_v14  ;;  %v413_v32 = vshrl.u32 %v5429_v43, 16  ;;  %v417_v33 = vshll.u32 %v5466_v20, 16  ;;  %v455_v34 = vor.u32 %v453_v22, %v451_v57 }
  0x29   : > { %v471_v21 = vor.u32 %v469_v19, %v467_v16  ;;  %v459_v35 = vrot.slane %v457_v24, 1  ;;  %v5483_v36 = vpack.c.b16 %v372_v26, %v372_v26  ;;  %v495_v37 = vor.u32 %v493_v27, %v491_v60  ;;  %v5018_v26 = vld [vmem:[%s7286_s1 + $0x1c] sm:$0xf]  ;;  %v4912_v27 = vld [vmem:[%s7286_s1 + $0x14] sm:$0xf] }
  0x2a   : > { %v499_v39 = vrot.slane %v497_v28, 1  ;;  %v425_v41 = vshll.u32 %v5474_v29, 16  ;;  %v415_v42 = vor.u32 %v413_v32, %v411_v63  ;;  %v419_v45 = vrot.slane %v417_v33, 1  ;;  %v5505_v63 = vld [vmem:[%s5348_s24 + $0xc] sm:$0xf] }
  0x2b   : > { %v5478_v31 = vsel %vm392_vm1, %v471_v21, %v5403_v23  ;;  %v460_v23 = vsel %vm392_vm1, %v455_v34, %v459_v35  ;;  %v533_v46 = vshrl.u32 %v5076_v58, 16  ;;  %v537_v47 = vshll.u32 %v5483_v36, 16  ;;  %v5037_v33 = vld [vmem:[%s7286_s1 + $0x20] sm:$0xf] }
  0x2c   : > { %v500_v48 = vsel %vm392_vm1, %v495_v37, %v499_v39  ;;  %v427_v49 = vrot.slane %v425_v41, 1  ;;  %v429_v50 = vshrl.u32 %v5474_v29, 16  ;;  %v420_v51 = vsel %vm392_vm1, %v415_v42, %v419_v45  ;;  %v5078_v41 = vld [vmem:[%s5348_s24 + $0x18] sm:$0xff] }
  0x2d   : > { %v535_v53 = vor.u32 %v533_v46, %v531_v14  ;;  %v539_v54 = vrot.slane %v537_v47, 1  ;;  %v461_v57 = vshrl.u32 %v5457_v11, 16  ;;  %v501_v59 = vshrl.u32 %v5461_v15, 16  ;;  %v5077_v14 = vld [vmem:[%s5348_s24 + $0x10] sm:$0xff]  ;;  %v5206_v46 = vld [vmem:[%s5348_s24] sm:$0xe] }
  0x2e   : > { %v431_v52 = vor.u32 %v429_v50, %v427_v49  ;;  %v505_v60 = vshll.u32 %v5495_v55, 16  ;;  %v1149_v4 = vunpack.c.l.b16 %v1073_v62  ;;  %v1206_v24 = vrot.slane %v5077_v14, 1 }
  0x2f   : > { %v540_v58 = vsel %vm392_vm1, %v535_v53, %v539_v54  ;;  %v463_v1 = vor.u32 %v461_v57, %v459_v35  ;;  %vm843_vm3 = vcmask 1046528   ;;  %v2632_v28 = vsel %vm596_vm0, %v5018_v26, 0 }
  0x30   : > { %4757 = vmatmul.msk.bf16.gmra.mxu1 %vm541_vm2, %v452_v0  ;;  %v436_v56 = vsel %vm392_vm1, %v431_v52, %v5396_v18  ;;  %v421_v0 = vshrl.u32 %v5466_v20, 16  ;;  %v7290_v18 = vunpack.c.l.b16 %v5505_v63  ;;  %v507_v9 = vrot.slane %v505_v60, 1  ;;  %2641 = vmatpush.bf16.msra.mxu3 %v2632_v28  ;;  %v5079_v60 = vld [vmem:[%s5348_s24 + $0x20] sm:$0xff] }
  0x31   : > { %4762 = vmatmul.msk.bf16.gmra.mxu2 %vm541_vm2, %v492_v8  ;;  %v503_v8 = vor.u32 %v501_v59, %v499_v39  ;;  %v468_v13 = vsel %vm392_vm1, %v463_v1, %v467_v16  ;;  %v1902_v32 = vsel %vm596_vm0, %v4912_v27, 0  ;;  %v2868_v34 = vsel %vm596_vm0, %v5037_v33, 0  ;;  %v5081_v33 = vld [vmem:[%s5348_s24 + $0x30] sm:$0xff] }
  0x32   : > { %4752 = vmatmul.msk.bf16.gmra.mxu0 %vm541_vm2, %v412_v10  ;;  %v423_v10 = vor.u32 %v421_v0, %v419_v45  ;;  %v1186_v17 = vpack.c.b16 %v7290_v18, %v1149_v4  ;;  %1911 = vmatpush.bf16.msra.mxu1 %v1902_v32  ;;  %v509_v37 = vshrl.u32 %v5495_v55, 16  ;;  %v1208_v45 = vrot.slane %v5078_v41, 1 }
  0x33   : > { %v508_v19 = vsel %vm392_vm1, %v503_v8, %v507_v9  ;;  %2877 = vmatpush.bf16.msra.mxu0 %v2868_v34  ;;  %v1453_v50 = vshll.u32 %v5077_v14, 16  ;;  %vm1440_vm4 = vsmask.f32 6400  ;;  %v1210_v1 = vrot.slane %v5079_v60, 1 }
  0x34   : > { %4767 = vmatmul.msk.bf16.gmra.mxu3 %vm541_vm2, %v532_v25  ;;  %v428_v21 = vsel %vm392_vm1, %v423_v10, %v427_v49  ;;  %v1205_v22 = vrot.slane %v1186_v17, 1  ;;  %v4931_v25 = vld [vmem:[%s7286_s1 + $0x18] sm:$0xf]  ;;  %v511_v39 = vor.u32 %v509_v37, %v507_v9  ;;  %v1442_v47 = vshrl.u32 %v1186_v17, 16 }
  0x35   : > { %v2263_v16 = vsel %vm596_vm0, %v4931_v25, 0  ;;  %v1450_v49 = vshrl.u32 %v5077_v14, 16  ;;  %v1455_v57 = vrot.slane %v1453_v50, 2  ;;  %v1459_v4 = vshrl.u32 %v5078_v41, 16 }
  0x36   : > { %2272 = vmatpush.bf16.msra.mxu2 %v2263_v16  ;;  %v1207_v35 = vsel %vm843_vm3, %v1205_v22, %v1206_v24  ;;  %v516_v42 = vsel %vm392_vm1, %v511_v39, %v5431_v44  ;;  %v1444_v53 = vrot.slane %v1442_v47, 1  ;;  %v1462_v8 = vshll.u32 %v5078_v41, 16 }
  0x37   : > { %v1452_v54 = vrot.slane %v1450_v49, 1  ;;  %v1211_v9 = vsel %vm843_vm3, %v1208_v45, %v1210_v1  ;;  %v1461_v10 = vrot.slane %v1459_v4, 1  ;;  %v847_v14 = vrot.slane %v5429_v43, 1 }
  0x38   : > { %v1471_v25 = vshll.u32 %v5079_v60, 16  ;;  %v849_v28 = vrot.slane %v5466_v20, 1  ;;  %vm2406_vm5 = vsmask.f32 5376  ;;  %vm1809_vm6 = vcmask 1045504  }
  0x39   : > { %v1456_v59 = vor.u32 %v1455_v57, %v1452_v54  ;;  %vm2775_vm7 = vcmask 1044480  }
  0x3a   : > { %v1473_v27 = vrot.slane %v1471_v25, 2  ;;  %v855_v25 = vrot.slane %v5368_v3, 1 }
  0x40   : > { %4758 = vmatmul.msk.bf16.gmra.mxu1 %vm541_vm2, %v460_v23  ;;  %v5205_v23 = vld [vmem:[%s5348_s24] sm:$0xf0] }
  0x41   : > { %4763 = vmatmul.msk.bf16.gmra.mxu2 %vm541_vm2, %v500_v48  ;;  %v1445_v48 = vshll.u32 %v1186_v17, 16  ;;  %v5207_v52 = vor.u32 %v5206_v46, %v5205_v23  ;;  %v851_v23 = vrot.slane %v5474_v29, 1 }
  0x42   : > { %4753 = vmatmul.msk.bf16.gmra.mxu0 %vm541_vm2, %v420_v51  ;;  %v1209_v51 = vsel %vm843_vm3, %v1206_v24, %v1208_v45  ;;  %v1468_v24 = vshrl.u32 %v5079_v60, 16 }
  0x43   : > { %v1447_v44 = vrot.slane %v1445_v48, 2  ;;  %v5082_v48 = vld [vmem:[%s5348_s24 + $0x38] sm:$0xff] }
  0x44   : > { %4768 = vmatmul.msk.bf16.gmra.mxu3 %vm541_vm2, %v540_v58  ;;  %v845_v58 = vrot.slane %v5387_v12, 1  ;;  %v1470_v26 = vrot.slane %v1468_v24, 1 }
  0x46   : > { %v1474_v32 = vor.u32 %v1473_v27, %v1470_v26 }
  0x50   : > { %4759 = vmatmul.msk.bf16.gmra.mxu1 %vm541_vm2, %v468_v13  ;;  %v1464_v13 = vrot.slane %v1462_v8, 2 }
  0x51   : > { %4764 = vmatmul.msk.bf16.gmra.mxu2 %vm541_vm2, %v508_v19  ;;  %v5080_v19 = vld [vmem:[%s5348_s24 + $0x28] sm:$0xff] }
  0x52   : > { %4754 = vmatmul.msk.bf16.gmra.mxu0 %vm541_vm2, %v428_v21  ;;  %v1465_v17 = vor.u32 %v1464_v13, %v1461_v10  ;;  %v1212_v22 = vrot.slane %v5080_v19, 1  ;;  %v1477_v37 = vshrl.u32 %v5080_v19, 16  ;;  %v1480_v39 = vshll.u32 %v5080_v19, 16 }
  0x53   : > { %v1495_v13 = vshrl.u32 %v5082_v48, 16 }
  0x54   : > { %4875 = vmatmul.msk.bf16.vlgmr.msrb.gmra.mxu3 %vm541_vm2, %v1207_v35  ;;  %v1466_v21 = vsel %vm1440_vm4, %v1456_v59, %v1465_v17  ;;  %v1213_v16 = vsel %vm843_vm3, %v1210_v1, %v1212_v22  ;;  %v1475_v34 = vsel %vm1440_vm4, %v1465_v17, %v1474_v32  ;;  %v1214_v35 = vrot.slane %v5081_v33, 1  ;;  %v5083_v1 = vld [vmem:[%s5348_s24 + $0x40] sm:$0xff] }
  0x55   : > { %v1482_v45 = vrot.slane %v1480_v39, 2  ;;  %v1218_v10 = vrot.slane %v5083_v1, 1  ;;  %v1497_v24 = vrot.slane %v1495_v13, 1  ;;  %v1507_v39 = vshll.u32 %v5083_v1, 16 }
  0x56   : > { %v1215_v41 = vsel %vm843_vm3, %v1212_v22, %v1214_v35 }
  0x60   : > { %4760 = vmatmul.msk.bf16.gmra.mxu1 %vm541_vm2, %v5478_v31  ;;  %v844_v31 = vrot.slane %v5207_v52, 1  ;;  %v1486_v52 = vshrl.u32 %v5081_v33, 16 }
  0x61   : > { %4765 = vmatmul.msk.bf16.gmra.mxu2 %vm541_vm2, %v516_v42  ;;  %v1479_v42 = vrot.slane %v1477_v37, 1  ;;  %v1504_v37 = vshrl.u32 %v5083_v1, 16 }
  0x62   : > { %4755 = vmatmul.msk.bf16.gmra.mxu0 %vm541_vm2, %v436_v56  ;;  %v1448_v56 = vor.u32 %v1447_v44, %v1444_v53  ;;  %v846_v62 = vsel %vm843_vm3, %v844_v31, %v845_v58  ;;  %v1489_v53 = vshll.u32 %v5081_v33, 16 }
  0x63   : > { %v1483_v46 = vor.u32 %v1482_v45, %v1479_v42 }
  0x64   : > { %4876 = vmatmul.msk.bf16.gmra.mxu3 %vm541_vm2, %v1209_v51  ;;  %v1457_v0 = vsel %vm1440_vm4, %v1448_v56, %v1456_v59  ;;  %v1216_v51 = vrot.slane %v5082_v48, 1  ;;  %v1491_v56 = vrot.slane %v1489_v53, 2 }
  0x65   : > { %v1484_v50 = vsel %vm1440_vm4, %v1474_v32, %v1483_v46  ;;  %v5084_v32 = vld [vmem:[%s5348_s24 + $0x48] sm:$0xff] }
  0x66   : > { %v1217_v57 = vsel %vm843_vm3, %v1214_v35, %v1216_v51  ;;  %v1220_v35 = vrot.slane %v5084_v32, 1  ;;  %v1513_v1 = vshrl.u32 %v5084_v32, 16 }
  0x70   : > { %4769 = vmatmul.msk.bf16.vlgmr.msrb.gmra.mxu1 %vm541_vm2, %v5378_v7  ;;  %v848_v7 = vsel %vm843_vm3, %v845_v58, %v847_v14  ;;  %v1488_v58 = vrot.slane %v1486_v52, 1 }
  0x71   : > { %4788 = vmatmul.msk.bf16.vlgmr.msrb.gmra.mxu2 %vm541_vm2, %v846_v62 }
  0x72   : > { %4894 = vmatmul.msk.bf16.vlgmr.msrb.gmra.mxu0 %vm541_vm2, %v1457_v0  ;;  %v1492_v59 = vor.u32 %v1491_v56, %v1488_v58 }
  0x74   : > { %4877 = vmatmul.msk.bf16.gmra.mxu3 %vm541_vm2, %v1211_v9  ;;  %v1493_v9 = vsel %vm1440_vm4, %v1483_v46, %v1492_v59 }
  0x80   : > { %4770 = vmatmul.msk.bf16.gmra.mxu1 %vm541_vm2, %v5387_v12  ;;  %v850_v12 = vsel %vm843_vm3, %v847_v14, %v849_v28  ;;  %v1498_v14 = vshll.u32 %v5082_v48, 16  ;;  %v1506_v48 = vrot.slane %v1504_v37, 1 }
  0x81   : > { %4789 = vmatmul.msk.bf16.gmra.mxu2 %vm541_vm2, %v848_v7 }
  0x82   : > { %4895 = vmatmul.msk.bf16.gmra.mxu0 %vm541_vm2, %v1466_v21  ;;  %v1219_v21 = vsel %vm843_vm3, %v1216_v51, %v1218_v10 }
  0x84   : > { %4878 = vmatmul.msk.bf16.gmra.mxu3 %vm541_vm2, %v1213_v16 }
  0x90   : > { %4771 = vmatmul.msk.bf16.gmra.mxu1 %vm541_vm2, %v5429_v43  ;;  %v852_v43 = vsel %vm843_vm3, %v849_v28, %v851_v23 }
  0x91   : > { %4790 = vmatmul.msk.bf16.gmra.mxu2 %vm541_vm2, %v850_v12 }
  0x92   : > { %4896 = vmatmul.msk.bf16.gmra.mxu0 %vm541_vm2, %v1475_v34 }
  0x94   : > { %4879 = vmatmul.msk.bf16.gmra.mxu3 %vm541_vm2, %v1215_v41 }
  0x9d   : > { %v5580_v47 = vpop.f32.mrf.mxu1 }
  0x9f   : > { %v5584_v49 = vpop.f32.mrf.mxu0 }
  0xa0   : > { %4772 = vmatmul.msk.bf16.gmra.mxu1 %vm541_vm2, %v5466_v20  ;;  %v853_v20 = vrot.slane %v5365_v2, 1 }
  0xa1   : > { %4791 = vmatmul.msk.bf16.gmra.mxu2 %vm541_vm2, %v852_v43  ;;  %v857_v43 = vrot.slane %v5420_v38, 1 }
  0xa2   : > { %4897 = vmatmul.msk.bf16.gmra.mxu0 %vm541_vm2, %v1484_v50  ;;  %v854_v4 = vsel %vm843_vm3, %v851_v23, %v853_v20  ;;  %v856_v33 = vsel %vm843_vm3, %v853_v20, %v855_v25  ;;  %v1221_v23 = vsel %vm843_vm3, %v1218_v10, %v1220_v35 }
  0xa3   : > { %v858_v58 = vsel %vm843_vm3, %v855_v25, %v857_v43 }
  0xa4   : > { %v5591_v44 = vpop.f32.mrf.mxu2  ;;  %4880 = vmatmul.msk.bf16.gmra.mxu3 %vm541_vm2, %v1217_v57  ;;  %v5085_v57 = vld [vmem:[%s5348_s24 + $0x50] sm:$0xff] }
  0xa5   : > { %v5593_v54 = vpop.f32.mrf.mxu1 }
  0xa7   : > { %v5596_v31 = vpop.f32.mrf.mxu0  ;;  %v5600_v60 = vpop.f32.mrf.mxu3 }
  0xa8   : > { %7303 = vst [vmem:[#allocation2_spill] sm:$0xff] %v5600_v60 }
  0xac   : > { %v5602_v62 = vpop.f32.mrf.mxu2 }
  0xad   : > { %v5604_v0 = vpop.f32.mrf.mxu1 }
  0xaf   : > { %v5608_v8 = vpop.f32.mrf.mxu0  ;;  %v5615_v17 = vpop.f32.mrf.mxu3 }
  0xb0   : > { %4773 = vmatmul.msk.bf16.gmra.mxu1 %vm541_vm2, %v5474_v29  ;;  %7304 = vst [vmem:[#allocation3_spill] sm:$0xff] %v5615_v17  ;;  %v1500_v29 = vrot.slane %v1498_v14, 2 }
  0xb1   : > { %4792 = vmatmul.msk.bf16.gmra.mxu2 %vm541_vm2, %v854_v4  ;;  %v1516_v4 = vshll.u32 %v5084_v32, 16 }
  0xb2   : > { %4898 = vmatmul.msk.bf16.gmra.mxu0 %vm541_vm2, %v1493_v9  ;;  %v1501_v16 = vor.u32 %v1500_v29, %v1497_v24  ;;  %v1515_v24 = vrot.slane %v1513_v1, 1  ;;  %v859_v29 = vrot.slane %v5457_v11, 1 }
  0xb4   : > { %v5617_v19 = vpop.f32.mrf.mxu2  ;;  %4881 = vmatmul.msk.bf16.gmra.mxu3 %vm541_vm2, %v1219_v21  ;;  %v1502_v34 = vsel %vm1440_vm4, %v1492_v59, %v1501_v16  ;;  %v1222_v59 = vrot.slane %v5085_v57, 1  ;;  %v860_v37 = vsel %vm843_vm3, %v857_v43, %v859_v29 }
  0xb5   : > { %v5619_v7 = vpop.f32.mrf.mxu1 }
  0xb6   : > { %v1223_v14 = vsel %vm843_vm3, %v1220_v35, %v1222_v59 }
  0xb7   : > { %v5622_v22 = vpop.f32.mrf.mxu0  ;;  %v5626_v26 = vpop.f32.mrf.mxu3 }
  0xb8   : > { %7305 = vst [vmem:[#allocation4_spill] sm:$0xff] %v5626_v26 }
  0xbc   : > { %v5628_v27 = vpop.f32.mrf.mxu2 }
  0xbd   : > { %v5630_v28 = vpop.f32.mrf.mxu1 }
  0xbf   : > { %v5634_v12 = vpop.f32.mrf.mxu0  ;;  %v5641_v41 = vpop.f32.mrf.mxu3 }
  0xc0   : > { %4774 = vmatmul.msk.bf16.gmra.mxu1 %vm541_vm2, %v5365_v2  ;;  %7306 = vst [vmem:[#allocation5_spill] sm:$0xff] %v5641_v41  ;;  %v1509_v2 = vrot.slane %v1507_v39, 2 }
  0xc1   : > { %4793 = vmatmul.msk.bf16.gmra.mxu2 %vm541_vm2, %v856_v33 }
  0xc2   : > { %4899 = vmatmul.msk.bf16.gmra.mxu0 %vm541_vm2, %v1502_v34  ;;  %v1510_v50 = vor.u32 %v1509_v2, %v1506_v48  ;;  %v5086_v34 = vld [vmem:[%s5348_s24 + $0x58] sm:$0xff]  ;;  %v1522_v48 = vshrl.u32 %v5085_v57, 16  ;;  %v1525_v2 = vshll.u32 %v5085_v57, 16 }
  0xc4   : > { %v5643_v42 = vpop.f32.mrf.mxu2  ;;  %4882 = vmatmul.msk.bf16.gmra.mxu3 %vm541_vm2, %v1221_v23  ;;  %v1511_v20 = vsel %vm1440_vm4, %v1501_v16, %v1510_v50  ;;  %v1224_v23 = vrot.slane %v5086_v34, 1 }
  0xc5   : > { %v5645_v45 = vpop.f32.mrf.mxu1 }
  0xc6   : > { %v1225_v43 = vsel %vm843_vm3, %v1222_v59, %v1224_v23 }
  0xc7   : > { %v5648_v46 = vpop.f32.mrf.mxu0  ;;  %v5652_v51 = vpop.f32.mrf.mxu3 }
  0xc8   : > { %7307 = vst [vmem:[#allocation6_spill] sm:$0xff] %v5652_v51 }
  0xcc   : > { %v5654_v52 = vpop.f32.mrf.mxu2 }
  0xcd   : > { %v5656_v53 = vpop.f32.mrf.mxu1 }
  0xcf   : > { %v5660_v56 = vpop.f32.mrf.mxu0  ;;  %v5667_v9 = vpop.f32.mrf.mxu3 }
  0xd0   : > { %4775 = vmatmul.msk.bf16.gmra.mxu1 %vm541_vm2, %v5368_v3  ;;  %7308 = vst [vmem:[#allocation7_spill] sm:$0xff] %v5667_v9  ;;  %v1518_v3 = vrot.slane %v1516_v4, 2 }
  0xd1   : > { %4794 = vmatmul.msk.bf16.gmra.mxu2 %vm541_vm2, %v858_v58 }
  0xd2   : > { %4900 = vmatmul.msk.bf16.gmra.mxu0 %vm541_vm2, %v1511_v20  ;;  %v1519_v25 = vor.u32 %v1518_v3, %v1515_v24 }
  0xd4   : > { %v5669_v10 = vpop.f32.mrf.mxu2  ;;  %4883 = vmatmul.msk.bf16.gmra.mxu3 %vm541_vm2, %v1223_v14  ;;  %v1520_v35 = vsel %vm1440_vm4, %v1510_v50, %v1519_v25  ;;  %v1524_v50 = vrot.slane %v1522_v48, 1  ;;  %v1527_v14 = vrot.slane %v1525_v2, 2  ;;  %v1531_v2 = vshrl.u32 %v5086_v34, 16 }
  0xd5   : > { %v5671_v13 = vpop.f32.mrf.mxu1 }
  0xd6   : > { %v1528_v24 = vor.u32 %v1527_v14, %v1524_v50  ;;  %v1533_v60 = vrot.slane %v1531_v2, 1 }
  0xd7   : > { %v5674_v21 = vpop.f32.mrf.mxu0  ;;  %v1308_v16 = vpop.f32.mrf.mxu3 }
  0xd8   : > { %v1529_v51 = vsel %vm1440_vm4, %v1519_v25, %v1528_v24 }
  0xdc   : > { %v5678_v33 = vpop.f32.mrf.mxu2 }
  0xdd   : > { %v5680_v32 = vpop.f32.mrf.mxu1 }
  0xdf   : > { %v5684_v39 = vpop.f32.mrf.mxu0  ;;  %v1310_v58 = vpop.f32.mrf.mxu3 }
  0xe0   : > { %4776 = vmatmul.msk.bf16.gmra.mxu1 %vm541_vm2, %v5420_v38  ;;  %v861_v38 = vrot.slane %v5448_v61, 1 }
  0xe1   : > { %4795 = vmatmul.msk.bf16.gmra.mxu2 %vm541_vm2, %v860_v37 }
  0xe2   : > { %4901 = vmatmul.msk.bf16.gmra.mxu0 %vm541_vm2, %v1520_v35  ;;  %v5087_v35 = vld [vmem:[%s5348_s24 + $0x60] sm:$0xff]  ;;  %v862_v18 = vsel %vm843_vm3, %v859_v29, %v861_v38 }
  0xe3   : > { %v1226_v59 = vrot.slane %v5087_v35, 1 }
  0xe4   : > { %v5691_v20 = vpop.f32.mrf.mxu2  ;;  %4884 = vmatmul.msk.bf16.gmra.mxu3 %vm541_vm2, %v1225_v43  ;;  %v1534_v43 = vshll.u32 %v5086_v34, 16 }
  0xe5   : > { %7309 = vst [vmem:[#allocation8_spill] sm:$0xff] %v5691_v20  ;;  %v5693_v1 = vpop.f32.mrf.mxu1  ;;  %v1227_v26 = vsel %vm843_vm3, %v1224_v23, %v1226_v59  ;;  %v5088_v20 = vld [vmem:[%s5348_s24 + $0x68] sm:$0xff] }
  0xe7   : > { %v5696_v4 = vpop.f32.mrf.mxu0  ;;  %v1313_v3 = vpop.f32.mrf.mxu3 }
  0xec   : > { %v5700_v37 = vpop.f32.mrf.mxu2 }
  0xed   : > { %7310 = vst [vmem:[#allocation9_spill] sm:$0xff] %v5700_v37  ;;  %v747_v57 = vpop.f32.mrf.mxu1 }
  0xee   : > { %v748_v48 = vadd.f32 %v747_v57, %v5584_v49 }
  0xef   : > { %v1677_v9 = vpop.f32.mrf.mxu0  ;;  %v1315_v50 = vpop.f32.mrf.mxu3 }
  0xf0   : > { %4777 = vmatmul.msk.bf16.gmra.mxu1 %vm541_vm2, %v5457_v11  ;;  %v1536_v11 = vrot.slane %v1534_v43, 2 }
  0xf1   : > { %4796 = vmatmul.msk.bf16.gmra.mxu2 %vm541_vm2, %v862_v18 }
  0xf2   : > { %4902 = vmatmul.msk.bf16.gmra.mxu0 %vm541_vm2, %v1529_v51  ;;  %v863_v51 = vrot.slane %v5372_v5, 1  ;;  %v1537_v34 = vor.u32 %v1536_v11, %v1533_v60  ;;  %v1540_v60 = vshrl.u32 %v5087_v35, 16 }
  0xf4   : > { %v947_v14 = vpop.f32.mrf.mxu2  ;;  %4885 = vmatmul.msk.bf16.gmra.mxu3 %vm541_vm2, %v1227_v26  ;;  %v864_v23 = vsel %vm843_vm3, %v861_v38, %v863_v51  ;;  %v1538_v2 = vsel %vm1440_vm4, %v1528_v24, %v1537_v34  ;;  %v1228_v26 = vrot.slane %v5088_v20, 1  ;;  %v1542_v11 = vrot.slane %v1540_v60, 1 }
  0xf5   : > { %v1037_v41 = vadd.f32 %v947_v14, %v748_v48  ;;  %v749_v29 = vpop.f32.mrf.mxu1 }
  0xf6   : > { %v750_v49 = vadd.f32 %v749_v29, %v5596_v31  ;;  %v1229_v24 = vsel %vm843_vm3, %v1226_v59, %v1228_v26 }
  0xf7   : > { %v1398_v25 = vadd.f32 %v1308_v16, %v1037_v41  ;;  %v1679_v17 = vpop.f32.mrf.mxu0  ;;  %v1318_v57 = vpop.f32.mrf.mxu3 }
  0xf9   : > { %v5712_v18 = vadd.f32 %v1677_v9, %v1398_v25 }
  0xfc   : > { %v949_v37 = vpop.f32.mrf.mxu2 }
  0xfd   : > { %v1038_v48 = vadd.f32 %v949_v37, %v750_v49  ;;  %v752_v14 = vpop.f32.mrf.mxu1  ;;  %v1543_v37 = vshll.u32 %v5087_v35, 16 }
  0xfe   : > { %v753_v31 = vadd.f32 %v752_v14, %v5608_v8 }
  0xff   : > { %v1399_v41 = vadd.f32 %v1310_v58, %v1038_v48  ;;  %v1682_v16 = vpop.f32.mrf.mxu0  ;;  %v1320_v43 = vpop.f32.mrf.mxu3  ;;  %v1545_v49 = vrot.slane %v1543_v37, 2  ;;  %v865_v48 = vrot.slane %v5375_v6, 1 }
 0x100   : > { %4778 = vmatmul.msk.bf16.gmra.mxu1 %vm541_vm2, %v5448_v61 }
 0x101   : > { %4797 = vmatmul.msk.bf16.gmra.mxu2 %vm541_vm2, %v864_v23  ;;  %v5722_v9 = vadd.f32 %v1679_v17, %v1399_v41  ;;  %v1546_v35 = vor.u32 %v1545_v49, %v1542_v11  ;;  %v866_v59 = vsel %vm843_vm3, %v863_v51, %v865_v48 }
 0x102   : > { %4903 = vmatmul.msk.bf16.gmra.mxu0 %vm541_vm2, %v1538_v2 }
 0x103   : > { %v1547_v60 = vsel %vm1440_vm4, %v1537_v34, %v1546_v35 }
 0x104   : > { %v952_v38 = vpop.f32.mrf.mxu2  ;;  %4886 = vmatmul.msk.bf16.gmra.mxu3 %vm541_vm2, %v1229_v24 }
 0x105   : > { %v1039_v58 = vadd.f32 %v952_v38, %v753_v31  ;;  %v754_v29 = vpop.f32.mrf.mxu1  ;;  %v5089_v31 = vld [vmem:[%s5348_s24 + $0x70] sm:$0xff] }
 0x106   : > { %v755_v8 = vadd.f32 %v754_v29, %v5622_v22  ;;  %v1552_v29 = vshll.u32 %v5088_v20, 16 }
 0x107   : > { %v1400_v25 = vadd.f32 %v1313_v3, %v1039_v58  ;;  %v1684_v61 = vpop.f32.mrf.mxu0  ;;  %v1323_v14 = vpop.f32.mrf.mxu3  ;;  %v1549_v58 = vshrl.u32 %v5088_v20, 16 }
 0x109   : > { %v5728_v17 = vadd.f32 %v1682_v16, %v1400_v25  ;;  %v1230_v16 = vrot.slane %v5089_v31, 1  ;;  %v1551_v49 = vrot.slane %v1549_v58, 1 }
 0x10b   : > { %v1231_v34 = vsel %vm843_vm3, %v1228_v26, %v1230_v16 }
 0x10c   : > { %v954_v23 = vpop.f32.mrf.mxu2 }
 0x10d   : > { %v1040_v41 = vadd.f32 %v954_v23, %v755_v8  ;;  %v757_v2 = vpop.f32.mrf.mxu1  ;;  %v1554_v8 = vrot.slane %v1552_v29, 2  ;;  %v867_v23 = vrot.slane %v5425_v40, 1 }
 0x10e   : > { %v758_v22 = vadd.f32 %v757_v2, %v5634_v12 }
 0x10f   : > { %v1401_v3 = vadd.f32 %v1315_v50, %v1040_v41  ;;  %v1687_v38 = vpop.f32.mrf.mxu0  ;;  %v1325_v24 = vpop.f32.mrf.mxu3  ;;  %v1555_v20 = vor.u32 %v1554_v8, %v1551_v49  ;;  %v868_v26 = vsel %vm843_vm3, %v865_v48, %v867_v23 }
 0x110   : > { %4779 = vmatmul.msk.bf16.gmra.mxu1 %vm541_vm2, %v5372_v5 }
 0x111   : > { %4798 = vmatmul.msk.bf16.gmra.mxu2 %vm541_vm2, %v866_v59  ;;  %v5738_v37 = vadd.f32 %v1684_v61, %v1401_v3  ;;  %v1556_v58 = vsel %vm1440_vm4, %v1546_v35, %v1555_v20 }
 0x112   : > { %4904 = vmatmul.msk.bf16.gmra.mxu0 %vm541_vm2, %v1547_v60  ;;  %v5090_v60 = vld [vmem:[%s5348_s24 + $0x78] sm:$0xff] }
 0x114   : > { %v957_v51 = vpop.f32.mrf.mxu2  ;;  %4887 = vmatmul.msk.bf16.gmra.mxu3 %vm541_vm2, %v1231_v34 }
 0x115   : > { %v1041_v50 = vadd.f32 %v957_v51, %v758_v22  ;;  %v759_v25 = vpop.f32.mrf.mxu1  ;;  %v1558_v51 = vshrl.u32 %v5089_v31, 16 }
 0x116   : > { %v760_v12 = vadd.f32 %v759_v25, %v5648_v46 }
 0x117   : > { %v1402_v11 = vadd.f32 %v1318_v57, %v1041_v50  ;;  %v1689_v5 = vpop.f32.mrf.mxu0  ;;  %v1328_v41 = vpop.f32.mrf.mxu3  ;;  %v1561_v50 = vshll.u32 %v5089_v31, 16  ;;  %v1560_v49 = vrot.slane %v1558_v51, 1 }
 0x119   : > { %v5744_v61 = vadd.f32 %v1687_v38, %v1402_v11  ;;  %v1232_v38 = vrot.slane %v5090_v60, 1  ;;  %v1563_v8 = vrot.slane %v1561_v50, 2  ;;  %v1567_v50 = vshrl.u32 %v5090_v60, 16 }
 0x11b   : > { %v1233_v35 = vsel %vm843_vm3, %v1230_v16, %v1232_v38  ;;  %v1564_v31 = vor.u32 %v1563_v8, %v1560_v49  ;;  %v871_v8 = vrot.slane %v5495_v55, 1 }
 0x11c   : > { %v959_v2 = vpop.f32.mrf.mxu2 }
 0x11d   : > { %v1042_v59 = vadd.f32 %v959_v2, %v760_v12  ;;  %v762_v3 = vpop.f32.mrf.mxu1  ;;  %v869_v12 = vrot.slane %v5461_v15, 1 }
 0x11e   : > { %v763_v46 = vadd.f32 %v762_v3, %v5660_v56 }
 0x11f   : > { %v1403_v57 = vadd.f32 %v1320_v43, %v1042_v59  ;;  %v1692_v22 = vpop.f32.mrf.mxu0  ;;  %v1330_v25 = vpop.f32.mrf.mxu3  ;;  %v870_v16 = vsel %vm843_vm3, %v867_v23, %v869_v12 }
 0x120   : > { %4780 = vmatmul.msk.bf16.gmra.mxu1 %vm541_vm2, %v5375_v6 }
 0x121   : > { %4799 = vmatmul.msk.bf16.gmra.mxu2 %vm541_vm2, %v868_v26  ;;  %v5754_v29 = vadd.f32 %v1689_v5, %v1403_v57  ;;  %v5091_v57 = vld [vmem:[%s5348_s24 + $0x80] sm:$0xff] }
 0x122   : > { %4905 = vmatmul.msk.bf16.gmra.mxu0 %vm541_vm2, %v1556_v58 }
 0x124   : > { %v962_v48 = vpop.f32.mrf.mxu2  ;;  %4888 = vmatmul.msk.bf16.gmra.mxu3 %vm541_vm2, %v1233_v35 }
 0x125   : > { %v1043_v43 = vadd.f32 %v962_v48, %v763_v46  ;;  %v764_v34 = vpop.f32.mrf.mxu1  ;;  %v1565_v46 = vsel %vm1440_vm4, %v1555_v20, %v1564_v31  ;;  %v1570_v48 = vshll.u32 %v5090_v60, 16 }
 0x126   : > { %v765_v56 = vadd.f32 %v764_v34, %v5674_v21 }
 0x127   : > { %v1404_v11 = vadd.f32 %v1323_v14, %v1043_v43  ;;  %v1694_v6 = vpop.f32.mrf.mxu0  ;;  %v1333_v2 = vpop.f32.mrf.mxu3  ;;  %v1572_v49 = vrot.slane %v1570_v48, 2  ;;  %v1579_v48 = vshll.u32 %v5091_v57, 16 }
 0x129   : > { %v5760_v5 = vadd.f32 %v1692_v22, %v1404_v11  ;;  %v1234_v22 = vrot.slane %v5091_v57, 1  ;;  %v1569_v11 = vrot.slane %v1567_v50, 1  ;;  %v1576_v50 = vshrl.u32 %v5091_v57, 16 }
 0x12b   : > { %v1235_v20 = vsel %vm843_vm3, %v1232_v38, %v1234_v22  ;;  %v1573_v60 = vor.u32 %v1572_v49, %v1569_v11  ;;  %v872_v38 = vsel %vm843_vm3, %v869_v12, %v871_v8  ;;  %v873_v11 = vrot.slane %v5410_v30, 1 }
 0x12c   : > { %v964_v59 = vpop.f32.mrf.mxu2 }
 0x12d   : > { %v1044_v3 = vadd.f32 %v964_v59, %v765_v56  ;;  %v767_v26 = vpop.f32.mrf.mxu1 }
 0x12e   : > { %v768_v21 = vadd.f32 %v767_v26, %v5684_v39 }
 0x12f   : > { %v1405_v14 = vadd.f32 %v1325_v24, %v1044_v3  ;;  %v1697_v58 = vpop.f32.mrf.mxu0  ;;  %v1335_v43 = vpop.f32.mrf.mxu3 }
 0x130   : > { %4781 = vmatmul.msk.bf16.gmra.mxu1 %vm541_vm2, %v5425_v40 }
 0x131   : > { %4800 = vmatmul.msk.bf16.gmra.mxu2 %vm541_vm2, %v870_v16  ;;  %v5770_v51 = vadd.f32 %v1694_v6, %v1405_v14  ;;  %v5092_v16 = vld [vmem:[%s5348_s24 + $0x88] sm:$0xff] }
 0x132   : > { %4906 = vmatmul.msk.bf16.gmra.mxu0 %vm541_vm2, %v1565_v46  ;;  %v1574_v46 = vsel %vm1440_vm4, %v1564_v31, %v1573_v60 }
 0x134   : > { %v967_v23 = vpop.f32.mrf.mxu2  ;;  %4889 = vmatmul.msk.bf16.gmra.mxu3 %vm541_vm2, %v1235_v20  ;;  %v1578_v20 = vrot.slane %v1576_v50, 1 }
 0x135   : > { %v1045_v24 = vadd.f32 %v967_v23, %v768_v21  ;;  %v769_v34 = vpop.f32.mrf.mxu1 }
 0x136   : > { %v770_v39 = vadd.f32 %v769_v34, %v5696_v4 }
 0x137   : > { %v1406_v35 = vadd.f32 %v1328_v41, %v1045_v24  ;;  %v1699_v40 = vpop.f32.mrf.mxu0  ;;  %v1338_v56 = vpop.f32.mrf.mxu3 }
 0x139   : > { %v5776_v6 = vadd.f32 %v1697_v58, %v1406_v35  ;;  %v1236_v58 = vrot.slane %v5092_v16, 1  ;;  %v1581_v35 = vrot.slane %v1579_v48, 2 }
 0x13b   : > { %v1237_v31 = vsel %vm843_vm3, %v1234_v22, %v1236_v58  ;;  %v1582_v57 = vor.u32 %v1581_v35, %v1578_v20 }
 0x13c   : > { %v969_v59 = vpop.f32.mrf.mxu2 }
 0x13d   : > { %v1046_v3 = vadd.f32 %v969_v59, %v770_v39  ;;  %v772_v26 = vpop.f32.mrf.mxu1 }
 0x13e   : > { %v773_v4 = vadd.f32 %v772_v26, %v5580_v47  ;;  %v5093_v26 = vld [vmem:[%s5348_s24 + $0x90] sm:$0xff] }
 0x13f   : > { %v1407_v41 = vadd.f32 %v1330_v25, %v1046_v3  ;;  %v1702_v14 = vpop.f32.mrf.mxu0  ;;  %v1340_v23 = vpop.f32.mrf.mxu3  ;;  %v1238_v30 = vrot.slane %v5093_v26, 1 }
 0x140   : > { %4782 = vmatmul.msk.bf16.gmra.mxu1 %vm541_vm2, %v5461_v15 }
 0x141   : > { %4801 = vmatmul.msk.bf16.gmra.mxu2 %vm541_vm2, %v872_v38  ;;  %v5786_v21 = vadd.f32 %v1699_v40, %v1407_v41  ;;  %v1583_v41 = vsel %vm1440_vm4, %v1573_v60, %v1582_v57  ;;  %v1239_v48 = vsel %vm843_vm3, %v1236_v58, %v1238_v30 }
 0x142   : > { %4907 = vmatmul.msk.bf16.gmra.mxu0 %vm541_vm2, %v1574_v46  ;;  %v1585_v46 = vshrl.u32 %v5092_v16, 16 }
 0x144   : > { %v972_v12 = vpop.f32.mrf.mxu2  ;;  %4890 = vmatmul.msk.bf16.gmra.mxu3 %vm541_vm2, %v1237_v31 }
 0x145   : > { %v1047_v25 = vadd.f32 %v972_v12, %v773_v4  ;;  %v774_v24 = vpop.f32.mrf.mxu1 }
 0x146   : > { %v775_v47 = vadd.f32 %v774_v24, %v5593_v54  ;;  %v1587_v24 = vrot.slane %v1585_v46, 1  ;;  %v5257_v46 = vld [vmem:[%s5348_s24 + $0x78] sm:$0xff] }
 0x147   : > { %v1408_v34 = vadd.f32 %v1333_v2, %v1047_v25  ;;  %v1704_v15 = vpop.f32.mrf.mxu0  ;;  %v5796_v49 = vpop.f32.mrf.mxu3  ;;  %v874_v2 = vsel %vm843_vm3, %v871_v8, %v873_v11  ;;  %v1588_v8 = vshll.u32 %v5092_v16, 16  ;;  %v5256_v16 = vld [vmem:[%s5348_s24 + $0x80] sm:$0xff] }
 0x149   : > { %v5792_v40 = vadd.f32 %v1702_v14, %v1408_v34  ;;  %v1590_v31 = vrot.slane %v1588_v8, 2 }
 0x14b   : > { %v1591_v35 = vor.u32 %v1590_v31, %v1587_v24  ;;  %v5841_v31 = vld [vmem:[%s5348_s24 + $0x18] sm:$0xff] }
 0x14c   : > { %v974_v39 = vpop.f32.mrf.mxu2 }
 0x14d   : > { %v1048_v59 = vadd.f32 %v974_v39, %v775_v47  ;;  %v777_v3 = vpop.f32.mrf.mxu1 }
 0x14e   : > { %v778_v14 = vadd.f32 %v777_v3, %v5604_v0 }
 0x14f   : > { %v1409_v22 = vadd.f32 %v1335_v43, %v1048_v59  ;;  %v1707_v38 = vpop.f32.mrf.mxu0  ;;  %v5808_v43 = vpop.f32.mrf.mxu3 }
 0x150   : > { %4783 = vmatmul.msk.bf16.gmra.mxu1 %vm541_vm2, %v5495_v55  ;;  %v1109_v55 = vld [vmem:[%s5348_s24 + $0x98] sm:$0x1] }
 0x151   : > { %4802 = vmatmul.msk.bf16.gmra.mxu2 %vm541_vm2, %v874_v2  ;;  %v5804_v54 = vadd.f32 %v1704_v15, %v1409_v22  ;;  %v1185_v34 = vunpack.c.l.b16 %v1109_v55  ;;  %v875_v15 = vrot.slane %v5256_v16, 1 }
 0x152   : > { %4908 = vmatmul.msk.bf16.gmra.mxu0 %vm541_vm2, %v1583_v41  ;;  %v1592_v41 = vsel %vm1440_vm4, %v1582_v57, %v1591_v35  ;;  %v1597_v57 = vshll.u32 %v5093_v26, 16 }
 0x153   : > { %v1204_v59 = vpack.c.b16 %v1185_v34, %v1185_v34  ;;  %v876_v3 = vsel %vm843_vm3, %v873_v11, %v875_v15  ;;  %v1594_v11 = vshrl.u32 %v5093_v26, 16  ;;  %v1434_v26 = vld [vmem:[%s5348_s24 + $0x98] sm:$0x3] }
 0x154   : > { %v977_v4 = vpop.f32.mrf.mxu2  ;;  %4891 = vmatmul.msk.bf16.gmra.mxu3 %vm541_vm2, %v1239_v48 }
 0x155   : > { %v1049_v50 = vadd.f32 %v977_v4, %v778_v14  ;;  %v779_v60 = vpop.f32.mrf.mxu1  ;;  %v5823_v14 = vld [vmem:[%s5348_s24 + $0x14] sm:$0xf]  ;;  %v1240_v4 = vrot.slane %v1204_v59, 1  ;;  %v2416_v59 = vshrl.u32 %v5841_v31, 16 }
 0x156   : > { %v780_v20 = vadd.f32 %v779_v60, %v5619_v7  ;;  %v7291_v8 = vunpack.c.l.b16 %v5823_v14 }
 0x157   : > { %v1410_v12 = vadd.f32 %v1338_v56, %v1049_v50  ;;  %v1709_v25 = vpop.f32.mrf.mxu0  ;;  %v5817_v47 = vpop.f32.mrf.mxu3 }
 0x159   : > { %v5813_v0 = vadd.f32 %v1707_v38, %v1410_v12  ;;  %v2039_v38 = vld [vmem:[%s5348_s24 + $0x10] sm:$0xc] }
 0x15a   : > { %v2115_v7 = vunpack.c.l.b16 %v2039_v38 }
 0x15c   : > { %v979_v58 = vpop.f32.mrf.mxu2  ;;  %v5837_v55 = vpack.c.b16 %v7291_v8, %v2115_v7  ;;  %v1438_v7 = vunpack.c.l.b16 %v1434_v26 }
 0x15d   : > { %v1050_v56 = vadd.f32 %v979_v58, %v780_v20  ;;  %v782_v39 = vpop.f32.mrf.mxu1  ;;  %v1599_v58 = vrot.slane %v1597_v57, 2 }
 0x15f   : > { %v1411_v2 = vadd.f32 %v1340_v23, %v1050_v56  ;;  %v1712_v22 = vpop.f32.mrf.mxu0  ;;  %v783_v23 = vadd.f32 %v782_v39, %v5630_v28  ;;  %v5833_v60 = vpop.f32.mrf.mxu3  ;;  %v1596_v28 = vrot.slane %v1594_v11, 1  ;;  %v2408_v56 = vshrl.u32 %v5837_v55, 16 }
 0x160   : > { %4784 = vmatmul.msk.bf16.gmra.mxu1 %vm541_vm2, %v5257_v46  ;;  %v2411_v39 = vshll.u32 %v5837_v55, 16 }
 0x161   : > { %4803 = vmatmul.msk.bf16.gmra.mxu2 %vm541_vm2, %v876_v3  ;;  %v5829_v50 = vadd.f32 %v1709_v25, %v1411_v2  ;;  %v1241_v25 = vsel %vm843_vm3, %v1238_v30, %v1240_v4  ;;  %v2419_v3 = vshll.u32 %v5841_v31, 16  ;;  %v5258_v30 = vld [vmem:[%s5348_s24 + $0x88] sm:$0xff]  ;;  %v1600_v38 = vor.u32 %v1599_v58, %v1596_v28 }
 0x162   : > { %4909 = vmatmul.msk.bf16.gmra.mxu0 %vm541_vm2, %v1592_v41  ;;  %v877_v41 = vrot.slane %v5258_v30, 1 }
 0x163   : > { %7311 = vst [vmem:[#allocation10_spill] sm:$0xff] %v5829_v50  ;;  %v5859_v50 = vpack.c.b16 %v1438_v7, %v1438_v7 }
 0x164   : > { %v982_v48 = vpop.f32.mrf.mxu2  ;;  %4892 = vmatmul.msk.bf16.gmra.mxu3 %vm541_vm2, %v1241_v25  ;;  %v2421_v25 = vrot.slane %v2419_v3, 3  ;;  %v878_v8 = vsel %vm843_vm3, %v875_v15, %v877_v41 }
 0x165   : > { %v1051_v12 = vadd.f32 %v982_v48, %v783_v23  ;;  %v784_v24 = vpop.f32.mrf.mxu1  ;;  %v2410_v23 = vrot.slane %v2408_v56, 2  ;;  %v2413_v48 = vrot.slane %v2411_v39, 3  ;;  %7313 = vst [vmem:[#allocation12_spill] sm:$0xff] %v5859_v50  ;;  %v5873_v39 = vld [vmem:[%s5348_s24 + $0x20] sm:$0xff] }
 0x167   : > { %v1412_v34 = vadd.f32 %v5796_v49, %v1051_v12  ;;  %v1714_v20 = vpop.f32.mrf.mxu0  ;;  %v785_v49 = vadd.f32 %v784_v24, %v5645_v45  ;;  %v5854_v46 = vpop.f32.mrf.mxu3  ;;  %v2418_v12 = vrot.slane %v2416_v59, 2  ;;  %v2414_v45 = vor.u32 %v2413_v48, %v2410_v23 }
 0x169   : > { %v5850_v2 = vadd.f32 %v1712_v22, %v1412_v34  ;;  %v2422_v24 = vor.u32 %v2421_v25, %v2418_v12  ;;  %v1803_v25 = vld [vmem:[%s5348_s24 + $0x8] sm:$0xc] }
 0x16b   : > { %7312 = vst [vmem:[#allocation11_spill] sm:$0xff] %v5850_v2  ;;  %v1601_v2 = vsel %vm1440_vm4, %v1591_v35, %v1600_v38  ;;  %v1606_v35 = vshll.u32 %v5859_v50, 16 }
 0x16c   : > { %v984_v4 = vpop.f32.mrf.mxu2 }
 0x16d   : > { %v1052_v11 = vadd.f32 %v984_v4, %v785_v49  ;;  %v787_v57 = vpop.f32.mrf.mxu1  ;;  %v2428_v49 = vshll.u32 %v5873_v39, 16  ;;  %v879_v4 = vrot.slane %v5483_v36, 1  ;;  %v1807_v36 = vunpack.c.l.b16 %v1803_v25 }
 0x16e   : > { %v788_v15 = vadd.f32 %v787_v57, %v5656_v53  ;;  %v2425_v53 = vshrl.u32 %v5873_v39, 16 }
 0x16f   : > { %v1413_v22 = vadd.f32 %v5808_v43, %v1052_v11  ;;  %v1717_v34 = vpop.f32.mrf.mxu0  ;;  %v1603_v43 = vshrl.u32 %v5859_v50, 16  ;;  %v5869_v58 = vpop.f32.mrf.mxu3 }
 0x170   : > { %4785 = vmatmul.msk.bf16.gmra.mxu1 %vm541_vm2, %v5256_v16 }
 0x171   : > { %4804 = vmatmul.msk.bf16.gmra.mxu2 %vm541_vm2, %v878_v8  ;;  %v5863_v28 = vadd.f32 %v1714_v20, %v1413_v22  ;;  %v2423_v8 = vsel %vm2406_vm5, %v2414_v45, %v2422_v24  ;;  %v1605_v3 = vrot.slane %v1603_v43, 1  ;;  %v2427_v22 = vrot.slane %v2425_v53, 2  ;;  %v5902_v53 = vld [vmem:[%s5348_s24 + $0x28] sm:$0xff] }
 0x172   : > { %4910 = vmatmul.msk.bf16.gmra.mxu0 %vm541_vm2, %v1601_v2  ;;  %v1608_v2 = vrot.slane %v1606_v35, 2  ;;  %v2430_v45 = vrot.slane %v2428_v49, 3 }
 0x174   : > { %v987_v26 = vpop.f32.mrf.mxu2  ;;  %5019 = vmatmul.msk.bf16.vlgmr.msra.gmra.mxu3 %vm541_vm2, %v2423_v8  ;;  %v1609_v11 = vor.u32 %v1608_v2, %v1605_v3 }
 0x175   : > { %v1053_v56 = vadd.f32 %v987_v26, %v788_v15  ;;  %v789_v16 = vpop.f32.mrf.mxu1  ;;  %v880_v15 = vsel %vm843_vm3, %v877_v41, %v879_v4  ;;  %v2431_v26 = vor.u32 %v2430_v45, %v2427_v22  ;;  %v7316_v4 = vunpack.c.l.b16 %v5823_v14 }
 0x176   : > { %v790_v23 = vadd.f32 %v789_v16, %v5671_v13  ;;  %v1610_v35 = vsel %vm1440_vm4, %v1600_v38, %v1609_v11  ;;  %v2769_v13 = vld [vmem:[%s5348_s24 + $0x10] sm:$0x8]  ;;  %v7315_v38 = vunpack.c.l.b16 %v5505_v63  ;;  %v2434_v63 = vshrl.u32 %v5902_v53, 16 }
 0x177   : > { %v1414_v20 = vadd.f32 %v5817_v47, %v1053_v56  ;;  %v1719_v59 = vpop.f32.mrf.mxu0  ;;  %v5883_v57 = vpop.f32.mrf.mxu3  ;;  %v2773_v16 = vunpack.c.l.b16 %v2769_v13  ;;  %v2432_v2 = vsel %vm2406_vm5, %v2422_v24, %v2431_v26  ;;  %v5259_v11 = vld [vmem:[%s5348_s24 + $0x10] sm:$0xff]  ;;  %v2171_v24 = vrot.slane %v5837_v55, 2 }
 0x178   : > { %v2777_v22 = vrot.slane %v5841_v31, 3  ;;  %v2436_v13 = vrot.slane %v2434_v63, 2 }
 0x179   : > { %v5879_v7 = vadd.f32 %v1717_v34, %v1414_v20  ;;  %v1808_v20 = vpack.c.b16 %v7315_v38, %v1807_v36 }
 0x17c   : > { %v989_v47 = vpop.f32.mrf.mxu2 }
 0x17d   : > { %v1054_v48 = vadd.f32 %v989_v47, %v790_v23  ;;  %v792_v12 = vpop.f32.mrf.mxu1  ;;  %v2774_v23 = vpack.c.b16 %v7316_v4, %v2773_v16  ;;  %v1811_v47 = vrot.slane %v5259_v11, 2 }
 0x17e   : > { %v793_v41 = vadd.f32 %v792_v12, %v5680_v32  ;;  %v1810_v32 = vrot.slane %v1808_v20, 2 }
 0x17f   : > { %v1415_v43 = vadd.f32 %v5833_v60, %v1054_v48  ;;  %v1722_v34 = vpop.f32.mrf.mxu0  ;;  %v5896_v60 = vpop.f32.mrf.mxu3  ;;  %v2437_v48 = vshll.u32 %v5902_v53, 16  ;;  %v2776_v14 = vrot.slane %v2774_v23, 3 }
 0x180   : > { %4786 = vmatmul.msk.bf16.gmra.mxu1 %vm541_vm2, %v5258_v30  ;;  %v1812_v36 = vsel %vm1809_vm6, %v1810_v32, %v1811_v47  ;;  %v5260_v32 = vld [vmem:[%s5348_s24 + $0x18] sm:$0xff] }
 0x181   : > { %4805 = vmatmul.msk.bf16.gmra.mxu2 %vm541_vm2, %v880_v15  ;;  %v5892_v56 = vadd.f32 %v1719_v59, %v1415_v43 }
 0x182   : > { %4911 = vmatmul.msk.bf16.gmra.mxu0 %vm541_vm2, %v1610_v35 }
 0x183   : > { %7314 = vst [vmem:[#allocation13_spill] sm:$0xff] %v5892_v56 }
 0x184   : > { %v992_v8 = vpop.f32.mrf.mxu2  ;;  %5020 = vmatmul.msk.bf16.gmra.mxu3 %vm541_vm2, %v2432_v2 }
 0x185   : > { %v1055_v30 = vadd.f32 %v992_v8, %v793_v41  ;;  %v794_v3 = vpop.f32.mrf.mxu1 }
 0x186   : > { %v795_v25 = vadd.f32 %v794_v3, %v5693_v1  ;;  %v2778_v1 = vsel %vm2775_vm7, %v2776_v14, %v2777_v22 }
 0x187   : > { %v1416_v59 = vadd.f32 %v5854_v46, %v1055_v30  ;;  %v1724_v49 = vpop.f32.mrf.mxu0  ;;  %v2172_v46 = vrot.slane %v5841_v31, 2  ;;  %v1363_v45 = vpop.f32.mrf.mxu3 }
 0x189   : > { %v5911_v12 = vadd.f32 %v1722_v34, %v1416_v59  ;;  %v2439_v34 = vrot.slane %v2437_v48, 3  ;;  %v2173_v41 = vsel %vm1809_vm6, %v2171_v24, %v2172_v46  ;;  %v5929_v59 = vld [vmem:[%s5348_s24 + $0x30] sm:$0xff]  ;;  %v2174_v48 = vrot.slane %v5873_v39, 2 }
 0x18a   : > { %v2443_v11 = vshrl.u32 %v5929_v59, 16  ;;  %v2446_v63 = vshll.u32 %v5929_v59, 16 }
 0x18b   : > { %7317 = vst [vmem:[#allocation14_spill] sm:$0xff] %v5911_v12  ;;  %v2440_v31 = vor.u32 %v2439_v34, %v2436_v13  ;;  %v2175_v13 = vsel %vm1809_vm6, %v2172_v46, %v2174_v48 }
 0x18c   : > { %v994_v15 = vpop.f32.mrf.mxu2 }
 0x18d   : > { %v1056_v43 = vadd.f32 %v994_v15, %v795_v25  ;;  %v797_v35 = vpop.f32.mrf.mxu1 }
 0x18e   : > { %v798_v38 = vadd.f32 %v797_v35, %v5591_v44  ;;  %v2445_v35 = vrot.slane %v2443_v11, 2 }
 0x18f   : > { %v1417_v55 = vadd.f32 %v5869_v58, %v1056_v43  ;;  %v1727_v16 = vpop.f32.mrf.mxu0  ;;  %v1365_v20 = vpop.f32.mrf.mxu3  ;;  %v2441_v58 = vsel %vm2406_vm5, %v2431_v26, %v2440_v31  ;;  %v2779_v26 = vrot.slane %v5873_v39, 3 }
 0x190   : > { %4913 = vmatmul.msk.bf16.vlgmr.msra.gmra.mxu1 %vm541_vm2, %v1812_v36  ;;  %v2448_v36 = vrot.slane %v2446_v63, 3 }
 0x191   : > { %5000 = vmatmul.msk.bf16.vlgmr.msra.gmra.mxu2 %vm541_vm2, %v2173_v41  ;;  %v5923_v8 = vadd.f32 %v1724_v49, %v1417_v55  ;;  %v1813_v49 = vrot.slane %v5260_v32, 2  ;;  %v2780_v55 = vsel %vm2775_vm7, %v2777_v22, %v2779_v26 }
 0x192   : > { %5038 = vmatmul.msk.bf16.vlgmr.msra.gmra.mxu0 %vm541_vm2, %v2778_v1 }
 0x193   : > { %7318 = vst [vmem:[#allocation15_spill] sm:$0xff] %v5923_v8  ;;  %v1814_v43 = vsel %vm1809_vm6, %v1811_v47, %v1813_v49 }
 0x194   : > { %v997_v30 = vpop.f32.mrf.mxu2  ;;  %5021 = vmatmul.msk.bf16.gmra.mxu3 %vm541_vm2, %v2441_v58 }
 0x195   : > { %v1057_v3 = vadd.f32 %v997_v30, %v798_v38  ;;  %v799_v2 = vpop.f32.mrf.mxu1  ;;  %v5953_v30 = vld [vmem:[%s5348_s24 + $0x38] sm:$0xff] }
 0x196   : > { %v800_v24 = vadd.f32 %v799_v2, %v5602_v62  ;;  %v2449_v62 = vor.u32 %v2448_v36, %v2445_v35  ;;  %v5261_v2 = vld [vmem:[%s5348_s24 + $0x20] sm:$0xff] }
 0x197   : > { %v1418_v4 = vadd.f32 %v5883_v57, %v1057_v3  ;;  %v1729_v23 = vpop.f32.mrf.mxu0  ;;  %v1368_v25 = vpop.f32.mrf.mxu3  ;;  %v1815_v58 = vrot.slane %v5261_v2, 2 }
 0x199   : > { %v5936_v44 = vadd.f32 %v1727_v16, %v1418_v4  ;;  %v2452_v4 = vshrl.u32 %v5953_v30, 16 }
 0x19b   : > { %7319 = vst [vmem:[#allocation16_spill] sm:$0xff] %v5936_v44 }
 0x19c   : > { %v999_v14 = vpop.f32.mrf.mxu2 }
 0x19d   : > { %v1058_v57 = vadd.f32 %v999_v14, %v800_v24  ;;  %v802_v15 = vpop.f32.mrf.mxu1 }
 0x19e   : > { %v803_v47 = vadd.f32 %v802_v15, %v5617_v19  ;;  %v2176_v19 = vrot.slane %v5902_v53, 2  ;;  %v2454_v15 = vrot.slane %v2452_v4, 2 }
 0x19f   : > { %v1419_v34 = vadd.f32 %v5896_v60, %v1058_v57  ;;  %v1732_v41 = vpop.f32.mrf.mxu0  ;;  %v1370_v16 = vpop.f32.mrf.mxu3  ;;  %v2450_v60 = vsel %vm2406_vm5, %v2440_v31, %v2449_v62  ;;  %v2781_v31 = vrot.slane %v5902_v53, 3  ;;  %v1816_v57 = vsel %vm1809_vm6, %v1813_v49, %v1815_v58 }
 0x1a0   : > { %4914 = vmatmul.msk.bf16.gmra.mxu1 %vm541_vm2, %v1814_v43  ;;  %v2177_v35 = vsel %vm1809_vm6, %v2174_v48, %v2176_v19 }
 0x1a1   : > { %5001 = vmatmul.msk.bf16.gmra.mxu2 %vm541_vm2, %v2175_v13  ;;  %v5947_v39 = vadd.f32 %v1729_v23, %v1419_v34  ;;  %v2455_v23 = vshll.u32 %v5953_v30, 16  ;;  %v2782_v34 = vsel %vm2775_vm7, %v2779_v26, %v2781_v31 }
 0x1a2   : > { %5039 = vmatmul.msk.bf16.gmra.mxu0 %vm541_vm2, %v2780_v55 }
 0x1a3   : > { %7320 = vst [vmem:[#allocation17_spill] sm:$0xff] %v5947_v39  ;;  %v2457_v43 = vrot.slane %v2455_v23, 3 }
 0x1a4   : > { %v1002_v1 = vpop.f32.mrf.mxu2  ;;  %5022 = vmatmul.msk.bf16.gmra.mxu3 %vm541_vm2, %v2450_v60 }
 0x1a5   : > { %v1059_v46 = vadd.f32 %v1002_v1, %v803_v47  ;;  %v804_v38 = vpop.f32.mrf.mxu1  ;;  %v5975_v1 = vld [vmem:[%s5348_s24 + $0x40] sm:$0xff] }
 0x1a6   : > { %v805_v11 = vadd.f32 %v804_v38, %v5628_v27  ;;  %v2458_v27 = vor.u32 %v2457_v43, %v2454_v15  ;;  %v5262_v38 = vld [vmem:[%s5348_s24 + $0x28] sm:$0xff] }
 0x1a7   : > { %v1420_v22 = vadd.f32 %v1363_v45, %v1059_v46  ;;  %v1734_v3 = vpop.f32.mrf.mxu0  ;;  %v1373_v63 = vpop.f32.mrf.mxu3  ;;  %v1817_v60 = vrot.slane %v5262_v38, 2 }
 0x1a9   : > { %v5959_v32 = vadd.f32 %v1732_v41, %v1420_v22  ;;  %v2461_v22 = vshrl.u32 %v5975_v1, 16 }
 0x1ab   : > { %7321 = vst [vmem:[#allocation18_spill] sm:$0xff] %v5959_v32 }
 0x1ac   : > { %v1004_v24 = vpop.f32.mrf.mxu2 }
 0x1ad   : > { %v1060_v45 = vadd.f32 %v1004_v24, %v805_v11  ;;  %v807_v14 = vpop.f32.mrf.mxu1 }
 0x1ae   : > { %v808_v49 = vadd.f32 %v807_v14, %v5643_v42  ;;  %v2178_v42 = vrot.slane %v5929_v59, 2  ;;  %v2463_v14 = vrot.slane %v2461_v22, 2 }
 0x1af   : > { %v1421_v36 = vadd.f32 %v1365_v20, %v1060_v45  ;;  %v1737_v13 = vpop.f32.mrf.mxu0  ;;  %v1375_v41 = vpop.f32.mrf.mxu3  ;;  %v2459_v20 = vsel %vm2406_vm5, %v2449_v62, %v2458_v27  ;;  %v2783_v62 = vrot.slane %v5929_v59, 3  ;;  %v1818_v45 = vsel %vm1809_vm6, %v1815_v58, %v1817_v60 }
 0x1b0   : > { %4915 = vmatmul.msk.bf16.gmra.mxu1 %vm541_vm2, %v1816_v57  ;;  %v2179_v15 = vsel %vm1809_vm6, %v2176_v19, %v2178_v42 }
 0x1b1   : > { %5002 = vmatmul.msk.bf16.gmra.mxu2 %vm541_vm2, %v2177_v35  ;;  %v5969_v53 = vadd.f32 %v1734_v3, %v1421_v36  ;;  %v2464_v3 = vshll.u32 %v5975_v1, 16  ;;  %v2784_v36 = vsel %vm2775_vm7, %v2781_v31, %v2783_v62 }
 0x1b2   : > { %5040 = vmatmul.msk.bf16.gmra.mxu0 %vm541_vm2, %v2782_v34 }
 0x1b3   : > { %7322 = vst [vmem:[#allocation19_spill] sm:$0xff] %v5969_v53  ;;  %v2466_v57 = vrot.slane %v2464_v3, 3 }
 0x1b4   : > { %v1007_v55 = vpop.f32.mrf.mxu2  ;;  %5023 = vmatmul.msk.bf16.gmra.mxu3 %vm541_vm2, %v2459_v20 }
 0x1b5   : > { %v1061_v47 = vadd.f32 %v1007_v55, %v808_v49  ;;  %v809_v48 = vpop.f32.mrf.mxu1  ;;  %v5997_v55 = vld [vmem:[%s5348_s24 + $0x48] sm:$0xff] }
 0x1b6   : > { %v810_v4 = vadd.f32 %v809_v48, %v5654_v52  ;;  %v2467_v52 = vor.u32 %v2466_v57, %v2463_v14  ;;  %v5263_v48 = vld [vmem:[%s5348_s24 + $0x30] sm:$0xff]  ;;  %v7346_v53 = vrot.slane %v5997_v55, 3 }
 0x1b7   : > { %v1422_v26 = vadd.f32 %v1368_v25, %v1061_v47  ;;  %v1739_v46 = vpop.f32.mrf.mxu0  ;;  %v1378_v23 = vpop.f32.mrf.mxu3  ;;  %v1819_v20 = vrot.slane %v5263_v48, 2 }
 0x1b9   : > { %v5981_v2 = vadd.f32 %v1737_v13, %v1422_v26  ;;  %v2470_v26 = vshrl.u32 %v5997_v55, 16 }
 0x1bb   : > { %7323 = vst [vmem:[#allocation20_spill] sm:$0xff] %v5981_v2  ;;  %v7337_v2 = vrot.slane %v5997_v55, 3 }
 0x1bc   : > { %v1009_v11 = vpop.f32.mrf.mxu2 }
 0x1bd   : > { %v1062_v25 = vadd.f32 %v1009_v11, %v810_v4  ;;  %v812_v24 = vpop.f32.mrf.mxu1 }
 0x1be   : > { %v813_v58 = vadd.f32 %v812_v24, %v5669_v10  ;;  %v2180_v10 = vrot.slane %v5953_v30, 2  ;;  %v2472_v24 = vrot.slane %v2470_v26, 2  ;;  %v7293_v26 = vrot.slane %v5975_v1, 2 }
 0x1bf   : > { %v1423_v43 = vadd.f32 %v1370_v16, %v1062_v25  ;;  %v1742_v35 = vpop.f32.mrf.mxu0  ;;  %v1380_v13 = vpop.f32.mrf.mxu3  ;;  %v2468_v16 = vsel %vm2406_vm5, %v2458_v27, %v2467_v52  ;;  %v2785_v27 = vrot.slane %v5953_v30, 3  ;;  %v1820_v25 = vsel %vm1809_vm6, %v1817_v60, %v1819_v20 }
 0x1c0   : > { %4916 = vmatmul.msk.bf16.gmra.mxu1 %vm541_vm2, %v1818_v45  ;;  %v2181_v14 = vsel %vm1809_vm6, %v2178_v42, %v2180_v10  ;;  %v6022_v42 = vld [vmem:[%s5348_s24 + $0x50] sm:$0xff] }
 0x1c1   : > { %5003 = vmatmul.msk.bf16.gmra.mxu2 %vm541_vm2, %v2179_v15  ;;  %v5991_v59 = vadd.f32 %v1739_v46, %v1423_v43  ;;  %v2473_v46 = vshll.u32 %v5997_v55, 16  ;;  %v2786_v43 = vsel %vm2775_vm7, %v2783_v62, %v2785_v27 }
 0x1c2   : > { %5041 = vmatmul.msk.bf16.gmra.mxu0 %vm541_vm2, %v2784_v36 }
 0x1c3   : > { %7324 = vst [vmem:[#allocation21_spill] sm:$0xff] %v5991_v59  ;;  %v2475_v45 = vrot.slane %v2473_v46, 3  ;;  %v7328_v46 = vld [vmem:[#allocation9_spill] sm:$0xff] }
 0x1c4   : > { %v1012_v34 = vpop.f32.mrf.mxu2  ;;  %5024 = vmatmul.msk.bf16.gmra.mxu3 %vm541_vm2, %v2468_v16  ;;  %v2479_v16 = vshrl.u32 %v6022_v42, 16 }
 0x1c5   : > { %v1063_v49 = vadd.f32 %v1012_v34, %v813_v58  ;;  %v814_v19 = vpop.f32.mrf.mxu1 }
 0x1c6   : > { %v815_v22 = vadd.f32 %v814_v19, %v5678_v33  ;;  %v2476_v33 = vor.u32 %v2475_v45, %v2472_v24 }
 0x1c7   : > { %v1424_v31 = vadd.f32 %v1373_v63, %v1063_v49  ;;  %v1744_v47 = vpop.f32.mrf.mxu0  ;;  %v6008_v3 = vpop.f32.mrf.mxu3 }
 0x1c8   : > { %v2477_v62 = vsel %vm2406_vm5, %v2467_v52, %v2476_v33 }
 0x1c9   : > { %v6003_v38 = vadd.f32 %v1742_v35, %v1424_v31  ;;  %v7327_v35 = vld [vmem:[#allocation8_spill] sm:$0xff]  ;;  %v2482_v31 = vshll.u32 %v6022_v42, 16 }
 0x1cb   : > { %7325 = vst [vmem:[#allocation22_spill] sm:$0xff] %v6003_v38  ;;  %v7336_v38 = vrot.slane %v5975_v1, 2 }
 0x1cc   : > { %v1014_v63 = vpop.f32.mrf.mxu2 }
 0x1cd   : > { %v1064_v4 = vadd.f32 %v1014_v63, %v815_v22  ;;  %v817_v11 = vpop.f32.mrf.mxu1  ;;  %v7292_v63 = vrot.slane %v5975_v1, 3 }
 0x1ce   : > { %v818_v60 = vadd.f32 %v817_v11, %v7327_v35  ;;  %v2481_v11 = vrot.slane %v2479_v16, 2 }
 0x1cf   : > { %v1425_v57 = vadd.f32 %v1375_v41, %v1064_v4  ;;  %v1747_v15 = vpop.f32.mrf.mxu0  ;;  %v6019_v36 = vpop.f32.mrf.mxu3 }
 0x1d0   : > { %4917 = vmatmul.msk.bf16.gmra.mxu1 %vm541_vm2, %v1820_v25  ;;  %v2484_v25 = vrot.slane %v2482_v31, 3 }
 0x1d1   : > { %5004 = vmatmul.msk.bf16.gmra.mxu2 %vm541_vm2, %v2181_v14  ;;  %v6015_v30 = vadd.f32 %v1744_v47, %v1425_v57  ;;  %v6029_v47 = vld [vmem:[%s5348_s24 + $0x38] sm:$0xff]  ;;  %v3077_v57 = vlaneseq }
 0x1d2   : > { %5042 = vmatmul.msk.bf16.gmra.mxu0 %vm541_vm2, %v2786_v43  ;;  %v7294_v48 = vrot.slane %v6029_v47, 2  ;;  %v2183_v43 = vsel %vm1809_vm6, %v2180_v10, %v7293_v26  ;;  %v7330_v10 = vld [vmem:[#allocation2_spill] sm:$0xff]  ;;  %v7295_v26 = vmov 0  }
 0x1d3   : > { %7326 = vst [vmem:[#allocation23_spill] sm:$0xff] %v6015_v30 }
 0x1d4   : > { %v1017_v58 = vpop.f32.mrf.mxu2  ;;  %5025 = vmatmul.msk.bf16.gmra.mxu3 %vm541_vm2, %v2477_v62  ;;  %v1822_v14 = vsel %vm1809_vm6, %v1819_v20, %v7294_v48 }
 0x1d5   : > { %v1065_v41 = vadd.f32 %v1017_v58, %v818_v60  ;;  %v819_v34 = vpop.f32.mrf.mxu1  ;;  %v6050_v58 = vshrl.u32 %v3077_v57, 7  ;;  %v6072_v57 = vld [vmem:[%s5348_s24 + $0x40] sm:$0xff] }
 0x1d6   : > { %v820_v22 = vadd.f32 %v819_v34, %v7328_v46 }
 0x1d7   : > { %v1426_v49 = vadd.f32 %v1378_v23, %v1065_v41  ;;  %v1749_v19 = vpop.f32.mrf.mxu0  ;;  %v6035_v4 = vpop.f32.mrf.mxu3  ;;  %v6053_v41 = vor.u32 %v2484_v25, %v2481_v11  ;;  %v3117_v20 = vand.u32 65535, %v6050_v58 }
 0x1d9   : > { %v6037_v23 = vadd.f32 %v1747_v15, %v1426_v49  ;;  %v2788_v15 = vsel %vm2775_vm7, %v2785_v27, %v7292_v63  ;;  %v3118_v27 = vshrl.u32 %v6050_v58, 16  ;;  %v3121_v49 = vmul.u32 58254, %v3117_v20 }
 0x1da   : > { %v2486_v46 = vsel %vm2406_vm5, %v2476_v33, %v6053_v41 }
 0x1db   : > { %7329 = vst [vmem:[#allocation8_spill] sm:$0xff] %v6037_v23  ;;  %v7334_v23 = vrot.slane %v6029_v47, 2  ;;  %v7338_v47 = vrot.slane %v5975_v1, 3 }
 0x1dc   : > { %v1019_v52 = vpop.f32.mrf.mxu2 }
 0x1dd   : > { %v1066_v24 = vadd.f32 %v1019_v52, %v820_v22  ;;  %v822_v45 = vpop.f32.mrf.mxu1 }
 0x1de   : > { %v823_v34 = vadd.f32 %v822_v45, %v7330_v10  ;;  %v3124_v45 = vshll.u32 %v3121_v49, 16  ;;  %v3123_v10 = vmul.u32 58254, %v3118_v27 }
 0x1df   : > { %v1427_v35 = vadd.f32 %v1380_v13, %v1066_v24  ;;  %v6045_v60 = vpop.f32.mrf.mxu0  ;;  %v6059_v13 = vld [vmem:[%s5348_s24 + $0x58] sm:$0xff]  ;;  %v6062_v62 = vpop.f32.mrf.mxu3  ;;  %v3120_v24 = vmul.u32 14564, %v3117_v20  ;;  %v6080_v20 = vadd.s32 8, %v6050_v58 }
 0x1e0   : > { %4918 = vmatmul.msk.bf16.gmra.mxu1 %vm541_vm2, %v1822_v14  ;;  %v2488_v22 = vshrl.u32 %v6059_v13, 16  ;;  %v2491_v52 = vshll.u32 %v6059_v13, 16  ;;  %v3122_v14 = vmul.u32 14564, %v3118_v27  ;;  %v7356_v44 = vrot.slane %v6059_v13, 3 }
 0x1e1   : > { %5005 = vmatmul.msk.bf16.gmra.mxu2 %vm541_vm2, %v2183_v43  ;;  %v6065_v16 = vadd.f32 %v1749_v19, %v1427_v35  ;;  %vm3128_vm8 = vc.u32 %v3120_v24, %v3124_v45  ;;  %v3146_v27 = vand.u32 65535, %v6080_v20 }
 0x1e2   : > { %5043 = vmatmul.msk.bf16.gmra.mxu0 %vm541_vm2, %v2788_v15  ;;  %v2490_v15 = vrot.slane %v2488_v22, 2  ;;  %v3126_v33 = vshll.u32 %v3122_v14, 16  ;;  %v2493_v63 = vrot.slane %v2491_v52, 3  ;;  %v3129_v48 = vsel %vm3128_vm8, 1, %v7295_v26 }
 0x1e3   : > { %7331 = vst [vmem:[#allocation9_spill] sm:$0xff] %v6065_v16  ;;  %v3127_v22 = vshrl.u32 %v3122_v14, 16  ;;  %v3149_v30 = vmul.u32 14564, %v3146_v27 }
 0x1e4   : > { %v1022_v31 = vpop.f32.mrf.mxu2  ;;  %5026 = vmatmul.msk.bf16.gmra.mxu3 %vm541_vm2, %v2486_v46  ;;  %v3125_v46 = vshrl.u32 %v3121_v49, 16 }
 0x1e5   : > { %v1067_v11 = vadd.f32 %v1022_v31, %v823_v34  ;;  %v824_v25 = vpop.f32.mrf.mxu1  ;;  %v3130_v34 = vadd.s32 %v3124_v45, %v3120_v24  ;;  %v3147_v24 = vshrl.u32 %v6080_v20, 16  ;;  %v7333_v31 = vrot.slane %v6072_v57, 2 }
 0x1e7   : > { %v1428_v19 = vadd.f32 %v6008_v3, %v1067_v11  ;;  %v6076_v35 = vpop.f32.mrf.mxu0  ;;  %v3131_v3 = vadd.s32 %v3129_v48, %v3123_v10  ;;  %vm3132_vm9 = vc.u32 %v3130_v34, %v3126_v33  ;;  %v7332_v11 = vld [vmem:[#allocation3_spill] sm:$0xff]  ;;  %v6087_v16 = vpop.f32.mrf.mxu3  ;;  %v1824_v48 = vsel %vm1809_vm6, %v7334_v23, %v7333_v31 }
 0x1e8   : > { %v825_v43 = vadd.f32 %v824_v25, %v7332_v11  ;;  %v3133_v52 = vsel %vm3132_vm9, 1, %v7295_v26  ;;  %v6096_v10 = vor.u32 %v2493_v63, %v2490_v15  ;;  %v3150_v34 = vmul.u32 58254, %v3146_v27  ;;  %v5266_v23 = vld [vmem:[%s5348_s24 + $0x48] sm:$0xff] }
 0x1e9   : > { %v3135_v33 = vadd.s32 %v3133_v52, %v3131_v3  ;;  %v3151_v49 = vmul.u32 14564, %v3147_v24  ;;  %v7335_v26 = vrot.slane %v5997_v55, 2  ;;  %v2790_v63 = vsel %vm2775_vm7, %v7338_v47, %v7337_v2 }
 0x1ea   : > { %v1825_v15 = vrot.slane %v5266_v23, 2  ;;  %v3152_v3 = vmul.u32 58254, %v3147_v24  ;;  %v3153_v27 = vshll.u32 %v3150_v34, 16  ;;  %v2495_v2 = vsel %vm2406_vm5, %v6053_v41, %v6096_v10 }
 0x1eb   : > { %v2185_v59 = vsel %vm1809_vm6, %v7336_v38, %v7335_v26  ;;  %v3136_v31 = vadd.s32 %v3135_v33, %v3125_v46  ;;  %v3155_v52 = vshll.u32 %v3151_v49, 16  ;;  %v6120_v46 = vadd.s32 16, %v6050_v58  ;;  %v6128_v33 = vld [vmem:[%s5348_s24 + $0x50] sm:$0xff] }
 0x1ec   : > { %v1024_v45 = vpop.f32.mrf.mxu2  ;;  %vm3157_vm10 = vc.u32 %v3149_v30, %v3153_v27  ;;  %v6123_v24 = vadd.f32 %v6045_v60, %v1428_v19  ;;  %v3154_v23 = vshrl.u32 %v3150_v34, 16  ;;  %v3156_v1 = vshrl.u32 %v3151_v49, 16 }
 0x1ed   : > { %v1068_v25 = vadd.f32 %v1024_v45, %v825_v43  ;;  %v827_v11 = vpop.f32.mrf.mxu1  ;;  %v3137_v26 = vadd.s32 %v3136_v31, %v3127_v22  ;;  %v7340_v45 = vld [vmem:[#allocation4_spill] sm:$0xff]  ;;  %v6132_v22 = vld [vmem:[%s5348_s24 + $0x60] sm:$0xff]  ;;  %v3175_v60 = vand.u32 65535, %v6120_v46  ;;  %v7342_v34 = vrot.slane %v6072_v57, 2 }
 0x1ee   : > { %7339 = vst [vmem:[#allocation2_spill] sm:$0xff] %v6123_v24  ;;  %v3176_v24 = vshrl.u32 %v6120_v46, 16  ;;  %v7364_v8 = vrot.slane %v6132_v22, 3 }
 0x1ef   : > { %v1429_v43 = vadd.f32 %v6019_v36, %v1068_v25  ;;  %v6110_v14 = vpop.f32.mrf.mxu0  ;;  %v3159_v36 = vadd.s32 %v3153_v27, %v3149_v30  ;;  %v3138_v41 = vshrl.u32 %v3137_v26, 4  ;;  %v6135_v30 = vpop.f32.mrf.mxu3  ;;  %v2500_v27 = vshll.u32 %v6132_v22, 16 }
 0x1f0   : > { %4919 = vmatmul.msk.bf16.gmra.mxu1 %vm541_vm2, %v1824_v48  ;;  %v828_v48 = vadd.f32 %v827_v11, %v7340_v45 }
 0x1f1   : > { %5006 = vmatmul.msk.bf16.gmra.mxu2 %vm541_vm2, %v2185_v59  ;;  %v7341_v59 = vmov 0   ;;  %vm3161_vm11 = vc.u32 %v3159_v36, %v3155_v52  ;;  %v3139_v11 = vmul.u32 18, %v3138_v41  ;;  %v7343_v52 = vrot.slane %v6022_v42, 2 }
 0x1f2   : > { %5044 = vmatmul.msk.bf16.gmra.mxu0 %vm541_vm2, %v2790_v63  ;;  %v3158_v47 = vsel %vm3157_vm10, 1, %v7341_v59  ;;  %v2497_v63 = vshrl.u32 %v6132_v22, 16  ;;  %v3162_v45 = vsel %vm3161_vm11, 1, %v7341_v59  ;;  %v7344_v36 = vrot.slane %v5997_v55, 2 }
 0x1f3   : > { %v3160_v31 = vadd.s32 %v3158_v47, %v3152_v3  ;;  %v1826_v3 = vsel %vm1809_vm6, %v7342_v34, %v1825_v15  ;;  %v7345_v47 = vrot.slane %v6022_v42, 3  ;;  %v6156_v49 = vsub.s32 %v6050_v58, %v3139_v11 }
 0x1f4   : > { %v1027_v19 = vpop.f32.mrf.mxu2  ;;  %v2187_v41 = vsel %vm1809_vm6, %v7344_v36, %v7343_v52  ;;  %v3179_v34 = vmul.u32 58254, %v3175_v60  ;;  %5027 = vmatmul.msk.bf16.gmra.mxu3 %vm541_vm2, %v2495_v2  ;;  %v7348_v52 = vrot.slane %v6128_v33, 2  ;;  %v2502_v36 = vrot.slane %v2500_v27, 3 }
 0x1f5   : > { %v1069_v26 = vadd.f32 %v1027_v19, %v828_v48  ;;  %v829_v25 = vpop.f32.mrf.mxu1  ;;  %v3164_v38 = vadd.s32 %v3162_v45, %v3160_v31  ;;  %v2792_v48 = vsel %vm2775_vm7, %v7346_v53, %v7345_v47  ;;  %v2188_v19 = vrot.slane %v6059_v13, 2 }
 0x1f6   : > { %v6168_v55 = vsel %vm1809_vm6, %v1825_v15, %v7348_v52  ;;  %v2499_v53 = vrot.slane %v2497_v63, 2  ;;  %v3178_v11 = vmul.u32 14564, %v3175_v60  ;;  %vm4158_vm12 = vcmp.ne.s32.totalorder %v6156_v49, 0 }
 0x1f7   : > { %v6159_v31 = vadd.f32 %v6035_v4, %v1069_v26  ;;  %v6161_v57 = vpop.f32.mrf.mxu0  ;;  %v3165_v45 = vadd.s32 %v3164_v38, %v3154_v23  ;;  %v3180_v26 = vmul.u32 14564, %v3176_v24  ;;  %v3182_v47 = vshll.u32 %v3179_v34, 16  ;;  %v7350_v23 = vld [vmem:[#allocation5_spill] sm:$0xff]  ;;  %v6179_v63 = vpop.f32.mrf.mxu3 }
 0x1f8   : > { %7347 = vst [vmem:[#allocation3_spill] sm:$0xff] %v6161_v57  ;;  %vm4194_vm13 = vcmp.lt.s32.totalorder %v6156_v49, 0  ;;  %v3181_v57 = vmul.u32 58254, %v3176_v24  ;;  %v6173_v38 = vadd.s32 24, %v6050_v58  ;;  %v6176_v2 = vadd.f32 %v6076_v35, %v1429_v43 }
 0x1f9   : > { %v3166_v4 = vadd.s32 %v3165_v45, %v3156_v1  ;;  %v830_v15 = vadd.f32 %v829_v25, %v7350_v23  ;;  %v3184_v1 = vshll.u32 %v3180_v26, 16  ;;  %v6183_v52 = vadd.s32 18, %v6156_v49  ;;  %vm6196_vm15 = vmand %vm4194_vm13, %vm4158_vm12 }
 0x1fa   : > { %7349 = vst [vmem:[#allocation4_spill] sm:$0xff] %v6176_v2  ;;  %v6185_v24 = vor.u32 %v2502_v36, %v2499_v53  ;;  %vm3186_vm14 = vc.u32 %v3178_v11, %v3182_v47  ;;  %v3188_v32 = vadd.s32 %v3182_v47, %v3178_v11  ;;  %v7351_v43 = vrot.slane %v6022_v42, 2  ;;  %v6202_v36 = vld [vmem:[%s5348_s24 + $0x58] sm:$0xff] }
 0x1fb   : > { %v3167_v27 = vshrl.u32 %v3166_v4, 4  ;;  %v3187_v53 = vsel %vm3186_vm14, 1, %v7341_v59  ;;  %v7297_v11 = vrot.slane %v6202_v36, 2  ;;  %v7375_v4 = vrot.slane %v6202_v36, 2 }
 0x1fc   : > { %v1029_v45 = vpop.f32.mrf.mxu2  ;;  %v6190_v25 = vsel %vm1809_vm6, %v7351_v43, %v2188_v19  ;;  %v3189_v47 = vadd.s32 %v3187_v53, %v3181_v57  ;;  %vm3190_vm0 = vc.u32 %v3188_v32, %v3184_v1  ;;  %v7357_v57 = vrot.slane %v6022_v42, 3 }
 0x1fd   : > { %v1070_v39 = vadd.f32 %v1029_v45, %v830_v15  ;;  %v832_v35 = vpop.f32.mrf.mxu1  ;;  %v3168_v23 = vmul.u32 18, %v3167_v27  ;;  %v3204_v15 = vand.u32 65535, %v6173_v38  ;;  %v3205_v45 = vshrl.u32 %v6173_v38, 16 }
 0x1fe   : > { %v3183_v27 = vshrl.u32 %v3179_v34, 16  ;;  %v6219_v53 = vsel %vm2775_vm7, %v7357_v57, %v7356_v44  ;;  %v3191_v32 = vsel %vm3190_vm0, 1, %v7341_v59  ;;  %v7358_v34 = vld [vmem:[#allocation6_spill] sm:$0xff]  ;;  %v3185_v44 = vshrl.u32 %v3180_v26, 16 }
 0x1ff   : > { %v6208_v43 = vadd.f32 %v6062_v62, %v1070_v39  ;;  %v6210_v60 = vpop.f32.mrf.mxu0  ;;  %v2504_v62 = vsel %vm2406_vm5, %v6096_v10, %v6185_v24  ;;  %v6232_v42 = vsub.s32 %v6080_v20, %v3168_v23  ;;  %v3193_v1 = vadd.s32 %v3191_v32, %v3189_v47  ;;  %v6243_v10 = vld [vmem:[%s5348_s24 + $0x68] sm:$0xff] }
 0x200   : > { %7355 = vst [vmem:[#allocation24_spill] sm:$0xff] %v6210_v60  ;;  %4920 = vmatmul.msk.bf16.gmra.mxu1 %vm541_vm2, %v1826_v3  ;;  %v833_v3 = vadd.f32 %v832_v35, %v7358_v34  ;;  %v7359_v57 = vrot.slane %v6128_v33, 2  ;;  %v3207_v2 = vmul.u32 14564, %v3204_v15  ;;  %v3208_v35 = vmul.u32 58254, %v3204_v15 }
 0x201   : > { %7354 = vst [vmem:[#allocation5_spill] sm:$0xff] %v6208_v43  ;;  %5007 = vmatmul.msk.bf16.gmra.mxu2 %vm541_vm2, %v2187_v41  ;;  %v6245_v34 = vmul.u32 14564, %v3205_v45  ;;  %v6247_v41 = vpop.f32.mrf.mxu3  ;;  %v7360_v20 = vrot.slane %v6132_v22, 2  ;;  %v3194_v23 = vadd.s32 %v3193_v1, %v3183_v27  ;;  %v6257_v33 = vadd.f32 %v6110_v14, %v6159_v31 }
 0x202   : > { %5045 = vmatmul.msk.bf16.gmra.mxu0 %vm541_vm2, %v2792_v48  ;;  %v6240_v39 = vsel %vm1809_vm6, %v7359_v57, %v7297_v11  ;;  %v2506_v32 = vshrl.u32 %v6243_v10, 16  ;;  %v2509_v15 = vshll.u32 %v6243_v10, 16  ;;  %v3211_v57 = vshll.u32 %v3208_v35, 16 }
 0x203   : > { %v6252_v26 = vsel %vm1809_vm6, %v2188_v19, %v7360_v20  ;;  %7361 = vst [vmem:[#allocation6_spill] sm:$0xff] %v6257_v33  ;;  %v6262_v11 = vadd.s32 32, %v6050_v58  ;;  %v3195_v19 = vadd.s32 %v3194_v23, %v3185_v44  ;;  %v3210_v20 = vmul.u32 58254, %v3205_v45 }
 0x204   : > { %v1032_v47 = vpop.f32.mrf.mxu2  ;;  %v3213_v48 = vshll.u32 %v6245_v34, 16  ;;  %vm4159_vm1 = vcmp.ne.s32.totalorder %v6232_v42, 0  ;;  %vm4195_vm3 = vcmp.lt.s32.totalorder %v6232_v42, 0  ;;  %v6268_v14 = vadd.s32 18, %v6232_v42  ;;  %5028 = vmatmul.msk.bf16.gmra.mxu3 %vm541_vm2, %v2504_v62 }
 0x205   : > { %v1071_v60 = vadd.f32 %v1032_v47, %v833_v3  ;;  %v834_v43 = vpop.f32.mrf.mxu1  ;;  %v2508_v31 = vrot.slane %v2506_v32, 2  ;;  %v3196_v33 = vshrl.u32 %v3195_v19, 4  ;;  %vm3215_vm4 = vc.u32 %v3207_v2, %v3211_v57  ;;  %vm6297_vm9 = vmand %vm4195_vm3, %vm4159_vm1 }
 0x206   : > { %v3217_v3 = vadd.s32 %v3211_v57, %v3207_v2  ;;  %v2511_v45 = vrot.slane %v2509_v15, 3  ;;  %v3216_v44 = vsel %vm3215_vm4, 1, %v7341_v59  ;;  %v3233_v23 = vand.u32 65535, %v6262_v11 }
 0x207   : > { %v6271_v27 = vadd.f32 %v6087_v16, %v1071_v60  ;;  %v6273_v1 = vpop.f32.mrf.mxu0  ;;  %v3234_v47 = vshrl.u32 %v6262_v11, 16  ;;  %v7365_v32 = vrot.slane %v6059_v13, 3  ;;  %v3197_v60 = vmul.u32 18, %v3196_v33 }
 0x208   : > { %7363 = vst [vmem:[#allocation26_spill] sm:$0xff] %v6273_v1  ;;  %v3218_v19 = vadd.s32 %v3216_v44, %v3210_v20  ;;  %vm3219_vm8 = vc.u32 %v3217_v3, %v3213_v48  ;;  %v3212_v2 = vshrl.u32 %v3208_v35, 16  ;;  %v6287_v15 = vmul.u32 58254, %v3233_v23  ;;  %v7366_v1 = vld [vmem:[#allocation7_spill] sm:$0xff] }
 0x209   : > { %7362 = vst [vmem:[#allocation25_spill] sm:$0xff] %v6271_v27  ;;  %v6284_v16 = vsel %vm2775_vm7, %v7365_v32, %v7364_v8  ;;  %v3220_v62 = vsel %vm3219_vm8, 1, %v7341_v59  ;;  %v6290_v57 = vadd.s32 40, %v6050_v58  ;;  %v835_v27 = vadd.f32 %v834_v43, %v7366_v1  ;;  %v6301_v13 = vpop.f32.mrf.mxu3 }
 0x20a   : > { %v6304_v35 = vsub.s32 %v6120_v46, %v3197_v60  ;;  %v3222_v48 = vadd.s32 %v3220_v62, %v3218_v19  ;;  %v6306_v33 = vmul.u32 14564, %v3234_v47  ;;  %v6308_v3 = vor.u32 %v2511_v45, %v2508_v31  ;;  %v6330_v62 = vld [vmem:[%s5348_s24 + $0x60] sm:$0xff] }
 0x20b   : > { %v3214_v43 = vshrl.u32 %v6245_v34, 16  ;;  %v3236_v1 = vmul.u32 14564, %v3233_v23  ;;  %v3240_v44 = vshll.u32 %v6287_v15, 16  ;;  %v4303_v31 = vsel %vm6297_vm9, %v6268_v14, %v6232_v42 }
 0x20c   : > { %v1034_v20 = vpop.f32.mrf.mxu2  ;;  %vm4160_vm10 = vcmp.ne.s32.totalorder %v6304_v35, 0  ;;  %vm4196_vm11 = vcmp.lt.s32.totalorder %v6304_v35, 0  ;;  %v6315_v46 = vadd.s32 18, %v6304_v35  ;;  %v3223_v34 = vadd.s32 %v3222_v48, %v3212_v2 }
 0x20d   : > { %v1072_v32 = vadd.f32 %v1034_v20, %v835_v27  ;;  %v1913_v12 = vpop.f32.mrf.mxu1  ;;  %vm6321_vm12 = vmand %vm4196_vm11, %vm4160_vm10  ;;  %v3239_v23 = vmul.u32 58254, %v3234_v47  ;;  %v3262_v27 = vand.u32 65535, %v6290_v57  ;;  %v7299_v20 = vrot.slane %v6330_v62, 2 }
 0x20e   : > { %v3242_v50 = vshll.u32 %v6306_v33, 16  ;;  %v3263_v42 = vshrl.u32 %v6290_v57, 16  ;;  %v2003_v14 = vadd.f32 %v1913_v12, %v5712_v18  ;;  %v3224_v47 = vadd.s32 %v3223_v34, %v3214_v43  ;;  %v6363_v43 = vld [vmem:[%s5348_s24 + $0x70] sm:$0xff] }
 0x20f   : > { %v6327_v60 = vadd.f32 %v6135_v30, %v1072_v32  ;;  %v2879_v19 = vpop.f32.mrf.mxu0  ;;  %v2513_v30 = vsel %vm2406_vm5, %v6185_v24, %v6308_v3  ;;  %v3241_v2 = vshrl.u32 %v6287_v15, 16  ;;  %vm3244_vm13 = vc.u32 %v3236_v1, %v3240_v44 }
 0x210   : > { %4921 = vmatmul.msk.bf16.gmra.mxu1 %vm541_vm2, %v6168_v55  ;;  %v3246_v12 = vadd.s32 %v3240_v44, %v3236_v1  ;;  %v7372_v55 = vsel %vm6196_vm15, %v6183_v52, %v6156_v49  ;;  %v3243_v15 = vshrl.u32 %v6306_v33, 16  ;;  %v3245_v48 = vsel %vm3244_vm13, 1, %v7341_v59 }
 0x211   : > { %7371 = vst [vmem:[#allocation7_spill] sm:$0xff] %v6327_v60  ;;  %5008 = vmatmul.msk.bf16.gmra.mxu2 %vm541_vm2, %v6190_v25  ;;  %vm6356_vm14 = vcmp.lt.s32.totalorder %v7372_v55, 16  ;;  %v3225_v25 = vshrl.u32 %v3224_v47, 4  ;;  %v6365_v1 = vmul.u32 58254, %v3262_v27  ;;  %v6367_v44 = vpop.f32.mrf.mxu3  ;;  %v6374_v49 = vsel %vm1809_vm6, %v7375_v4, %v7299_v20 }
 0x212   : > { %5046 = vmatmul.msk.bf16.gmra.mxu0 %vm541_vm2, %v6219_v53  ;;  %v3247_v52 = vadd.s32 %v3245_v48, %v3239_v23  ;;  %vm3248_vm15 = vc.u32 %v3246_v12, %v3242_v50  ;;  %v6376_v53 = vmul.u32 14564, %v3263_v42  ;;  %v2515_v47 = vshrl.u32 %v6363_v43, 16 }
 0x213   : > { %v3226_v32 = vmul.u32 18, %v3225_v25  ;;  %v3249_v34 = vsel %vm3248_vm15, 1, %v7341_v59  ;;  %v2518_v55 = vshll.u32 %v6363_v43, 16  ;;  %v3265_v56 = vmul.u32 14564, %v3262_v27 }
 0x214   : > { %v2274_v33 = vpop.f32.mrf.mxu2  ;;  %v3251_v60 = vadd.s32 %v3249_v34, %v3247_v52  ;;  %v3269_v36 = vshll.u32 %v6365_v1, 16  ;;  %v7376_v50 = vrot.slane %v6243_v10, 2  ;;  %v7377_v23 = vrot.slane %v6132_v22, 2  ;;  %5029 = vmatmul.msk.bf16.gmra.mxu3 %vm541_vm2, %v2513_v30 }
 0x215   : > { %v2364_v8 = vadd.f32 %v2274_v33, %v2003_v14  ;;  %v1915_v18 = vpop.f32.mrf.mxu1  ;;  %v6383_v4 = vsub.s32 %v6173_v38, %v3226_v32  ;;  %v7302_v25 = vrot.slane %v6243_v10, 3  ;;  %v3268_v48 = vmul.u32 58254, %v3263_v42 }
 0x216   : > { %v6390_v12 = vsel %vm1809_vm6, %v7377_v23, %v7376_v50  ;;  %v3252_v52 = vadd.s32 %v3251_v60, %v3241_v2  ;;  %v2517_v27 = vrot.slane %v2515_v47, 2  ;;  %v2520_v34 = vrot.slane %v2518_v55, 3 }
 0x217   : > { %v2733_v14 = vadd.f32 %v6179_v63, %v2364_v8  ;;  %v2881_v33 = vpop.f32.mrf.mxu0  ;;  %vm6394_vm0 = vcmp.lt.s32.totalorder %v4303_v31, 16  ;;  %vm4161_vm1 = vcmp.ne.s32.totalorder %v6383_v4, 0  ;;  %vm4197_vm3 = vcmp.lt.s32.totalorder %v6383_v4, 0 }
 0x218   : > { %v6402_v38 = vadd.s32 18, %v6383_v4  ;;  %v3271_v42 = vshll.u32 %v6376_v53, 16  ;;  %vm6405_vm4 = vmand %vm4197_vm3, %vm4161_vm1  ;;  %v3253_v31 = vadd.s32 %v3252_v52, %v3243_v15  ;;  %vm3273_vm8 = vc.u32 %v3265_v56, %v3269_v36 }
 0x219   : > { %v2969_v63 = vadd.f32 %v2879_v19, %v2733_v14  ;;  %v3275_v2 = vadd.s32 %v3269_v36, %v3265_v56  ;;  %v7382_v30 = vrot.slane %v6132_v22, 3  ;;  %v3270_v32 = vshrl.u32 %v6365_v1, 16  ;;  %v6422_v15 = vpop.f32.mrf.mxu3 }
 0x21a   : > { %v3274_v47 = vsel %vm3273_vm8, 1, %v7341_v59  ;;  %v6419_v19 = vadd.s32 48, %v6050_v58  ;;  %v2004_v55 = vadd.f32 %v1915_v18, %v5722_v9  ;;  %v3254_v56 = vshrl.u32 %v3253_v31, 4 }
 0x21b   : > { %v6414_v8 = vsel %vm2775_vm7, %v7382_v30, %v7302_v25  ;;  %v6424_v36 = vor.u32 %v2520_v34, %v2517_v27  ;;  %v3276_v50 = vadd.s32 %v3274_v47, %v3268_v48  ;;  %v4305_v1 = vsel %vm6405_vm4, %v6402_v38, %v6383_v4  ;;  %v6436_v34 = vld [vmem:[%s5348_s24 + $0x68] sm:$0xff] }
 0x21c   : > { %v2276_v22 = vpop.f32.mrf.mxu2  ;;  %v3272_v23 = vshrl.u32 %v6376_v53, 16  ;;  %vm3277_vm9 = vc.u32 %v3275_v2, %v3271_v42  ;;  %v3291_v14 = vand.u32 65535, %v6419_v19  ;;  %v4374_v9 = vsel %vm6356_vm14, %v2969_v63, 0.0 }
 0x21d   : > { %v2365_v18 = vadd.f32 %v2276_v22, %v2004_v55  ;;  %v1918_v52 = vpop.f32.mrf.mxu1  ;;  %v3255_v31 = vmul.u32 18, %v3254_v56  ;;  %v3278_v27 = vsel %vm3277_vm9, 1, %v7341_v59  ;;  %v7301_v30 = vrot.slane %v6436_v34, 2 }
 0x21e   : > { %v3280_v48 = vadd.s32 %v3278_v27, %v3276_v50  ;;  %v7300_v4 = vrot.slane %v6363_v43, 2  ;;  %v3292_v53 = vshrl.u32 %v6419_v19, 16  ;;  %v2522_v60 = vsel %vm2406_vm5, %v6308_v3, %v6424_v36 }
 0x21f   : > { %v2734_v38 = vadd.f32 %v6247_v41, %v2365_v18  ;;  %v2884_v42 = vpop.f32.mrf.mxu0  ;;  %v6443_v24 = vsub.s32 %v6262_v11, %v3255_v31  ;;  %v6448_v2 = vmul.u32 58254, %v3291_v14  ;;  %v4452_v47 = vmul.f32 %v4374_v9, %v4374_v9 }
 0x220   : > { %v2005_v55 = vadd.f32 %v1918_v52, %v5728_v17  ;;  %4922 = vmatmul.msk.bf16.gmra.mxu1 %vm541_vm2, %v6240_v39  ;;  %v7383_v41 = vsel %vm6321_vm12, %v6315_v46, %v6304_v35  ;;  %v3281_v56 = vadd.s32 %v3280_v48, %v3270_v32  ;;  %v6463_v3 = vadd.s32 56, %v6050_v58  ;;  %v6494_v52 = vld [vmem:[%s5348_s24 + $0x78] sm:$0xff] }
 0x221   : > { %vm6458_vm10 = vcmp.lt.s32.totalorder %v7383_v41, 16  ;;  %v2970_v50 = vadd.f32 %v2881_v33, %v2734_v38  ;;  %5009 = vmatmul.msk.bf16.gmra.mxu2 %vm541_vm2, %v6252_v26  ;;  %v7386_v17 = vrot.slane %v6330_v62, 2  ;;  %v7387_v35 = vrot.slane %v6243_v10, 2  ;;  %v6490_v18 = vpop.f32.mrf.mxu3 }
 0x222   : > { %v3294_v45 = vmul.u32 14564, %v3291_v14  ;;  %5047 = vmatmul.msk.bf16.gmra.mxu0 %vm541_vm2, %v6284_v16  ;;  %vm4162_vm11 = vcmp.ne.s32.totalorder %v6443_v24, 0  ;;  %v3282_v26 = vadd.s32 %v3281_v56, %v3272_v23  ;;  %v2799_v62 = vrot.slane %v6363_v43, 3 }
 0x223   : > { %v6472_v39 = vsel %vm1809_vm6, %v7386_v17, %v7301_v30  ;;  %v6479_v46 = vsel %vm1809_vm6, %v7387_v35, %v7300_v4  ;;  %v6485_v33 = vmul.u32 14564, %v3292_v53  ;;  %v5118_v32 = vpack.c.bf16 %v2970_v50, %v2969_v63 }
 0x224   : > { %v4375_v22 = vsel %vm6394_vm0, %v2970_v50, 0.0  ;;  %vm4198_vm12 = vcmp.lt.s32.totalorder %v6443_v24, 0  ;;  %v3298_v14 = vshll.u32 %v6448_v2, 16  ;;  %v2279_v27 = vpop.f32.mrf.mxu2  ;;  %v3283_v23 = vshrl.u32 %v3282_v26, 4  ;;  %5030 = vmatmul.msk.bf16.gmra.mxu3 %vm541_vm2, %v2522_v60 }
 0x225   : > { %v4410_v16 = vadd.f32 %v4375_v22, %v4374_v9  ;;  %v4453_v31 = vmul.f32 %v4375_v22, %v4375_v22  ;;  %v3297_v48 = vmul.u32 58254, %v3292_v53  ;;  %5119 = vst [vmem:[%s5353_s27] sm:$0xff] %v5118_v32   ;;  %v2366_v38 = vadd.f32 %v2279_v27, %v2005_v55  ;;  %v1920_v41 = vpop.f32.mrf.mxu1  ;;  %vm6518_vm15 = vmand %vm4198_vm12, %vm4162_vm11 }
 0x226   : > { %v4270_v63 = vadd.s32 18, %v6443_v24  ;;  %v3299_v20 = vshrl.u32 %v6448_v2, 16  ;;  %v3300_v56 = vshll.u32 %v6485_v33, 16  ;;  %v3284_v17 = vmul.u32 18, %v3283_v23 }
 0x227   : > { %v4488_v50 = vadd.f32 %v4453_v31, %v4452_v47  ;;  %v3301_v35 = vshrl.u32 %v6485_v33, 16  ;;  %vm3302_vm13 = vc.u32 %v3294_v45, %v3298_v14  ;;  %v2735_v9 = vadd.f32 %v6301_v13, %v2366_v38  ;;  %v2886_v22 = vpop.f32.mrf.mxu0 }
 0x228   : > { %v3303_v26 = vsel %vm3302_vm13, 1, %v7341_v59  ;;  %v3304_v53 = vadd.s32 %v3298_v14, %v3294_v45  ;;  %v2524_v55 = vshrl.u32 %v6494_v52, 16  ;;  %vm6504_vm14 = vcmp.lt.s32.totalorder %v4305_v1, 16 }
 0x229   : > { %v6510_v2 = vsub.s32 %v6290_v57, %v3284_v17  ;;  %v3305_v47 = vadd.s32 %v3303_v26, %v3297_v48  ;;  %v2527_v33 = vshll.u32 %v6494_v52, 16  ;;  %v3320_v13 = vand.u32 65535, %v6463_v3  ;;  %v6536_v48 = vpop.f32.mrf.mxu3 }
 0x22a   : > { %v2971_v31 = vadd.f32 %v2884_v42, %v2735_v9  ;;  %vm3306_vm0 = vc.u32 %v3304_v53, %v3300_v56  ;;  %v2526_v45 = vrot.slane %v2524_v55, 2  ;;  %v3321_v60 = vshrl.u32 %v6463_v3, 16 }
 0x22b   : > { %vm4163_vm1 = vcmp.ne.s32.totalorder %v6510_v2, 0  ;;  %vm4199_vm3 = vcmp.lt.s32.totalorder %v6510_v2, 0  ;;  %v6526_v57 = vadd.s32 18, %v6510_v2  ;;  %v3307_v42 = vsel %vm3306_vm0, 1, %v7341_v59 }
 0x22c   : > { %v4376_v14 = vsel %vm6458_vm10, %v2971_v31, 0.0  ;;  %v2006_v27 = vadd.f32 %v1920_v41, %v5738_v37  ;;  %vm6532_vm4 = vmand %vm4199_vm3, %vm4163_vm1  ;;  %v3309_v38 = vadd.s32 %v3307_v42, %v3305_v47  ;;  %v2529_v56 = vrot.slane %v2527_v33, 3  ;;  %v2281_v26 = vpop.f32.mrf.mxu2  ;;  %v6566_v42 = vld [vmem:[%s5348_s24 + $0x70] sm:$0xff] }
 0x22d   : > { %v4411_v17 = vadd.f32 %v4410_v16, %v4376_v14  ;;  %v4454_v9 = vmul.f32 %v4376_v14, %v4376_v14  ;;  %v4306_v53 = vsel %vm6518_vm15, %v4270_v63, %v6443_v24  ;;  %v3324_v55 = vmul.u32 58254, %v3320_v13  ;;  %v1923_v4 = vpop.f32.mrf.mxu1 }
 0x22e   : > { %v2367_v11 = vadd.f32 %v2281_v26, %v2006_v27  ;;  %v3310_v30 = vadd.s32 %v3309_v38, %v3299_v20  ;;  %v6541_v37 = vor.u32 %v2529_v56, %v2526_v45  ;;  %v3323_v41 = vmul.u32 14564, %v3320_v13 }
 0x22f   : > { %v4489_v25 = vadd.f32 %v4488_v50, %v4454_v9  ;;  %v4307_v16 = vsel %vm6532_vm4, %v6526_v57, %v6510_v2  ;;  %v7394_v47 = vrot.slane %v6243_v10, 3  ;;  %v3325_v63 = vmul.u32 14564, %v3321_v60  ;;  %v2889_v33 = vpop.f32.mrf.mxu0 }
 0x230   : > { %v2736_v20 = vadd.f32 %v6367_v44, %v2367_v11  ;;  %v3311_v1 = vadd.s32 %v3310_v30, %v3301_v35  ;;  %v3326_v45 = vmul.u32 58254, %v3321_v60  ;;  %v3327_v13 = vshll.u32 %v3324_v55, 16  ;;  %4923 = vmatmul.msk.bf16.gmra.mxu1 %vm541_vm2, %v6374_v49 }
 0x231   : > { %v6552_v24 = vsel %vm2775_vm7, %v7394_v47, %v2799_v62  ;;  %v2007_v50 = vadd.f32 %v1923_v4, %v5744_v61  ;;  %vm6558_vm8 = vcmp.lt.s32.totalorder %v4306_v53, 16  ;;  %v2531_v10 = vsel %vm2406_vm5, %v6424_v36, %v6541_v37  ;;  %5010 = vmatmul.msk.bf16.gmra.mxu2 %vm541_vm2, %v6390_v12  ;;  %v6577_v12 = vpop.f32.mrf.mxu3 }
 0x232   : > { %v3329_v57 = vshll.u32 %v3325_v63, 16  ;;  %v1835_v44 = vrot.slane %v6566_v42, 2  ;;  %v2972_v30 = vadd.f32 %v2886_v22, %v2736_v20  ;;  %v3312_v61 = vshrl.u32 %v3311_v1, 4  ;;  %5048 = vmatmul.msk.bf16.gmra.mxu0 %vm541_vm2, %v6414_v8 }
 0x233   : > { %vm3331_vm9 = vc.u32 %v3323_v41, %v3327_v13  ;;  %v3333_v49 = vadd.s32 %v3327_v13, %v3323_v41  ;;  %v3328_v4 = vshrl.u32 %v3324_v55, 16  ;;  %v3330_v35 = vshrl.u32 %v3325_v63, 16 }
 0x234   : > { %v3332_v36 = vsel %vm3331_vm9, 1, %v7341_v59  ;;  %v2196_v60 = vrot.slane %v6494_v52, 2  ;;  %v5123_v14 = vpack.c.bf16 %v2972_v30, %v2971_v31  ;;  %v4377_v22 = vsel %vm6504_vm14, %v2972_v30, 0.0  ;;  %v2284_v9 = vpop.f32.mrf.mxu2  ;;  %5031 = vmatmul.msk.bf16.gmra.mxu3 %vm541_vm2, %v2531_v10 }
 0x235   : > { %v3313_v27 = vmul.u32 18, %v3312_v61  ;;  %v3334_v23 = vadd.s32 %v3332_v36, %v3326_v45  ;;  %v4412_v38 = vadd.f32 %v4411_v17, %v4377_v22  ;;  %v4455_v56 = vmul.f32 %v4377_v22, %v4377_v22  ;;  %v1925_v53 = vpop.f32.mrf.mxu1  ;;  %v6591_v17 = vld [vmem:[%s5348_s24 + $0x80] sm:$0xff] }
 0x236   : > { %vm3335_vm10 = vc.u32 %v3333_v49, %v3329_v57  ;;  %v2801_v8 = vrot.slane %v6494_v52, 3  ;;  %5208 = vst [vmem:[%s5353_s27 + $0x8] sm:$0xff] %v5123_v14   ;;  %v2368_v26 = vadd.f32 %v2284_v9, %v2007_v50  ;;  %v7397_v32 = vrot.slane %v6436_v34, 2 }
 0x237   : > { %v3314_v55 = vsub.s32 %v6419_v19, %v3313_v27  ;;  %v3336_v31 = vsel %vm3335_vm10, 1, %v7341_v59  ;;  %v4490_v41 = vadd.f32 %v4489_v25, %v4455_v56  ;;  %v7398_v63 = vrot.slane %v6363_v43, 2  ;;  %v2891_v34 = vpop.f32.mrf.mxu0 }
 0x238   : > { %v6588_v11 = vsel %vm1809_vm6, %v7397_v32, %v1835_v44  ;;  %v3338_v47 = vadd.s32 %v3336_v31, %v3334_v23  ;;  %v6601_v19 = vadd.s32 64, %v6050_v58  ;;  %v2737_v1 = vadd.f32 %v6422_v15, %v2368_v26 }
 0x239   : > { %v6598_v20 = vsel %vm1809_vm6, %v7398_v63, %v2196_v60  ;;  %vm4164_vm11 = vcmp.ne.s32.totalorder %v3314_v55, 0  ;;  %vm4200_vm12 = vcmp.lt.s32.totalorder %v3314_v55, 0  ;;  %v4272_v45 = vadd.s32 18, %v3314_v55  ;;  %v6629_v22 = vpop.f32.mrf.mxu3 }
 0x23a   : > { %vm6604_vm13 = vcmp.lt.s32.totalorder %v4307_v16, 16  ;;  %vm6608_vm14 = vmand %vm4200_vm12, %vm4164_vm11  ;;  %v3339_v50 = vadd.s32 %v3338_v47, %v3328_v4  ;;  %v6618_v15 = vsel %vm2775_vm7, %v2799_v62, %v2801_v8  ;;  %v3349_v57 = vand.u32 65535, %v6601_v19 }
 0x23b   : > { %v3350_v16 = vshrl.u32 %v6601_v19, 16  ;;  %v2973_v30 = vadd.f32 %v2889_v33, %v2737_v1  ;;  %v2008_v61 = vadd.f32 %v1925_v53, %v5754_v29  ;;  %v4308_v49 = vsel %vm6608_vm14, %v4272_v45, %v3314_v55 }
 0x23c   : > { %v2533_v10 = vshrl.u32 %v6591_v17, 16  ;;  %v3340_v4 = vadd.s32 %v3339_v50, %v3330_v35  ;;  %v3352_v36 = vmul.u32 14564, %v3349_v57  ;;  %v3353_v14 = vmul.u32 58254, %v3349_v57  ;;  %v2286_v9 = vpop.f32.mrf.mxu2 }
 0x23d   : > { %v2536_v43 = vshll.u32 %v6591_v17, 16  ;;  %v4378_v62 = vsel %vm6558_vm8, %v2973_v30, 0.0  ;;  %v6631_v27 = vmul.u32 14564, %v3350_v16  ;;  %v3355_v33 = vmul.u32 58254, %v3350_v16  ;;  %v1928_v55 = vpop.f32.mrf.mxu1 }
 0x23e   : > { %v6634_v29 = vadd.s32 72, %v6050_v58  ;;  %v4413_v23 = vadd.f32 %v4412_v38, %v4378_v62  ;;  %v4456_v56 = vmul.f32 %v4378_v62, %v4378_v62  ;;  %v3341_v26 = vshrl.u32 %v3340_v4, 4  ;;  %v6666_v62 = vld [vmem:[%s5348_s24 + $0x78] sm:$0xff] }
 0x23f   : > { %v3356_v35 = vshll.u32 %v3353_v14, 16  ;;  %v2369_v53 = vadd.f32 %v2286_v9, %v2008_v61  ;;  %v3357_v31 = vshrl.u32 %v3353_v14, 16  ;;  %v3358_v32 = vshll.u32 %v6631_v27, 16  ;;  %v2894_v25 = vpop.f32.mrf.mxu0 }
 0x240   : > { %v2535_v2 = vrot.slane %v2533_v10, 2  ;;  %v4491_v47 = vadd.f32 %v4490_v41, %v4456_v56  ;;  %v3342_v63 = vmul.u32 18, %v3341_v26  ;;  %v3359_v1 = vshrl.u32 %v6631_v27, 16  ;;  %4924 = vmatmul.msk.bf16.gmra.mxu1 %vm541_vm2, %v6472_v39 }
 0x241   : > { %vm3360_vm15 = vc.u32 %v3352_v36, %v3356_v35  ;;  %v2738_v45 = vadd.f32 %v6490_v18, %v2369_v53  ;;  %v3362_v50 = vadd.s32 %v3356_v35, %v3352_v36  ;;  %v2538_v57 = vrot.slane %v2536_v43, 3  ;;  %5011 = vmatmul.msk.bf16.gmra.mxu2 %vm541_vm2, %v6479_v46  ;;  %v6663_v43 = vpop.f32.mrf.mxu3 }
 0x242   : > { %v3361_v38 = vsel %vm3360_vm15, 1, %v7341_v59  ;;  %v2009_v16 = vadd.f32 %v1928_v55, %v5760_v5  ;;  %vm6643_vm0 = vcmp.lt.s32.totalorder %v4308_v49, 16  ;;  %v3343_v41 = vsub.s32 %v6463_v3, %v3342_v63  ;;  %5049 = vmatmul.msk.bf16.gmra.mxu0 %vm541_vm2, %v6552_v24 }
 0x243   : > { %v3363_v10 = vadd.s32 %v3361_v38, %v3355_v33  ;;  %v3378_v4 = vand.u32 65535, %v6634_v29  ;;  %v2974_v18 = vadd.f32 %v2891_v34, %v2738_v45  ;;  %vm3364_vm1 = vc.u32 %v3362_v50, %v3358_v32 }
 0x244   : > { %v6651_v36 = vor.u32 %v2538_v57, %v2535_v2  ;;  %v3379_v5 = vshrl.u32 %v6634_v29, 16  ;;  %vm4165_vm3 = vcmp.ne.s32.totalorder %v3343_v41, 0  ;;  %vm4201_vm4 = vcmp.lt.s32.totalorder %v3343_v41, 0  ;;  %v2289_v56 = vpop.f32.mrf.mxu2 }
 0x245   : > { %v4273_v3 = vadd.s32 18, %v3343_v41  ;;  %v3365_v39 = vsel %vm3364_vm1, 1, %v7341_v59  ;;  %v5128_v49 = vpack.c.bf16 %v2974_v18, %v2973_v30  ;;  %v4379_v34 = vsel %vm6604_vm13, %v2974_v18, 0.0  ;;  %vm6659_vm8 = vmand %vm4201_vm4, %vm4165_vm3  ;;  %v1930_v26 = vpop.f32.mrf.mxu1 }
 0x246   : > { %v3367_v14 = vadd.s32 %v3365_v39, %v3363_v10  ;;  %v1837_v24 = vrot.slane %v6666_v62, 2  ;;  %v4414_v27 = vadd.f32 %v4413_v23, %v4379_v34  ;;  %v4457_v33 = vmul.f32 %v4379_v34, %v4379_v34 }
 0x247   : > { %v4309_v30 = vsel %vm6659_vm8, %v4273_v3, %v3343_v41  ;;  %v2540_v13 = vsel %vm2406_vm5, %v6541_v37, %v6651_v36  ;;  %5209 = vst [vmem:[%s5353_s27 + $0x10] sm:$0xff] %v5128_v49   ;;  %v2370_v9 = vadd.f32 %v2289_v56, %v2009_v16  ;;  %v3381_v53 = vmul.u32 14564, %v3378_v4  ;;  %v2896_v38 = vpop.f32.mrf.mxu0 }
 0x248   : > { %v3368_v35 = vadd.s32 %v3367_v14, %v3357_v31  ;;  %v3382_v55 = vmul.u32 58254, %v3378_v4  ;;  %v4492_v32 = vadd.f32 %v4491_v47, %v4457_v33  ;;  %v2010_v2 = vadd.f32 %v1930_v26, %v5770_v51  ;;  %5032 = vmatmul.msk.bf16.gmra.mxu3 %vm541_vm2, %v2540_v13 }
 0x249   : > { %v3383_v63 = vmul.u32 14564, %v3379_v5  ;;  %v3384_v23 = vmul.u32 58254, %v3379_v5  ;;  %v2739_v45 = vadd.f32 %v6536_v48, %v2370_v9  ;;  %vm6677_vm9 = vcmp.lt.s32.totalorder %v4309_v30, 16  ;;  %v6703_v5 = vld [vmem:[%s5348_s24 + $0x88] sm:$0xff]  ;;  %v6707_v49 = vpop.f32.mrf.mxu3 }
 0x24a   : > { %v3369_v50 = vadd.s32 %v3368_v35, %v3359_v1  ;;  %v3385_v57 = vshll.u32 %v3382_v55, 16  ;;  %v3386_v41 = vshrl.u32 %v3382_v55, 16  ;;  %v6687_v51 = vsel %vm1809_vm6, %v1835_v44, %v1837_v24 }
 0x24b   : > { %v3387_v31 = vshll.u32 %v3383_v63, 16  ;;  %v3388_v16 = vshrl.u32 %v3383_v63, 16  ;;  %v2198_v48 = vrot.slane %v6591_v17, 2  ;;  %v2975_v47 = vadd.f32 %v2894_v25, %v2739_v45 }
 0x24c   : > { %v3370_v1 = vshrl.u32 %v3369_v50, 4  ;;  %vm3389_vm10 = vc.u32 %v3381_v53, %v3385_v57  ;;  %v3391_v10 = vadd.s32 %v3385_v57, %v3381_v53  ;;  %v2803_v42 = vrot.slane %v6591_v17, 3  ;;  %v2291_v14 = vpop.f32.mrf.mxu2 }
 0x24d   : > { %v3390_v4 = vsel %vm3389_vm10, 1, %v7341_v59  ;;  %v6696_v18 = vsel %vm1809_vm6, %v2196_v60, %v2198_v48  ;;  %v6700_v44 = vadd.s32 80, %v6050_v58  ;;  %v4380_v25 = vsel %vm6643_vm0, %v2975_v47, 0.0  ;;  %v1933_v61 = vpop.f32.mrf.mxu1 }
 0x24e   : > { %v3371_v3 = vmul.u32 18, %v3370_v1  ;;  %v3392_v39 = vadd.s32 %v3390_v4, %v3384_v23  ;;  %vm3393_vm11 = vc.u32 %v3391_v10, %v3387_v31  ;;  %v4415_v34 = vadd.f32 %v4414_v27, %v4380_v25 }
 0x24f   : > { %v4458_v46 = vmul.f32 %v4380_v25, %v4380_v25  ;;  %v3394_v60 = vsel %vm3393_vm11, 1, %v7341_v59  ;;  %v6715_v33 = vsel %vm2775_vm7, %v2801_v8, %v2803_v42  ;;  %v2371_v56 = vadd.f32 %v2291_v14, %v2010_v2  ;;  %v2899_v52 = vpop.f32.mrf.mxu0 }
 0x250   : > { %v3372_v30 = vsub.s32 %v6601_v19, %v3371_v3  ;;  %v3396_v13 = vadd.s32 %v3394_v60, %v3392_v39  ;;  %v3407_v9 = vand.u32 65535, %v6700_v44  ;;  %v2011_v27 = vadd.f32 %v1933_v61, %v5776_v6  ;;  %4925 = vmatmul.msk.bf16.gmra.mxu1 %vm541_vm2, %v6588_v11 }
 0x251   : > { %v4493_v26 = vadd.f32 %v4492_v32, %v4458_v46  ;;  %v3408_v35 = vshrl.u32 %v6700_v44, 16  ;;  %v2542_v53 = vshrl.u32 %v6703_v5, 16  ;;  %v2740_v55 = vadd.f32 %v6577_v12, %v2371_v56  ;;  %5012 = vmatmul.msk.bf16.gmra.mxu2 %vm541_vm2, %v6598_v20  ;;  %v6739_v10 = vpop.f32.mrf.mxu3 }
 0x252   : > { %vm4166_vm12 = vcmp.ne.s32.totalorder %v3372_v30, 0  ;;  %vm4202_vm13 = vcmp.lt.s32.totalorder %v3372_v30, 0  ;;  %v4274_v8 = vadd.s32 18, %v3372_v30  ;;  %v3397_v19 = vadd.s32 %v3396_v13, %v3386_v41  ;;  %5050 = vmatmul.msk.bf16.gmra.mxu0 %vm541_vm2, %v6618_v15 }
 0x253   : > { %vm4238_vm14 = vmand %vm4202_vm13, %vm4166_vm12  ;;  %v3410_v2 = vmul.u32 14564, %v3407_v9  ;;  %v3411_v63 = vmul.u32 58254, %v3407_v9  ;;  %v6725_v32 = vmul.u32 14564, %v3408_v35  ;;  %v2976_v6 = vadd.f32 %v2896_v38, %v2740_v55 }
 0x254   : > { %v4310_v23 = vsel %vm4238_vm14, %v4274_v8, %v3372_v30  ;;  %v3413_v45 = vmul.u32 58254, %v3408_v35  ;;  %v2544_v12 = vrot.slane %v2542_v53, 2  ;;  %v3398_v11 = vadd.s32 %v3397_v19, %v3388_v16  ;;  %v2294_v15 = vpop.f32.mrf.mxu2  ;;  %v6752_v53 = vld [vmem:[%s5348_s24 + $0x80] sm:$0xff] }
 0x255   : > { %vm6731_vm15 = vcmp.lt.s32.totalorder %v4310_v23, 16  ;;  %v3414_v57 = vshll.u32 %v3411_v63, 16  ;;  %v3415_v41 = vshrl.u32 %v3411_v63, 16  ;;  %v5133_v31 = vpack.c.bf16 %v2976_v6, %v2975_v47  ;;  %v1935_v16 = vpop.f32.mrf.mxu1 }
 0x256   : > { %v4381_v38 = vsel %vm6677_vm9, %v2976_v6, 0.0  ;;  %v3416_v20 = vshll.u32 %v6725_v32, 16  ;;  %v3417_v1 = vshrl.u32 %v6725_v32, 16  ;;  %v3399_v3 = vshrl.u32 %v3398_v11, 4 }
 0x257   : > { %v4416_v4 = vadd.f32 %v4415_v34, %v4381_v38  ;;  %v4459_v25 = vmul.f32 %v4381_v38, %v4381_v38  ;;  %vm3418_vm0 = vc.u32 %v3410_v2, %v3414_v57  ;;  %5210 = vst [vmem:[%s5353_s27 + $0x18] sm:$0xff] %v5133_v31   ;;  %v2372_v39 = vadd.f32 %v2294_v15, %v2011_v27  ;;  %v2901_v30 = vpop.f32.mrf.mxu0 }
 0x258   : > { %v3419_v47 = vsel %vm3418_vm0, 1, %v7341_v59  ;;  %v3420_v46 = vadd.s32 %v3414_v57, %v3410_v2  ;;  %v2545_v37 = vshll.u32 %v6703_v5, 16  ;;  %v2012_v60 = vadd.f32 %v1935_v16, %v5786_v21 }
 0x259   : > { %v4494_v14 = vadd.f32 %v4493_v26, %v4459_v25  ;;  %v3400_v56 = vmul.u32 18, %v3399_v3  ;;  %v3421_v61 = vadd.s32 %v3419_v47, %v3413_v45  ;;  %v2741_v34 = vadd.f32 %v6629_v22, %v2372_v39  ;;  %v6765_v23 = vpop.f32.mrf.mxu3 }
 0x25a   : > { %vm3422_vm1 = vc.u32 %v3420_v46, %v3416_v20  ;;  %v2547_v13 = vrot.slane %v2545_v37, 3  ;;  %v6747_v9 = vadd.s32 88, %v6050_v58  ;;  %v1839_v26 = vrot.slane %v6752_v53, 2 }
 0x25b   : > { %v3401_v27 = vsub.s32 %v6634_v29, %v3400_v56  ;;  %v3423_v35 = vsel %vm3422_vm1, 1, %v7341_v59  ;;  %v2200_v21 = vrot.slane %v6703_v5, 2  ;;  %v2977_v55 = vadd.f32 %v2899_v52, %v2741_v34 }
 0x25c   : > { %v3425_v8 = vadd.s32 %v3423_v35, %v3421_v61  ;;  %v6756_v19 = vor.u32 %v2547_v13, %v2544_v12  ;;  %v3436_v22 = vand.u32 65535, %v6747_v9  ;;  %v3437_v63 = vshrl.u32 %v6747_v9, 16  ;;  %v2296_v11 = vpop.f32.mrf.mxu2  ;;  %v6804_v13 = vld [vmem:[%s5348_s24 + $0x90] sm:$0xff] }
 0x25d   : > { %vm4167_vm3 = vcmp.ne.s32.totalorder %v3401_v27, 0  ;;  %vm4203_vm4 = vcmp.lt.s32.totalorder %v3401_v27, 0  ;;  %v4275_v2 = vadd.s32 18, %v3401_v27  ;;  %v4382_v29 = vsel %vm6731_vm15, %v2977_v55, 0.0 }
 0x25e   : > { %vm4239_vm8 = vmand %vm4203_vm4, %vm4167_vm3  ;;  %v3426_v32 = vadd.s32 %v3425_v8, %v3415_v41  ;;  %v2549_v6 = vsel %vm2406_vm5, %v6651_v36, %v6756_v19  ;;  %v3439_v52 = vmul.u32 14564, %v3436_v22  ;;  %v4417_v45 = vadd.f32 %v4416_v4, %v4382_v29  ;;  %v1938_v41 = vpop.f32.mrf.mxu1 }
 0x25f   : > { %v4460_v12 = vmul.f32 %v4382_v29, %v4382_v29  ;;  %v4311_v57 = vsel %vm4239_vm8, %v4275_v2, %v3401_v27  ;;  %5033 = vmatmul.msk.bf16.gmra.mxu3 %vm541_vm2, %v2549_v6  ;;  %v3440_v31 = vmul.u32 58254, %v3436_v22  ;;  %v2373_v38 = vadd.f32 %v2296_v11, %v2012_v60  ;;  %v2904_v16 = vpop.f32.mrf.mxu0 }
 0x260   : > { %vm6768_vm9 = vcmp.lt.s32.totalorder %v4311_v57, 16  ;;  %v3427_v20 = vadd.s32 %v3426_v32, %v3417_v1  ;;  %v3441_v25 = vmul.u32 14564, %v3437_v63  ;;  %v2013_v36 = vadd.f32 %v1938_v41, %v5792_v40  ;;  %4926 = vmatmul.msk.bf16.gmra.mxu1 %vm541_vm2, %v6687_v51 }
 0x261   : > { %v4495_v15 = vadd.f32 %v4494_v14, %v4460_v12  ;;  %v3442_v3 = vmul.u32 58254, %v3437_v63  ;;  %v3443_v39 = vshll.u32 %v3440_v31, 16  ;;  %v2742_v4 = vadd.f32 %v6663_v43, %v2373_v38  ;;  %5013 = vmatmul.msk.bf16.gmra.mxu2 %vm541_vm2, %v6696_v18  ;;  %v6814_v63 = vpop.f32.mrf.mxu3 }
 0x262   : > { %v3428_v47 = vshrl.u32 %v3427_v20, 4  ;;  %v3444_v46 = vshrl.u32 %v3440_v31, 16  ;;  %v3445_v37 = vshll.u32 %v3441_v25, 16  ;;  %v3446_v60 = vshrl.u32 %v3441_v25, 16  ;;  %5051 = vmatmul.msk.bf16.gmra.mxu0 %vm541_vm2, %v6715_v33 }
 0x263   : > { %vm3447_vm10 = vc.u32 %v3439_v52, %v3443_v39  ;;  %v3449_v56 = vadd.s32 %v3443_v39, %v3439_v52  ;;  %v6781_v40 = vsel %vm1809_vm6, %v1837_v24, %v1839_v26  ;;  %v2978_v1 = vadd.f32 %v2901_v30, %v2742_v4 }
 0x264   : > { %v3429_v43 = vmul.u32 18, %v3428_v47  ;;  %v3448_v14 = vsel %vm3447_vm10, 1, %v7341_v59  ;;  %v6791_v51 = vsel %vm1809_vm6, %v2198_v48, %v2200_v21  ;;  %v2805_v24 = vrot.slane %v6703_v5, 3  ;;  %v2299_v33 = vpop.f32.mrf.mxu2 }
 0x265   : > { %v3450_v62 = vadd.s32 %v3448_v14, %v3442_v3  ;;  %vm3451_vm11 = vc.u32 %v3449_v56, %v3445_v37  ;;  %v6797_v18 = vadd.s32 96, %v6050_v58  ;;  %v5138_v61 = vpack.c.bf16 %v2978_v1, %v2977_v55 }
 0x266   : > { %v4383_v34 = vsel %vm6768_vm9, %v2978_v1, 0.0  ;;  %v3430_v30 = vsub.s32 %v6700_v44, %v3429_v43  ;;  %v3452_v48 = vsel %vm3451_vm11, 1, %v7341_v59  ;;  %v6811_v22 = vsel %vm2775_vm7, %v2803_v42, %v2805_v24  ;;  %v1940_v2 = vpop.f32.mrf.mxu1 }
 0x267   : > { %v4418_v27 = vadd.f32 %v4417_v45, %v4383_v34  ;;  %v4461_v35 = vmul.f32 %v4383_v34, %v4383_v34  ;;  %v3454_v8 = vadd.s32 %v3452_v48, %v3450_v62  ;;  %5211 = vst [vmem:[%s5353_s27 + $0x20] sm:$0xff] %v5138_v61   ;;  %v2374_v55 = vadd.f32 %v2299_v33, %v2013_v36  ;;  %v2906_v42 = vpop.f32.mrf.mxu0 }
 0x268   : > { %vm4168_vm12 = vcmp.ne.s32.totalorder %v3430_v30, 0  ;;  %vm4204_vm13 = vcmp.lt.s32.totalorder %v3430_v30, 0  ;;  %v4276_v44 = vadd.s32 18, %v3430_v30  ;;  %v2014_v32 = vadd.f32 %v1940_v2, %v5804_v54 }
 0x269   : > { %v4496_v29 = vadd.f32 %v4495_v15, %v4461_v35  ;;  %vm4240_vm14 = vmand %vm4204_vm13, %vm4168_vm12  ;;  %v3455_v6 = vadd.s32 %v3454_v8, %v3444_v46  ;;  %v3465_v52 = vand.u32 65535, %v6797_v18  ;;  %v2743_v17 = vadd.f32 %v6707_v49, %v2374_v55  ;;  %v6836_v55 = vpop.f32.mrf.mxu3 }
 0x26a   : > { %v4312_v45 = vsel %vm4240_vm14, %v4276_v44, %v3430_v30  ;;  %v3466_v12 = vshrl.u32 %v6797_v18, 16  ;;  %v2551_v11 = vshrl.u32 %v6804_v13, 16  ;;  %v2554_v49 = vshll.u32 %v6804_v13, 16 }
 0x26b   : > { %vm4348_vm15 = vcmp.lt.s32.totalorder %v4312_v45, 16  ;;  %v3456_v57 = vadd.s32 %v3455_v6, %v3446_v60  ;;  %v3468_v31 = vmul.u32 14564, %v3465_v52  ;;  %v3469_v38 = vmul.u32 58254, %v3465_v52  ;;  %v6851_v52 = vld [vmem:[%s5348_s24 + $0x88] sm:$0xff] }
 0x26c   : > { %v2979_v50 = vadd.f32 %v2904_v16, %v2743_v17  ;;  %v6821_v41 = vmul.u32 14564, %v3466_v12  ;;  %v3471_v20 = vmul.u32 58254, %v3466_v12  ;;  %v2553_v54 = vrot.slane %v2551_v11, 2  ;;  %v2301_v16 = vpop.f32.mrf.mxu2 }
 0x26d   : > { %v3457_v25 = vshrl.u32 %v3456_v57, 4  ;;  %v3472_v15 = vshll.u32 %v3469_v38, 16  ;;  %v3473_v36 = vshrl.u32 %v3469_v38, 16  ;;  %v6827_v47 = vadd.s32 104, %v6050_v58 }
 0x26e   : > { %v4384_v3 = vsel %vm4348_vm15, %v2979_v50, 0.0  ;;  %v3474_v39 = vshll.u32 %v6821_v41, 16  ;;  %v3475_v4 = vshrl.u32 %v6821_v41, 16  ;;  %v2375_v56 = vadd.f32 %v2301_v16, %v2014_v32  ;;  %v1943_v1 = vpop.f32.mrf.mxu1 }
 0x26f   : > { %v4419_v46 = vadd.f32 %v4418_v27, %v4384_v3  ;;  %v4462_v37 = vmul.f32 %v4384_v3, %v4384_v3  ;;  %v3458_v60 = vmul.u32 18, %v3457_v25  ;;  %vm3476_vm0 = vc.u32 %v3468_v31, %v3472_v15  ;;  %v2909_v33 = vpop.f32.mrf.mxu0  ;;  %v7413_v25 = vld [vmem:[#allocation10_spill] sm:$0xff] }
 0x270   : > { %v3477_v43 = vsel %vm3476_vm0, 1, %v7341_v59  ;;  %v3478_v14 = vadd.s32 %v3472_v15, %v3468_v31  ;;  %v2556_v62 = vrot.slane %v2554_v49, 3  ;;  %v2015_v30 = vadd.f32 %v1943_v1, %v5813_v0  ;;  %4927 = vmatmul.msk.bf16.gmra.mxu1 %vm541_vm2, %v6781_v40 }
 0x271   : > { %v4497_v61 = vadd.f32 %v4496_v29, %v4462_v37  ;;  %v3459_v34 = vsub.s32 %v6747_v9, %v3458_v60  ;;  %v3479_v48 = vadd.s32 %v3477_v43, %v3471_v20  ;;  %v2744_v35 = vadd.f32 %v6739_v10, %v2375_v56  ;;  %5014 = vmatmul.msk.bf16.gmra.mxu2 %vm541_vm2, %v6791_v51 }
 0x272   : > { %vm3480_vm1 = vc.u32 %v3478_v14, %v3474_v39  ;;  %v6833_v27 = vor.u32 %v2556_v62, %v2553_v54  ;;  %v3494_v8 = vand.u32 65535, %v6827_v47  ;;  %v3495_v29 = vshrl.u32 %v6827_v47, 16  ;;  %5052 = vmatmul.msk.bf16.gmra.mxu0 %vm541_vm2, %v6811_v22 }
 0x273   : > { %vm4169_vm3 = vcmp.ne.s32.totalorder %v3459_v34, 0  ;;  %vm4205_vm4 = vcmp.lt.s32.totalorder %v3459_v34, 0  ;;  %v4277_v44 = vadd.s32 18, %v3459_v34  ;;  %v3481_v0 = vsel %vm3480_vm1, 1, %v7341_v59 }
 0x274   : > { %v2980_v9 = vadd.f32 %v2906_v42, %v2744_v35  ;;  %vm4241_vm8 = vmand %vm4205_vm4, %vm4169_vm3  ;;  %v3483_v10 = vadd.s32 %v3481_v0, %v3479_v48  ;;  %v2558_v2 = vsel %vm2406_vm5, %v6756_v19, %v6833_v27  ;;  %v3497_v40 = vmul.u32 14564, %v3494_v8  ;;  %v2304_v12 = vpop.f32.mrf.mxu2 }
 0x275   : > { %v4313_v32 = vsel %vm4241_vm8, %v4277_v44, %v3459_v34  ;;  %5034 = vmatmul.msk.bf16.gmra.mxu3 %vm541_vm2, %v2558_v2  ;;  %v3498_v6 = vmul.u32 58254, %v3494_v8  ;;  %v1841_v51 = vrot.slane %v6851_v52, 2  ;;  %v3499_v42 = vmul.u32 14564, %v3495_v29 }
 0x276   : > { %v5143_v17 = vpack.c.bf16 %v2980_v9, %v2979_v50  ;;  %vm4349_vm9 = vcmp.lt.s32.totalorder %v4313_v32, 16  ;;  %v3484_v45 = vadd.s32 %v3483_v10, %v3473_v36  ;;  %v3500_v11 = vmul.u32 58254, %v3495_v29  ;;  %v1945_v54 = vpop.f32.mrf.mxu1  ;;  %v6857_v50 = vld [vmem:[%s5348_s24 + $0x98] sm:$0xff]  ;;  %v7414_v32 = vld [vmem:[#allocation11_spill] sm:$0xff] }
 0x277   : > { %v4385_v19 = vsel %vm4349_vm9, %v2980_v9, 0.0  ;;  %v3501_v57 = vshll.u32 %v3498_v6, 16  ;;  %v3502_v31 = vshrl.u32 %v3498_v6, 16  ;;  %v2376_v41 = vadd.f32 %v2304_v12, %v2015_v30  ;;  %v2911_v16 = vpop.f32.mrf.mxu0 }
 0x278   : > { %5212 = vst [vmem:[%s5353_s27 + $0x28] sm:$0xff] %v5143_v17   ;;  %v4420_v22 = vadd.f32 %v4419_v46, %v4385_v19  ;;  %v4463_v38 = vmul.f32 %v4385_v19, %v4385_v19  ;;  %v3485_v20 = vadd.s32 %v3484_v45, %v3475_v4  ;;  %v2016_v15 = vadd.f32 %v1945_v54, %v7413_v25 }
 0x279   : > { %v3503_v49 = vshll.u32 %v3499_v42, 16  ;;  %v3504_v3 = vshrl.u32 %v3499_v42, 16  ;;  %vm3505_vm10 = vc.u32 %v3497_v40, %v3501_v57  ;;  %v2745_v39 = vadd.f32 %v6765_v23, %v2376_v41 }
 0x27a   : > { %v4498_v36 = vadd.f32 %v4497_v61, %v4463_v38  ;;  %v3486_v37 = vshrl.u32 %v3485_v20, 4  ;;  %v3506_v60 = vsel %vm3505_vm10, 1, %v7341_v59  ;;  %v3507_v56 = vadd.s32 %v3501_v57, %v3497_v40  ;;  %v6871_v61 = vpop.f32.mrf.mxu3 }
 0x27b   : > { %v3508_v46 = vadd.s32 %v3506_v60, %v3500_v11  ;;  %v1842_v4 = vsel %vm1809_vm6, %v1839_v26, %v1841_v51  ;;  %v2202_v1 = vrot.slane %v6804_v13, 2  ;;  %v2981_v43 = vadd.f32 %v2909_v33, %v2745_v39 }
 0x27c   : > { %v3487_v14 = vmul.u32 18, %v3486_v37  ;;  %v2807_v62 = vrot.slane %v6804_v13, 3  ;;  %v6869_v23 = vadd.s32 112, %v6050_v58  ;;  %vm3509_vm11 = vc.u32 %v3507_v56, %v3503_v49  ;;  %v2306_v8 = vpop.f32.mrf.mxu2 }
 0x27d   : > { %v2203_v53 = vsel %vm1809_vm6, %v2200_v21, %v2202_v1  ;;  %v2560_v26 = vshrl.u32 %v6857_v50, 16  ;;  %v2563_v34 = vshll.u32 %v6857_v50, 16  ;;  %v3510_v48 = vsel %vm3509_vm11, 1, %v7341_v59 }
 0x27e   : > { %v3488_v30 = vsub.s32 %v6797_v18, %v3487_v14  ;;  %v2808_v35 = vsel %vm2775_vm7, %v2805_v24, %v2807_v62  ;;  %v3523_v33 = vand.u32 65535, %v6869_v23  ;;  %v3512_v44 = vadd.s32 %v3510_v48, %v3508_v46  ;;  %v1948_v2 = vpop.f32.mrf.mxu1 }
 0x27f   : > { %v3524_v21 = vshrl.u32 %v6869_v23, 16  ;;  %v2562_v0 = vrot.slane %v2560_v26, 2  ;;  %v2565_v9 = vrot.slane %v2563_v34, 3  ;;  %v2377_v18 = vadd.f32 %v2306_v8, %v2016_v15  ;;  %v2914_v45 = vpop.f32.mrf.mxu0 }
 0x280   : > { %vm4170_vm12 = vcmp.ne.s32.totalorder %v3488_v30, 0  ;;  %vm4206_vm13 = vcmp.lt.s32.totalorder %v3488_v30, 0  ;;  %v4278_v10 = vadd.s32 18, %v3488_v30  ;;  %v3513_v29 = vadd.s32 %v3512_v44, %v3502_v31  ;;  %4928 = vmatmul.msk.bf16.gmra.mxu1 %vm541_vm2, %v1842_v4 }
 0x281   : > { %vm4242_vm14 = vmand %vm4206_vm13, %vm4170_vm12  ;;  %v2017_v40 = vadd.f32 %v1948_v2, %v7414_v32  ;;  %v3526_v5 = vmul.u32 14564, %v3523_v33  ;;  %v3527_v6 = vmul.u32 58254, %v3523_v33  ;;  %v2746_v17 = vadd.f32 %v6814_v63, %v2377_v18  ;;  %5015 = vmatmul.msk.bf16.gmra.mxu2 %vm541_vm2, %v2203_v53  ;;  %v6907_v53 = vld [vmem:[%s5348_s24 + $0x90] sm:$0xff] }
 0x282   : > { %v4314_v24 = vsel %vm4242_vm14, %v4278_v10, %v3488_v30  ;;  %v3528_v42 = vmul.u32 14564, %v3524_v21  ;;  %v3529_v19 = vmul.u32 58254, %v3524_v21  ;;  %v3514_v12 = vadd.s32 %v3513_v29, %v3504_v3  ;;  %5053 = vmatmul.msk.bf16.gmra.mxu0 %vm541_vm2, %v2808_v35  ;;  %v6897_v37 = vpop.f32.mrf.mxu3 }
 0x283   : > { %vm4350_vm15 = vcmp.lt.s32.totalorder %v4314_v24, 16  ;;  %v3530_v11 = vshll.u32 %v3527_v6, 16  ;;  %v3531_v57 = vshrl.u32 %v3527_v6, 16  ;;  %v2982_v41 = vadd.f32 %v2911_v16, %v2746_v17 }
 0x284   : > { %v4386_v38 = vsel %vm4350_vm15, %v2981_v43, 0.0  ;;  %v3532_v31 = vshll.u32 %v3528_v42, 16  ;;  %v3533_v20 = vshrl.u32 %v3528_v42, 16  ;;  %v3515_v15 = vshrl.u32 %v3514_v12, 4  ;;  %v2309_v56 = vpop.f32.mrf.mxu2 }
 0x285   : > { %v4421_v54 = vadd.f32 %v4420_v22, %v4386_v38  ;;  %v4464_v25 = vmul.f32 %v4386_v38, %v4386_v38  ;;  %vm3534_vm0 = vc.u32 %v3526_v5, %v3530_v11  ;;  %v5148_v63 = vpack.c.bf16 %v2982_v41, %v2981_v43  ;;  %v2400_v38 = vld [vmem:[%s5348_s24 + $0xa0] sm:$0x7] }
 0x286   : > { %v3535_v49 = vsel %vm3534_vm0, 1, %v7341_v59  ;;  %v3536_v3 = vadd.s32 %v3530_v11, %v3526_v5  ;;  %v6895_v39 = vor.u32 %v2565_v9, %v2562_v0  ;;  %v3516_v60 = vmul.u32 18, %v3515_v15  ;;  %v1950_v14 = vpop.f32.mrf.mxu1 }
 0x287   : > { %v4499_v16 = vadd.f32 %v4498_v36, %v4464_v25  ;;  %v3537_v46 = vadd.s32 %v3535_v49, %v3529_v19  ;;  %v6900_v22 = vadd.s32 120, %v6050_v58  ;;  %5213 = vst [vmem:[%s5353_s27 + $0x30] sm:$0xff] %v5148_v63   ;;  %v2378_v4 = vadd.f32 %v2309_v56, %v2017_v40  ;;  %v2916_v8 = vpop.f32.mrf.mxu0 }
 0x288   : > { %vm3538_vm1 = vc.u32 %v3536_v3, %v3532_v31  ;;  %v2567_v43 = vsel %vm2406_vm5, %v6833_v27, %v6895_v39  ;;  %v1843_v26 = vrot.slane %v6907_v53, 2  ;;  %v3517_v36 = vsub.s32 %v6827_v47, %v3516_v60 }
 0x289   : > { %v3539_v34 = vsel %vm3538_vm1, 1, %v7341_v59  ;;  %v2018_v30 = vadd.f32 %v1950_v14, %v5863_v28  ;;  %5035 = vmatmul.msk.bf16.gmra.mxu3 %vm541_vm2, %v2567_v43  ;;  %v3552_v48 = vand.u32 65535, %v6900_v22  ;;  %v2747_v35 = vadd.f32 %v6836_v55, %v2378_v4 }
 0x28a   : > { %v3541_v33 = vadd.s32 %v3539_v34, %v3537_v46  ;;  %v3553_v27 = vshrl.u32 %v6900_v22, 16  ;;  %v1844_v47 = vsel %vm1809_vm6, %v1841_v51, %v1843_v26  ;;  %vm4171_vm3 = vcmp.ne.s32.totalorder %v3517_v36, 0 }
 0x28b   : > { %vm4207_vm4 = vcmp.lt.s32.totalorder %v3517_v36, 0  ;;  %v4279_v44 = vadd.s32 18, %v3517_v36  ;;  %v3555_v28 = vmul.u32 14564, %v3552_v48  ;;  %v6922_v21 = vadd.f32 %v2914_v45, %v2747_v35 }
 0x28c   : > { %vm4243_vm8 = vmand %vm4207_vm4, %vm4171_vm3  ;;  %v3542_v0 = vadd.s32 %v3541_v33, %v3531_v57  ;;  %v3556_v9 = vmul.u32 58254, %v3552_v48  ;;  %v6924_v55 = vmul.u32 14564, %v3553_v27  ;;  %v3558_v18 = vmul.u32 58254, %v3553_v27  ;;  %v2311_v5 = vpop.f32.mrf.mxu2  ;;  %v6935_v57 = vpop.f32.mrf.mxu3 }
 0x28d   : > { %v4315_v10 = vsel %vm4243_vm8, %v4279_v44, %v3517_v36  ;;  %v2204_v2 = vrot.slane %v6857_v50, 2  ;;  %v2809_v29 = vrot.slane %v6857_v50, 3  ;;  %v2379_v12 = vadd.f32 %v2311_v5, %v2018_v30 }
 0x28e   : > { %vm4351_vm9 = vcmp.lt.s32.totalorder %v4315_v10, 16  ;;  %v3543_v52 = vadd.s32 %v3542_v0, %v3533_v20  ;;  %v3559_v51 = vshll.u32 %v3556_v9, 16  ;;  %v3560_v32 = vshrl.u32 %v3556_v9, 16  ;;  %v1953_v11 = vpop.f32.mrf.mxu1 }
 0x28f   : > { %v4387_v40 = vsel %vm4351_vm9, %v2982_v41, 0.0  ;;  %v3561_v6 = vshll.u32 %v6924_v55, 16  ;;  %v3562_v24 = vshrl.u32 %v6924_v55, 16  ;;  %v2205_v17 = vsel %vm1809_vm6, %v2202_v1, %v2204_v2  ;;  %v2919_v63 = vpop.f32.mrf.mxu0 }
 0x290   : > { %v4422_v45 = vadd.f32 %v4421_v54, %v4387_v40  ;;  %v4465_v42 = vmul.f32 %v4387_v40, %v4387_v40  ;;  %v3544_v19 = vshrl.u32 %v3543_v52, 4  ;;  %vm3563_vm10 = vc.u32 %v3555_v28, %v3559_v51  ;;  %4929 = vmatmul.msk.bf16.gmra.mxu1 %vm541_vm2, %v1844_v47 }
 0x291   : > { %v3565_v41 = vadd.s32 %v3559_v51, %v3555_v28  ;;  %v2019_v31 = vadd.f32 %v1953_v11, %v5879_v7  ;;  %v2810_v20 = vsel %vm2775_vm7, %v2807_v62, %v2809_v29  ;;  %v2748_v54 = vadd.f32 %v6871_v61, %v2379_v12  ;;  %5016 = vmatmul.msk.bf16.gmra.mxu2 %vm541_vm2, %v2205_v17  ;;  %v2075_v12 = vld [vmem:[%s5348_s24 + $0xa0] sm:$0x3] }
 0x292   : > { %v4500_v25 = vadd.f32 %v4499_v16, %v4465_v42  ;;  %v3545_v1 = vmul.u32 18, %v3544_v19  ;;  %v3564_v15 = vsel %vm3563_vm10, 1, %v7341_v59  ;;  %v6948_v3 = vadd.s32 128, %v6050_v58  ;;  %5054 = vmatmul.msk.bf16.gmra.mxu0 %vm541_vm2, %v2810_v20  ;;  %v7415_v42 = vld [vmem:[#allocation13_spill] sm:$0xff] }
 0x293   : > { %v3566_v49 = vadd.s32 %v3564_v15, %v3558_v18  ;;  %vm3567_vm11 = vc.u32 %v3565_v41, %v3561_v6  ;;  %v2404_v7 = vunpack.c.l.b16 %v2400_v38  ;;  %v6951_v13 = vadd.f32 %v2916_v8, %v2748_v54  ;;  %v7416_v15 = vld [vmem:[#allocation12_spill] sm:$0xff] }
 0x294   : > { %v3546_v60 = vsub.s32 %v6869_v23, %v3545_v1  ;;  %v3568_v62 = vsel %vm3567_vm11, 1, %v7341_v59  ;;  %v6956_v61 = vadd.s32 136, %v6050_v58  ;;  %v3581_v56 = vand.u32 65535, %v6948_v3  ;;  %v2314_v36 = vpop.f32.mrf.mxu2  ;;  %v6969_v51 = vpop.f32.mrf.mxu3 }
 0x295   : > { %v3570_v16 = vadd.s32 %v3568_v62, %v3566_v49  ;;  %v3582_v46 = vshrl.u32 %v6948_v3, 16  ;;  %v6961_v4 = vpack.c.b16 %v2404_v7, %v2404_v7  ;;  %v5153_v14 = vpack.c.bf16 %v6951_v13, %v6922_v21 }
 0x296   : > { %vm4172_vm12 = vcmp.ne.s32.totalorder %v3546_v60, 0  ;;  %vm4208_vm13 = vcmp.lt.s32.totalorder %v3546_v60, 0  ;;  %v4280_v23 = vadd.s32 18, %v3546_v60  ;;  %v3584_v34 = vmul.u32 14564, %v3581_v56  ;;  %v1955_v27 = vpop.f32.mrf.mxu1 }
 0x297   : > { %vm4244_vm14 = vmand %vm4208_vm13, %vm4172_vm12  ;;  %v3571_v43 = vadd.s32 %v3570_v16, %v3560_v32  ;;  %v3585_v30 = vmul.u32 58254, %v3581_v56  ;;  %v3586_v48 = vmul.u32 14564, %v3582_v46  ;;  %5214 = vst [vmem:[%s5353_s27 + $0x38] sm:$0xff] %v5153_v14   ;;  %v2380_v33 = vadd.f32 %v2314_v36, %v2019_v31  ;;  %v2921_v52 = vpop.f32.mrf.mxu0 }
 0x298   : > { %v4316_v35 = vsel %vm4244_vm14, %v4280_v23, %v3546_v60  ;;  %v3587_v8 = vmul.u32 58254, %v3582_v46  ;;  %v2569_v47 = vshrl.u32 %v6961_v4, 16  ;;  %v2020_v19 = vadd.f32 %v1955_v27, %v7415_v42 }
 0x299   : > { %vm4352_vm15 = vcmp.lt.s32.totalorder %v4316_v35, 16  ;;  %v3572_v44 = vadd.s32 %v3571_v43, %v3562_v24  ;;  %v3588_v28 = vshll.u32 %v3585_v30, 16  ;;  %v3589_v0 = vshrl.u32 %v3585_v30, 16 }
 0x29a   : > { %v4388_v9 = vsel %vm4352_vm15, %v6922_v21, 0.0  ;;  %v2749_v55 = vadd.f32 %v6897_v37, %v2380_v33  ;;  %v3590_v10 = vshll.u32 %v3586_v48, 16  ;;  %v3591_v18 = vshrl.u32 %v3586_v48, 16 }
 0x29b   : > { %v4423_v32 = vadd.f32 %v4422_v45, %v4388_v9  ;;  %v4466_v40 = vmul.f32 %v4388_v9, %v4388_v9  ;;  %v3573_v5 = vshrl.u32 %v3572_v44, 4  ;;  %vm3592_vm0 = vc.u32 %v3584_v34, %v3588_v28 }
 0x29c   : > { %v6971_v6 = vadd.f32 %v2919_v63, %v2749_v55  ;;  %v3593_v24 = vsel %vm3592_vm0, 1, %v7341_v59  ;;  %v3594_v17 = vadd.s32 %v3588_v28, %v3584_v34  ;;  %v2571_v38 = vrot.slane %v2569_v47, 2  ;;  %v2316_v54 = vpop.f32.mrf.mxu2  ;;  %v6989_v47 = vpop.f32.mrf.mxu3 }
 0x29d   : > { %v4501_v21 = vadd.f32 %v4500_v25, %v4466_v40  ;;  %v3574_v11 = vmul.u32 18, %v3573_v5  ;;  %v3595_v37 = vadd.s32 %v3593_v24, %v3587_v8  ;;  %v2572_v41 = vshll.u32 %v6961_v4, 16 }
 0x29e   : > { %vm3596_vm1 = vc.u32 %v3594_v17, %v3590_v10  ;;  %v3610_v45 = vand.u32 65535, %v6956_v61  ;;  %v3611_v31 = vshrl.u32 %v6956_v61, 16  ;;  %v1845_v63 = vrot.slane %v7416_v15, 2  ;;  %v1958_v16 = vpop.f32.mrf.mxu1 }
 0x29f   : > { %v3575_v20 = vsub.s32 %v6900_v22, %v3574_v11  ;;  %v3597_v1 = vsel %vm3596_vm1, 1, %v7341_v59  ;;  %v2151_v49 = vunpack.c.l.b16 %v2075_v12  ;;  %v2574_v25 = vrot.slane %v2572_v41, 3  ;;  %v2924_v36 = vpop.f32.mrf.mxu0 }
 0x2a0   : > { %v3599_v7 = vadd.s32 %v3597_v1, %v3595_v37  ;;  %v2381_v60 = vadd.f32 %v2316_v54, %v2020_v19  ;;  %v3613_v62 = vmul.u32 14564, %v3610_v45  ;;  %v3614_v46 = vmul.u32 58254, %v3610_v45 }
 0x2a1   : > { %vm4173_vm3 = vcmp.ne.s32.totalorder %v3575_v20, 0  ;;  %vm4209_vm4 = vcmp.lt.s32.totalorder %v3575_v20, 0  ;;  %v4281_v56 = vadd.s32 18, %v3575_v20  ;;  %v2575_v14 = vor.u32 %v2574_v25, %v2571_v38 }
 0x2a2   : > { %vm4245_vm8 = vmand %vm4209_vm4, %vm4173_vm3  ;;  %v3600_v23 = vadd.s32 %v3599_v7, %v3589_v0  ;;  %v2750_v22 = vadd.f32 %v6935_v57, %v2381_v60  ;;  %v6983_v43 = vmul.u32 14564, %v3611_v31  ;;  %v3616_v30 = vmul.u32 58254, %v3611_v31 }
 0x2a3   : > { %v4317_v34 = vsel %vm4245_vm8, %v4281_v56, %v3575_v20  ;;  %v3617_v48 = vshll.u32 %v3614_v46, 16  ;;  %v3618_v35 = vshrl.u32 %v3614_v46, 16  ;;  %v2576_v8 = vsel %vm2406_vm5, %v6895_v39, %v2575_v14 }
 0x2a4   : > { %vm4353_vm9 = vcmp.lt.s32.totalorder %v4317_v34, 16  ;;  %v3601_v33 = vadd.s32 %v3600_v23, %v3591_v18  ;;  %v6987_v27 = vadd.f32 %v2921_v52, %v2750_v22  ;;  %5036 = vmatmul.msk.bf16.gmra.mxu3 %vm541_vm2, %v2576_v8  ;;  %v3619_v57 = vshll.u32 %v6983_v43, 16  ;;  %v7417_v52 = vld [vmem:[#allocation14_spill] sm:$0xff]  ;;  %v2319_v5 = vpop.f32.mrf.mxu2  ;;  %v7027_v60 = vpop.f32.mrf.mxu3 }
 0x2a5   : > { %v4389_v44 = vsel %vm4353_vm9, %v6951_v13, 0.0  ;;  %v3620_v28 = vshrl.u32 %v6983_v43, 16  ;;  %vm3621_vm10 = vc.u32 %v3613_v62, %v3617_v48  ;;  %v3623_v18 = vadd.s32 %v3617_v48, %v3613_v62 }
 0x2a6   : > { %v4424_v0 = vadd.f32 %v4423_v32, %v4389_v44  ;;  %v4467_v9 = vmul.f32 %v4389_v44, %v4389_v44  ;;  %v3602_v55 = vshrl.u32 %v3601_v33, 4  ;;  %v5158_v39 = vpack.c.bf16 %v6987_v27, %v6971_v6  ;;  %v1960_v19 = vpop.f32.mrf.mxu1 }
 0x2a7   : > { %v3622_v10 = vsel %vm3621_vm10, 1, %v7341_v59  ;;  %v2021_v40 = vadd.f32 %v1958_v16, %v7417_v52  ;;  %v1846_v13 = vsel %vm1809_vm6, %v1843_v26, %v1845_v63  ;;  %v2170_v32 = vpack.c.b16 %v2151_v49, %v2151_v49  ;;  %v2926_v45 = vpop.f32.mrf.mxu0 }
 0x2a8   : > { %v4502_v24 = vadd.f32 %v4501_v21, %v4467_v9  ;;  %v3603_v17 = vmul.u32 18, %v3602_v55  ;;  %5215 = vst [vmem:[%s5353_s27 + $0x40] sm:$0xff] %v5158_v39   ;;  %v3624_v42 = vadd.s32 %v3622_v10, %v3616_v30  ;;  %4930 = vmatmul.msk.bf16.gmra.mxu1 %vm541_vm2, %v1846_v13  ;;  %vm3625_vm5 = vc.u32 %v3623_v18, %v3619_v57  ;;  %v7418_v21 = vld [vmem:[#allocation15_spill] sm:$0xff] }
 0x2a9   : > { %v2811_v12 = vrot.slane %v6961_v4, 3  ;;  %v2382_v11 = vadd.f32 %v2319_v5, %v2021_v40  ;;  %v7006_v37 = vadd.s32 144, %v6050_v58  ;;  %v3626_v26 = vsel %vm3625_vm5, 1, %v7341_v59 }
 0x2aa   : > { %v3604_v53 = vsub.s32 %v6948_v3, %v3603_v17  ;;  %v2206_v38 = vrot.slane %v2170_v32, 2  ;;  %v2022_v41 = vadd.f32 %v1960_v19, %v7418_v21  ;;  %v3628_v31 = vadd.s32 %v3626_v26, %v3624_v42 }
 0x2ab   : > { %v2812_v20 = vsel %vm2775_vm7, %v2809_v29, %v2811_v12  ;;  %v2751_v1 = vadd.f32 %v6969_v51, %v2382_v11  ;;  %v3639_v4 = vand.u32 65535, %v7006_v37  ;;  %v3640_v29 = vshrl.u32 %v7006_v37, 16 }
 0x2ac   : > { %vm4174_vm11 = vcmp.ne.s32.totalorder %v3604_v53, 0  ;;  %vm4210_vm12 = vcmp.lt.s32.totalorder %v3604_v53, 0  ;;  %v4282_v54 = vadd.s32 18, %v3604_v53  ;;  %v2207_v3 = vsel %vm1809_vm6, %v2204_v2, %v2206_v38  ;;  %5055 = vmatmul.msk.bf16.gmra.mxu0 %vm541_vm2, %v2812_v20  ;;  %v2321_v56 = vpop.f32.mrf.mxu2  ;;  %v2695_v26 = vpop.f32.mrf.mxu3 }
 0x2ad   : > { %vm4246_vm13 = vmand %vm4210_vm12, %vm4174_vm11  ;;  %v3629_v15 = vadd.s32 %v3628_v31, %v3618_v35  ;;  %5017 = vmatmul.msk.bf16.gmra.mxu2 %vm541_vm2, %v2207_v3  ;;  %v7021_v63 = vadd.f32 %v2924_v36, %v2751_v1  ;;  %v3642_v51 = vmul.u32 14564, %v3639_v4  ;;  %v3643_v7 = vmul.u32 58254, %v3639_v4 }
 0x2ae   : > { %v4318_v49 = vsel %vm4246_vm13, %v4282_v54, %v3604_v53  ;;  %v7025_v25 = vadd.s32 152, %v6050_v58  ;;  %v7030_v50 = vadd.s32 160, %v6050_v58  ;;  %v3644_v62 = vmul.u32 14564, %v3640_v29  ;;  %v1963_v43 = vpop.f32.mrf.mxu1 }
 0x2af   : > { %vm4354_vm6 = vcmp.lt.s32.totalorder %v4318_v49, 16  ;;  %v3630_v2 = vadd.s32 %v3629_v15, %v3620_v28  ;;  %v3645_v16 = vmul.u32 58254, %v3640_v29  ;;  %v3646_v23 = vshll.u32 %v3643_v7, 16  ;;  %v2929_v44 = vpop.f32.mrf.mxu0 }
 0x2b0   : > { %v4390_v46 = vsel %vm4354_vm6, %v6971_v6, 0.0  ;;  %v3647_v14 = vshrl.u32 %v3643_v7, 16  ;;  %v2383_v22 = vadd.f32 %v2321_v56, %v2022_v41  ;;  %v3648_v48 = vshll.u32 %v3644_v62, 16  ;;  %v7419_v41 = vld [vmem:[#allocation16_spill] sm:$0xff] }
 0x2b1   : > { %v4425_v36 = vadd.f32 %v4424_v0, %v4390_v46  ;;  %v4468_v34 = vmul.f32 %v4390_v46, %v4390_v46  ;;  %v3631_v30 = vshrl.u32 %v3630_v2, 4  ;;  %v3649_v35 = vshrl.u32 %v3644_v62, 16 }
 0x2b2   : > { %vm3650_vm2 = vc.u32 %v3642_v51, %v3646_v23  ;;  %v3652_v33 = vadd.s32 %v3646_v23, %v3642_v51  ;;  %v2752_v8 = vadd.f32 %v6989_v47, %v2383_v22  ;;  %v3668_v6 = vand.u32 65535, %v7025_v25  ;;  %v7420_v22 = vld [vmem:[#allocation17_spill] sm:$0xff] }
 0x2b3   : > { %v4503_v57 = vadd.f32 %v4502_v24, %v4468_v34  ;;  %v3632_v28 = vmul.u32 18, %v3631_v30  ;;  %v3651_v9 = vsel %vm3650_vm2, 1, %v7341_v59  ;;  %v3669_v0 = vshrl.u32 %v7025_v25, 16 }
 0x2b4   : > { %v3653_v55 = vadd.s32 %v3651_v9, %v3645_v16  ;;  %vm3654_vm7 = vc.u32 %v3652_v33, %v3648_v48  ;;  %v7036_v39 = vadd.f32 %v2926_v45, %v2752_v8  ;;  %v3671_v52 = vmul.u32 14564, %v3668_v6  ;;  %v2324_v32 = vpop.f32.mrf.mxu2 }
 0x2b5   : > { %v3633_v10 = vsub.s32 %v6956_v61, %v3632_v28  ;;  %v3655_v18 = vsel %vm3654_vm7, 1, %v7341_v59  ;;  %v3672_v47 = vmul.u32 58254, %v3668_v6  ;;  %v3673_v5 = vmul.u32 14564, %v3669_v0 }
 0x2b6   : > { %v3657_v40 = vadd.s32 %v3655_v18, %v3653_v55  ;;  %v5163_v13 = vpack.c.bf16 %v7036_v39, %v7021_v63  ;;  %v3674_v24 = vmul.u32 58254, %v3669_v0  ;;  %v1965_v53 = vpop.f32.mrf.mxu1  ;;  %v2023_v45 = vadd.f32 %v1963_v43, %v7419_v41 }
 0x2b7   : > { %vm4175_vm14 = vcmp.ne.s32.totalorder %v3633_v10, 0  ;;  %vm4211_vm15 = vcmp.lt.s32.totalorder %v3633_v10, 0  ;;  %v4283_v17 = vadd.s32 18, %v3633_v10  ;;  %v3675_v42 = vshll.u32 %v3672_v47, 16  ;;  %v2931_v4 = vpop.f32.mrf.mxu0 }
 0x2b8   : > { %vm4247_vm0 = vmand %vm4211_vm15, %vm4175_vm14  ;;  %v3658_v19 = vadd.s32 %v3657_v40, %v3647_v14  ;;  %5216 = vst [vmem:[%s5353_s27 + $0x48] sm:$0xff] %v5163_v13   ;;  %v3676_v12 = vshrl.u32 %v3672_v47, 16  ;;  %v3677_v61 = vshll.u32 %v3673_v5, 16  ;;  %v3678_v11 = vshrl.u32 %v3673_v5, 16 }
 0x2b9   : > { %v4319_v38 = vsel %vm4247_vm0, %v4283_v17, %v3633_v10  ;;  %vm3679_vm1 = vc.u32 %v3671_v52, %v3675_v42  ;;  %v3681_v21 = vadd.s32 %v3675_v42, %v3671_v52  ;;  %v3697_v1 = vand.u32 65535, %v7030_v50 }
 0x2ba   : > { %vm4355_vm3 = vcmp.lt.s32.totalorder %v4319_v38, 16  ;;  %v3659_v31 = vadd.s32 %v3658_v19, %v3649_v35  ;;  %v3680_v20 = vsel %vm3679_vm1, 1, %v7341_v59  ;;  %v2384_v15 = vadd.f32 %v2324_v32, %v2023_v45 }
 0x2bb   : > { %v4391_v54 = vsel %vm4355_vm3, %v6987_v27, 0.0  ;;  %v3682_v3 = vadd.s32 %v3680_v20, %v3674_v24  ;;  %vm3683_vm4 = vc.u32 %v3681_v21, %v3677_v61  ;;  %v3698_v16 = vshrl.u32 %v7030_v50, 16 }
 0x2bc   : > { %v4426_v29 = vadd.f32 %v4425_v36, %v4391_v54  ;;  %v4469_v51 = vmul.f32 %v4391_v54, %v4391_v54  ;;  %v3660_v49 = vshrl.u32 %v3659_v31, 4  ;;  %v3684_v7 = vsel %vm3683_vm4, 1, %v7341_v59  ;;  %v2326_v48 = vpop.f32.mrf.mxu2 }
 0x2bd   : > { %v3686_v2 = vadd.s32 %v3684_v7, %v3682_v3  ;;  %v2753_v62 = vadd.f32 %v7027_v60, %v2384_v15  ;;  %v3700_v56 = vmul.u32 14564, %v3697_v1  ;;  %v3701_v14 = vmul.u32 58254, %v3697_v1 }
 0x2be   : > { %v4504_v46 = vadd.f32 %v4503_v57, %v4469_v51  ;;  %v3661_v23 = vmul.u32 18, %v3660_v49  ;;  %v2024_v43 = vadd.f32 %v1965_v53, %v7420_v22  ;;  %v3702_v30 = vmul.u32 14564, %v3698_v16  ;;  %v1968_v60 = vpop.f32.mrf.mxu1  ;;  %v7421_v49 = vld [vmem:[#allocation18_spill] sm:$0xff] }
 0x2bf   : > { %v3687_v27 = vadd.s32 %v3686_v2, %v3676_v12  ;;  %v7052_v34 = vadd.f32 %v2929_v44, %v2753_v62  ;;  %v3703_v36 = vmul.u32 58254, %v3698_v16  ;;  %v3704_v33 = vshll.u32 %v3701_v14, 16  ;;  %v2698_v44 = vpop.f32.mrf.mxu3  ;;  %v2934_v24 = vpop.f32.mrf.mxu0 }
 0x2c0   : > { %v3662_v35 = vsub.s32 %v7006_v37, %v3661_v23  ;;  %v3705_v8 = vshrl.u32 %v3701_v14, 16  ;;  %v2385_v28 = vadd.f32 %v2326_v48, %v2024_v43  ;;  %v3706_v6 = vshll.u32 %v3702_v30, 16 }
 0x2c1   : > { %v3688_v9 = vadd.s32 %v3687_v27, %v3678_v11  ;;  %v3707_v55 = vshrl.u32 %v3702_v30, 16  ;;  %v7056_v57 = vadd.s32 168, %v6050_v58  ;;  %vm3708_vm10 = vc.u32 %v3700_v56, %v3704_v33 }
 0x2c2   : > { %vm4176_vm8 = vcmp.ne.s32.totalorder %v3662_v35, 0  ;;  %vm4212_vm9 = vcmp.lt.s32.totalorder %v3662_v35, 0  ;;  %v4284_v0 = vadd.s32 18, %v3662_v35  ;;  %v3709_v18 = vsel %vm3708_vm10, 1, %v7341_v59 }
 0x2c3   : > { %vm4248_vm5 = vmand %vm4212_vm9, %vm4176_vm8  ;;  %v3689_v10 = vshrl.u32 %v3688_v9, 4  ;;  %v3710_v37 = vadd.s32 %v3704_v33, %v3700_v56  ;;  %v2754_v52 = vadd.f32 %v2695_v26, %v2385_v28  ;;  %v3711_v40 = vadd.s32 %v3709_v18, %v3703_v36 }
 0x2c4   : > { %v4320_v47 = vsel %vm4248_vm5, %v4284_v0, %v3662_v35  ;;  %v3726_v13 = vand.u32 65535, %v7056_v57  ;;  %v3727_v5 = vshrl.u32 %v7056_v57, 16  ;;  %v2329_v21 = vpop.f32.mrf.mxu2  ;;  %v2025_v7 = vadd.f32 %v1968_v60, %v7421_v49 }
 0x2c5   : > { %vm4356_vm11 = vcmp.lt.s32.totalorder %v4320_v47, 16  ;;  %v3690_v17 = vmul.u32 18, %v3689_v10  ;;  %vm3712_vm12 = vc.u32 %v3710_v37, %v3706_v6  ;;  %v7061_v42 = vadd.f32 %v2931_v4, %v2754_v52  ;;  %v7422_v6 = vld [vmem:[#allocation19_spill] sm:$0xff] }
 0x2c6   : > { %v4392_v32 = vsel %vm4356_vm11, %v7021_v63, 0.0  ;;  %v3713_v19 = vsel %vm3712_vm12, 1, %v7341_v59  ;;  %v3729_v12 = vmul.u32 14564, %v3726_v13  ;;  %v3730_v61 = vmul.u32 58254, %v3726_v13  ;;  %v1970_v1 = vpop.f32.mrf.mxu1 }
 0x2c7   : > { %v4427_v11 = vadd.f32 %v4426_v29, %v4392_v32  ;;  %v4470_v53 = vmul.f32 %v4392_v32, %v4392_v32  ;;  %v3691_v26 = vsub.s32 %v7025_v25, %v3690_v17  ;;  %v3715_v38 = vadd.s32 %v3713_v19, %v3711_v40  ;;  %v2700_v56 = vpop.f32.mrf.mxu3  ;;  %v2936_v36 = vpop.f32.mrf.mxu0 }
 0x2c8   : > { %v5168_v41 = vpack.c.bf16 %v7061_v42, %v7052_v34  ;;  %v3731_v45 = vmul.u32 14564, %v3727_v5  ;;  %v3732_v31 = vmul.u32 58254, %v3727_v5  ;;  %v3733_v20 = vshll.u32 %v3730_v61, 16 }
 0x2c9   : > { %v4505_v4 = vadd.f32 %v4504_v46, %v4470_v53  ;;  %vm4177_vm13 = vcmp.ne.s32.totalorder %v3691_v26, 0  ;;  %vm4213_vm6 = vcmp.lt.s32.totalorder %v3691_v26, 0  ;;  %v4285_v63 = vadd.s32 18, %v3691_v26 }
 0x2ca   : > { %vm4249_vm2 = vmand %vm4213_vm6, %vm4177_vm13  ;;  %v3716_v54 = vadd.s32 %v3715_v38, %v3705_v8  ;;  %5217 = vst [vmem:[%s5353_s27 + $0x50] sm:$0xff] %v5168_v41   ;;  %v3734_v3 = vshrl.u32 %v3730_v61, 16  ;;  %v3735_v15 = vshll.u32 %v3731_v45, 16  ;;  %v3736_v29 = vshrl.u32 %v3731_v45, 16 }
 0x2cb   : > { %v4321_v25 = vsel %vm4249_vm2, %v4285_v63, %v3691_v26  ;;  %vm3737_vm7 = vc.u32 %v3729_v12, %v3733_v20  ;;  %v3739_v51 = vadd.s32 %v3733_v20, %v3729_v12  ;;  %v7072_v16 = vadd.s32 176, %v6050_v58 }
 0x2cc   : > { %vm4357_vm14 = vcmp.lt.s32.totalorder %v4321_v25, 16  ;;  %v3717_v2 = vadd.s32 %v3716_v54, %v3707_v55  ;;  %v3738_v62 = vsel %vm3737_vm7, 1, %v7341_v59  ;;  %v2386_v14 = vadd.f32 %v2329_v21, %v2025_v7  ;;  %v2331_v28 = vpop.f32.mrf.mxu2 }
 0x2cd   : > { %v4393_v46 = vsel %vm4357_vm14, %v7036_v39, 0.0  ;;  %v3740_v23 = vadd.s32 %v3738_v62, %v3732_v31  ;;  %vm3741_vm15 = vc.u32 %v3739_v51, %v3735_v15  ;;  %v3755_v33 = vand.u32 65535, %v7072_v16 }
 0x2ce   : > { %v4428_v22 = vadd.f32 %v4427_v11, %v4393_v46  ;;  %v4471_v43 = vmul.f32 %v4393_v46, %v4393_v46  ;;  %v3718_v27 = vshrl.u32 %v3717_v2, 4  ;;  %v3742_v30 = vsel %vm3741_vm15, 1, %v7341_v59  ;;  %v1973_v0 = vpop.f32.mrf.mxu1 }
 0x2cf   : > { %v3744_v48 = vadd.s32 %v3742_v30, %v3740_v23  ;;  %v2755_v35 = vadd.f32 %v2698_v44, %v2386_v14  ;;  %v3756_v8 = vshrl.u32 %v7072_v16, 16  ;;  %v2026_v39 = vadd.f32 %v1970_v1, %v7422_v6  ;;  %v2703_v41 = vpop.f32.mrf.mxu3  ;;  %v7423_v30 = vld [vmem:[#allocation20_spill] sm:$0xff] }
 0x2d0   : > { %v4506_v60 = vadd.f32 %v4505_v4, %v4471_v43  ;;  %v3719_v9 = vmul.u32 18, %v3718_v27  ;;  %v7080_v55 = vadd.s32 184, %v6050_v58  ;;  %v3758_v37 = vmul.u32 14564, %v3755_v33 }
 0x2d1   : > { %v3745_v10 = vadd.s32 %v3744_v48, %v3734_v3  ;;  %v7082_v18 = vadd.f32 %v2934_v24, %v2755_v35  ;;  %v3759_v52 = vmul.u32 58254, %v3755_v33  ;;  %v3760_v47 = vmul.u32 14564, %v3756_v8  ;;  %v2939_v3 = vpop.f32.mrf.mxu0 }
 0x2d2   : > { %v3720_v44 = vsub.s32 %v7030_v50, %v3719_v9  ;;  %v3761_v40 = vmul.u32 58254, %v3756_v8  ;;  %v2387_v13 = vadd.f32 %v2331_v28, %v2026_v39  ;;  %v3784_v19 = vand.u32 65535, %v7080_v55 }
 0x2d3   : > { %v3746_v5 = vadd.s32 %v3745_v10, %v3736_v29  ;;  %v3762_v17 = vshll.u32 %v3759_v52, 16  ;;  %v3763_v32 = vshrl.u32 %v3759_v52, 16  ;;  %v3764_v61 = vshll.u32 %v3760_v47, 16 }
 0x2d4   : > { %vm4178_vm0 = vcmp.ne.s32.totalorder %v3720_v44, 0  ;;  %vm4214_vm1 = vcmp.lt.s32.totalorder %v3720_v44, 0  ;;  %v4286_v12 = vadd.s32 18, %v3720_v44  ;;  %v3765_v24 = vshrl.u32 %v3760_v47, 16  ;;  %v2334_v20 = vpop.f32.mrf.mxu2 }
 0x2d5   : > { %vm4250_vm3 = vmand %vm4214_vm1, %vm4178_vm0  ;;  %v3747_v11 = vshrl.u32 %v3746_v5, 4  ;;  %vm3766_vm4 = vc.u32 %v3758_v37, %v3762_v17  ;;  %v3768_v53 = vadd.s32 %v3762_v17, %v3758_v37  ;;  %v2756_v38 = vadd.f32 %v2700_v56, %v2387_v13 }
 0x2d6   : > { %v4322_v26 = vsel %vm4250_vm3, %v4286_v12, %v3720_v44  ;;  %v3767_v50 = vsel %vm3766_vm4, 1, %v7341_v59  ;;  %v3785_v21 = vshrl.u32 %v7080_v55, 16  ;;  %v3787_v54 = vmul.u32 14564, %v3784_v19  ;;  %v1975_v49 = vpop.f32.mrf.mxu1 }
 0x2d7   : > { %vm4358_vm8 = vcmp.lt.s32.totalorder %v4322_v26, 16  ;;  %v3748_v45 = vmul.u32 18, %v3747_v11  ;;  %v3769_v31 = vadd.s32 %v3767_v50, %v3761_v40  ;;  %vm3770_vm9 = vc.u32 %v3768_v53, %v3764_v61 }
 0x2d8   : > { %v4394_v1 = vsel %vm4358_vm8, %v7052_v34, 0.0  ;;  %v3771_v4 = vsel %vm3770_vm9, 1, %v7341_v59  ;;  %v7090_v63 = vadd.f32 %v2936_v36, %v2756_v38  ;;  %v3788_v2 = vmul.u32 58254, %v3784_v19  ;;  %v7424_v38 = vld [vmem:[#allocation21_spill] sm:$0xff] }
 0x2d9   : > { %v4429_v15 = vadd.f32 %v4428_v22, %v4394_v1  ;;  %v4472_v29 = vmul.f32 %v4394_v1, %v4394_v1  ;;  %v3749_v25 = vsub.s32 %v7056_v57, %v3748_v45  ;;  %v3773_v51 = vadd.s32 %v3771_v4, %v3769_v31 }
 0x2da   : > { %v5173_v7 = vpack.c.bf16 %v7090_v63, %v7082_v18  ;;  %v3789_v62 = vmul.u32 14564, %v3785_v21  ;;  %v3790_v56 = vmul.u32 58254, %v3785_v21  ;;  %v3791_v14 = vshll.u32 %v3788_v2, 16 }
 0x2db   : > { %v4507_v34 = vadd.f32 %v4506_v60, %v4472_v29  ;;  %vm4179_vm10 = vcmp.ne.s32.totalorder %v3749_v25, 0  ;;  %vm4215_vm5 = vcmp.lt.s32.totalorder %v3749_v25, 0  ;;  %v4287_v46 = vadd.s32 18, %v3749_v25 }
 0x2dc   : > { %vm4251_vm11 = vmand %vm4215_vm5, %vm4179_vm10  ;;  %v3774_v23 = vadd.s32 %v3773_v51, %v3763_v32  ;;  %5218 = vst [vmem:[%s5353_s27 + $0x58] sm:$0xff] %v5173_v7   ;;  %v3792_v22 = vshrl.u32 %v3788_v2, 16  ;;  %v3793_v43 = vshll.u32 %v3789_v62, 16  ;;  %v3794_v57 = vshrl.u32 %v3789_v62, 16  ;;  %v2336_v6 = vpop.f32.mrf.mxu2  ;;  %v2941_v32 = vpop.f32.mrf.mxu0 }
 0x2dd   : > { %v4323_v27 = vsel %vm4251_vm11, %v4287_v46, %v3749_v25  ;;  %v2027_v36 = vadd.f32 %v1973_v0, %v7423_v30  ;;  %v7098_v48 = vadd.s32 192, %v6050_v58  ;;  %vm3795_vm13 = vc.u32 %v3787_v54, %v3791_v14  ;;  %v2705_v0 = vpop.f32.mrf.mxu3 }
 0x2de   : > { %vm4359_vm12 = vcmp.lt.s32.totalorder %v4323_v27, 16  ;;  %v3775_v35 = vadd.s32 %v3774_v23, %v3765_v24  ;;  %v3797_v33 = vadd.s32 %v3791_v14, %v3787_v54  ;;  %v3796_v28 = vsel %vm3795_vm13, 1, %v7341_v59  ;;  %v1978_v24 = vpop.f32.mrf.mxu1 }
 0x2df   : > { %v4395_v8 = vsel %vm4359_vm12, %v7061_v42, 0.0  ;;  %v2388_v60 = vadd.f32 %v2334_v20, %v2027_v36  ;;  %v3813_v9 = vand.u32 65535, %v7098_v48  ;;  %v3798_v52 = vadd.s32 %v3796_v28, %v3790_v56 }
 0x2e0   : > { %v4430_v39 = vadd.f32 %v4429_v15, %v4395_v8  ;;  %v4473_v10 = vmul.f32 %v4395_v8, %v4395_v8  ;;  %v3776_v37 = vshrl.u32 %v3775_v35, 4  ;;  %vm3799_vm6 = vc.u32 %v3797_v33, %v3793_v43 }
 0x2e1   : > { %v2757_v44 = vadd.f32 %v2703_v41, %v2388_v60  ;;  %v3814_v47 = vshrl.u32 %v7098_v48, 16  ;;  %v3816_v40 = vmul.u32 14564, %v3813_v9  ;;  %v3800_v42 = vsel %vm3799_vm6, 1, %v7341_v59 }
 0x2e2   : > { %v4508_v13 = vadd.f32 %v4507_v34, %v4473_v10  ;;  %v3777_v5 = vmul.u32 18, %v3776_v37  ;;  %v3817_v17 = vmul.u32 58254, %v3813_v9  ;;  %v3802_v19 = vadd.s32 %v3800_v42, %v3798_v52 }
 0x2e3   : > { %v7105_v12 = vadd.f32 %v2939_v3, %v2757_v44  ;;  %v3818_v61 = vmul.u32 14564, %v3814_v47  ;;  %v3819_v11 = vmul.u32 58254, %v3814_v47  ;;  %v2028_v21 = vadd.f32 %v1975_v49, %v7424_v38  ;;  %v7425_v47 = vld [vmem:[#allocation22_spill] sm:$0xff] }
 0x2e4   : > { %v3778_v53 = vsub.s32 %v7072_v16, %v3777_v5  ;;  %v3820_v26 = vshll.u32 %v3817_v17, 16  ;;  %v3821_v50 = vshrl.u32 %v3817_v17, 16  ;;  %v3803_v41 = vadd.s32 %v3802_v19, %v3792_v22  ;;  %v2339_v15 = vpop.f32.mrf.mxu2  ;;  %v2944_v33 = vpop.f32.mrf.mxu0 }
 0x2e5   : > { %v3822_v45 = vshll.u32 %v3818_v61, 16  ;;  %v3823_v31 = vshrl.u32 %v3818_v61, 16  ;;  %v7110_v20 = vadd.s32 200, %v6050_v58  ;;  %v2389_v16 = vadd.f32 %v2336_v6, %v2028_v21  ;;  %v2708_v23 = vpop.f32.mrf.mxu3 }
 0x2e6   : > { %vm4180_vm2 = vcmp.ne.s32.totalorder %v3778_v53, 0  ;;  %vm4216_vm7 = vcmp.lt.s32.totalorder %v3778_v53, 0  ;;  %v4288_v1 = vadd.s32 18, %v3778_v53  ;;  %vm3824_vm14 = vc.u32 %v3816_v40, %v3820_v26  ;;  %v1980_v9 = vpop.f32.mrf.mxu1 }
 0x2e7   : > { %vm4252_vm15 = vmand %vm4216_vm7, %vm4180_vm2  ;;  %v3804_v4 = vadd.s32 %v3803_v41, %v3794_v57  ;;  %v3825_v54 = vsel %vm3824_vm14, 1, %v7341_v59  ;;  %v3826_v3 = vadd.s32 %v3820_v26, %v3816_v40  ;;  %v3842_v51 = vand.u32 65535, %v7110_v20 }
 0x2e8   : > { %v4324_v29 = vsel %vm4252_vm15, %v4288_v1, %v3778_v53  ;;  %v3827_v25 = vadd.s32 %v3825_v54, %v3819_v11  ;;  %v3843_v49 = vshrl.u32 %v7110_v20, 16  ;;  %v2758_v2 = vadd.f32 %v2705_v0, %v2389_v16 }
 0x2e9   : > { %vm4360_vm0 = vcmp.lt.s32.totalorder %v4324_v29, 16  ;;  %v3805_v7 = vshrl.u32 %v3804_v4, 4  ;;  %vm3828_vm1 = vc.u32 %v3826_v3, %v3822_v45  ;;  %v3845_v34 = vmul.u32 14564, %v3842_v51 }
 0x2ea   : > { %v4396_v62 = vsel %vm4360_vm0, %v7082_v18, 0.0  ;;  %v3829_v56 = vsel %vm3828_vm1, 1, %v7341_v59  ;;  %v3846_v46 = vmul.u32 58254, %v3842_v51  ;;  %v7117_v57 = vadd.f32 %v2941_v32, %v2758_v2  ;;  %v7426_v32 = vld [vmem:[#allocation23_spill] sm:$0xff] }
 0x2eb   : > { %v4431_v14 = vadd.f32 %v4430_v39, %v4396_v62  ;;  %v4474_v22 = vmul.f32 %v4396_v62, %v4396_v62  ;;  %v3806_v43 = vmul.u32 18, %v3805_v7  ;;  %v3831_v27 = vadd.s32 %v3829_v56, %v3827_v25 }
 0x2ec   : > { %v3847_v30 = vmul.u32 14564, %v3843_v49  ;;  %v3848_v36 = vmul.u32 58254, %v3843_v49  ;;  %v3849_v35 = vshll.u32 %v3846_v46, 16  ;;  %v3850_v60 = vshrl.u32 %v3846_v46, 16  ;;  %v2946_v25 = vpop.f32.mrf.mxu0 }
 0x2ed   : > { %v4509_v8 = vadd.f32 %v4508_v13, %v4474_v22  ;;  %v3807_v28 = vsub.s32 %v7080_v55, %v3806_v43  ;;  %v3832_v18 = vadd.s32 %v3831_v27, %v3821_v50  ;;  %v5178_v6 = vpack.c.bf16 %v7117_v57, %v7105_v12  ;;  %v2341_v13 = vpop.f32.mrf.mxu2 }
 0x2ee   : > { %v3851_v39 = vshll.u32 %v3847_v30, 16  ;;  %v3852_v10 = vshrl.u32 %v3847_v30, 16  ;;  %vm3853_vm3 = vc.u32 %v3845_v34, %v3849_v35  ;;  %v3855_v44 = vadd.s32 %v3849_v35, %v3845_v34  ;;  %v1983_v7 = vpop.f32.mrf.mxu1 }
 0x2ef   : > { %vm4181_vm4 = vcmp.ne.s32.totalorder %v3807_v28, 0  ;;  %vm4217_vm8 = vcmp.lt.s32.totalorder %v3807_v28, 0  ;;  %v4289_v37 = vadd.s32 18, %v3807_v28  ;;  %v3833_v52 = vadd.s32 %v3832_v18, %v3823_v31  ;;  %5219 = vst [vmem:[%s5353_s27 + $0x60] sm:$0xff] %v5178_v6   ;;  %v2710_v31 = vpop.f32.mrf.mxu3 }
 0x2f0   : > { %vm4253_vm9 = vmand %vm4217_vm8, %vm4181_vm4  ;;  %v3854_v0 = vsel %vm3853_vm3, 1, %v7341_v59  ;;  %v2029_v55 = vadd.f32 %v1978_v24, %v7425_v47  ;;  %v7126_v40 = vadd.s32 208, %v6050_v58  ;;  %v2030_v19 = vadd.f32 %v1980_v9, %v7426_v32 }
 0x2f1   : > { %v4325_v5 = vsel %vm4253_vm9, %v4289_v37, %v3807_v28  ;;  %v3834_v42 = vshrl.u32 %v3833_v52, 4  ;;  %v3856_v17 = vadd.s32 %v3854_v0, %v3848_v36  ;;  %vm3857_vm5 = vc.u32 %v3855_v44, %v3851_v39 }
 0x2f2   : > { %vm4361_vm10 = vcmp.lt.s32.totalorder %v4325_v5, 16  ;;  %v2390_v61 = vadd.f32 %v2339_v15, %v2029_v55  ;;  %v3871_v11 = vand.u32 65535, %v7126_v40  ;;  %v3858_v50 = vsel %vm3857_vm5, 1, %v7341_v59 }
 0x2f3   : > { %v4397_v53 = vsel %vm4361_vm10, %v7090_v63, 0.0  ;;  %v3835_v26 = vmul.u32 18, %v3834_v42  ;;  %v3872_v24 = vshrl.u32 %v7126_v40, 16  ;;  %v3860_v41 = vadd.s32 %v3858_v50, %v3856_v17 }
 0x2f4   : > { %v4432_v38 = vadd.f32 %v4431_v14, %v4397_v53  ;;  %v4475_v21 = vmul.f32 %v4397_v53, %v4397_v53  ;;  %v2759_v45 = vadd.f32 %v2708_v23, %v2390_v61  ;;  %v3874_v4 = vmul.u32 14564, %v3871_v11  ;;  %v2949_v32 = vpop.f32.mrf.mxu0 }
 0x2f5   : > { %v3836_v1 = vsub.s32 %v7098_v48, %v3835_v26  ;;  %v3875_v54 = vmul.u32 58254, %v3871_v11  ;;  %v3876_v3 = vmul.u32 14564, %v3872_v24  ;;  %v3861_v15 = vadd.s32 %v3860_v41, %v3850_v60  ;;  %v2344_v27 = vpop.f32.mrf.mxu2 }
 0x2f6   : > { %v4510_v16 = vadd.f32 %v4509_v8, %v4475_v21  ;;  %v7134_v29 = vadd.f32 %v2944_v33, %v2759_v45  ;;  %v3877_v63 = vmul.u32 58254, %v3872_v24  ;;  %v2391_v23 = vadd.f32 %v2341_v13, %v2030_v19  ;;  %v1985_v53 = vpop.f32.mrf.mxu1 }
 0x2f7   : > { %vm4182_vm11 = vcmp.ne.s32.totalorder %v3836_v1, 0  ;;  %vm4218_vm12 = vcmp.lt.s32.totalorder %v3836_v1, 0  ;;  %v4290_v51 = vadd.s32 18, %v3836_v1  ;;  %v3878_v49 = vshll.u32 %v3875_v54, 16  ;;  %v2713_v0 = vpop.f32.mrf.mxu3 }
 0x2f8   : > { %vm4254_vm13 = vmand %vm4218_vm12, %vm4182_vm11  ;;  %v3862_v2 = vadd.s32 %v3861_v15, %v3852_v10  ;;  %v3879_v62 = vshrl.u32 %v3875_v54, 16  ;;  %v3880_v56 = vshll.u32 %v3876_v3, 16  ;;  %v3881_v34 = vshrl.u32 %v3876_v3, 16 }
 0x2f9   : > { %v4326_v48 = vsel %vm4254_vm13, %v4290_v51, %v3836_v1  ;;  %vm3882_vm6 = vc.u32 %v3874_v4, %v3878_v49  ;;  %v3884_v46 = vadd.s32 %v3878_v49, %v3874_v4  ;;  %v7138_v43 = vadd.s32 216, %v6050_v58 }
 0x2fa   : > { %vm4362_vm2 = vcmp.lt.s32.totalorder %v4326_v48, 16  ;;  %v3863_v14 = vshrl.u32 %v3862_v2, 4  ;;  %v3883_v22 = vsel %vm3882_vm6, 1, %v7341_v59  ;;  %v2760_v35 = vadd.f32 %v2710_v31, %v2391_v23 }
 0x2fb   : > { %v4398_v30 = vsel %vm4362_vm2, %v7105_v12, 0.0  ;;  %v3885_v36 = vadd.s32 %v3883_v22, %v3877_v63  ;;  %vm3886_vm7 = vc.u32 %v3884_v46, %v3880_v56  ;;  %v3900_v6 = vand.u32 65535, %v7138_v43  ;;  %v7427_v12 = vld [vmem:[#allocation8_spill] sm:$0xff]  ;;  %v7428_v46 = vld [vmem:[#allocation9_spill] sm:$0xff] }
 0x2fc   : > { %v4433_v33 = vadd.f32 %v4432_v38, %v4398_v30  ;;  %v4476_v8 = vmul.f32 %v4398_v30, %v4398_v30  ;;  %v3864_v28 = vmul.u32 18, %v3863_v14  ;;  %v3887_v18 = vsel %vm3886_vm7, 1, %v7341_v59 }
 0x2fd   : > { %v3889_v60 = vadd.s32 %v3887_v18, %v3885_v36  ;;  %v7142_v9 = vadd.f32 %v2946_v25, %v2760_v35  ;;  %v3901_v39 = vshrl.u32 %v7138_v43, 16  ;;  %v2031_v52 = vadd.f32 %v1983_v7, %v7427_v12  ;;  %v2346_v54 = vpop.f32.mrf.mxu2 }
 0x2fe   : > { %v4511_v10 = vadd.f32 %v4510_v16, %v4476_v8  ;;  %v3865_v37 = vsub.s32 %v7110_v20, %v3864_v28  ;;  %v7149_v44 = vadd.s32 224, %v6050_v58  ;;  %v3903_v13 = vmul.u32 14564, %v3900_v6  ;;  %v2951_v8 = vpop.f32.mrf.mxu0 }
 0x2ff   : > { %v3890_v47 = vadd.s32 %v3889_v60, %v3879_v62  ;;  %v5183_v55 = vpack.c.bf16 %v7142_v9, %v7134_v29  ;;  %v3904_v5 = vmul.u32 58254, %v3900_v6  ;;  %v3905_v17 = vmul.u32 14564, %v3901_v39  ;;  %v2715_v14 = vpop.f32.mrf.mxu3  ;;  %v1988_v60 = vpop.f32.mrf.mxu1 }
 0x300   : > { %vm4183_vm14 = vcmp.ne.s32.totalorder %v3865_v37, 0  ;;  %vm4219_vm15 = vcmp.lt.s32.totalorder %v3865_v37, 0  ;;  %v4291_v42 = vadd.s32 18, %v3865_v37  ;;  %v3906_v20 = vmul.u32 58254, %v3901_v39 }
 0x301   : > { %vm4255_vm0 = vmand %vm4219_vm15, %vm4183_vm14  ;;  %v3891_v19 = vadd.s32 %v3890_v47, %v3881_v34  ;;  %5220 = vst [vmem:[%s5353_s27 + $0x68] sm:$0xff] %v5183_v55   ;;  %v3907_v61 = vshll.u32 %v3904_v5, 16  ;;  %v3908_v11 = vshrl.u32 %v3904_v5, 16  ;;  %v3909_v50 = vshll.u32 %v3905_v17, 16 }
 0x302   : > { %v4327_v26 = vsel %vm4255_vm0, %v4291_v42, %v3865_v37  ;;  %v3910_v24 = vshrl.u32 %v3905_v17, 16  ;;  %v2392_v38 = vadd.f32 %v2344_v27, %v2031_v52  ;;  %v3929_v4 = vand.u32 65535, %v7149_v44 }
 0x303   : > { %vm4363_vm1 = vcmp.lt.s32.totalorder %v4327_v26, 16  ;;  %v3892_v21 = vshrl.u32 %v3891_v19, 4  ;;  %vm3911_vm3 = vc.u32 %v3903_v13, %v3907_v61  ;;  %v3913_v41 = vadd.s32 %v3907_v61, %v3903_v13 }
 0x304   : > { %v4399_v45 = vsel %vm4363_vm1, %v7117_v57, 0.0  ;;  %v3912_v31 = vsel %vm3911_vm3, 1, %v7341_v59  ;;  %v2761_v1 = vadd.f32 %v2713_v0, %v2392_v38  ;;  %v3930_v51 = vshrl.u32 %v7149_v44, 16 }
 0x305   : > { %v4434_v3 = vadd.f32 %v4433_v33, %v4399_v45  ;;  %v4477_v16 = vmul.f32 %v4399_v45, %v4399_v45  ;;  %v3893_v15 = vmul.u32 18, %v3892_v21  ;;  %v3914_v63 = vadd.s32 %v3912_v31, %v3906_v20  ;;  %v2349_v5 = vpop.f32.mrf.mxu2 }
 0x306   : > { %vm3915_vm4 = vc.u32 %v3913_v41, %v3909_v50  ;;  %v7157_v25 = vadd.f32 %v2949_v32, %v2761_v1  ;;  %v3932_v49 = vmul.u32 14564, %v3929_v4  ;;  %v3933_v62 = vmul.u32 58254, %v3929_v4 }
 0x307   : > { %v4512_v7 = vadd.f32 %v4511_v10, %v4477_v16  ;;  %v3894_v2 = vsub.s32 %v7126_v40, %v3893_v15  ;;  %v3916_v57 = vsel %vm3915_vm4, 1, %v7341_v59  ;;  %v3934_v34 = vmul.u32 14564, %v3930_v51  ;;  %v2718_v31 = vpop.f32.mrf.mxu3 }
 0x308   : > { %v3918_v56 = vadd.s32 %v3916_v57, %v3914_v63  ;;  %v3935_v48 = vmul.u32 58254, %v3930_v51  ;;  %v2032_v23 = vadd.f32 %v1985_v53, %v7428_v46  ;;  %v3936_v27 = vshll.u32 %v3933_v62, 16  ;;  %v2954_v51 = vpop.f32.mrf.mxu0 }
 0x309   : > { %vm4184_vm8 = vcmp.ne.s32.totalorder %v3894_v2, 0  ;;  %vm4220_vm9 = vcmp.lt.s32.totalorder %v3894_v2, 0  ;;  %v4292_v22 = vadd.s32 18, %v3894_v2  ;;  %v3937_v36 = vshrl.u32 %v3933_v62, 16 }
 0x30a   : > { %vm4256_vm10 = vmand %vm4220_vm9, %vm4184_vm8  ;;  %v3919_v30 = vadd.s32 %v3918_v56, %v3908_v11  ;;  %v3938_v35 = vshll.u32 %v3934_v34, 16  ;;  %v3939_v33 = vshrl.u32 %v3934_v34, 16  ;;  %vm3940_vm5 = vc.u32 %v3932_v49, %v3936_v27 }
 0x30b   : > { %v4328_v40 = vsel %vm4256_vm10, %v4292_v22, %v3894_v2  ;;  %v3942_v28 = vadd.s32 %v3936_v27, %v3932_v49  ;;  %v2393_v18 = vadd.f32 %v2346_v54, %v2032_v23  ;;  %v3941_v39 = vsel %vm3940_vm5, 1, %v7341_v59  ;;  %v1990_v2 = vpop.f32.mrf.mxu1 }
 0x30c   : > { %vm4364_vm11 = vcmp.lt.s32.totalorder %v4328_v40, 16  ;;  %v3920_v6 = vadd.s32 %v3919_v30, %v3910_v24  ;;  %v7165_v10 = vadd.s32 232, %v6050_v58  ;;  %v3943_v12 = vadd.s32 %v3941_v39, %v3935_v48 }
 0x30d   : > { %v4400_v37 = vsel %vm4364_vm11, %v7134_v29, 0.0  ;;  %vm3944_vm12 = vc.u32 %v3942_v28, %v3938_v35  ;;  %v2762_v52 = vadd.f32 %v2715_v14, %v2393_v18  ;;  %v7429_v29 = vld [vmem:[#allocation2_spill] sm:$0xff]  ;;  %v7175_v53 = vadd.s32 240, %v6050_v58  ;;  %v2351_v30 = vpop.f32.mrf.mxu2 }
 0x30e   : > { %v4435_v0 = vadd.f32 %v4434_v3, %v4400_v37  ;;  %v4478_v47 = vmul.f32 %v4400_v37, %v4400_v37  ;;  %v3921_v55 = vshrl.u32 %v3920_v6, 4  ;;  %v3945_v13 = vsel %vm3944_vm12, 1, %v7341_v59 }
 0x30f   : > { %v3947_v42 = vadd.s32 %v3945_v13, %v3943_v12  ;;  %v7169_v17 = vadd.f32 %v2951_v8, %v2762_v52  ;;  %v3958_v32 = vand.u32 65535, %v7165_v10  ;;  %v3959_v19 = vshrl.u32 %v7165_v10, 16 }
 0x310   : > { %v4513_v20 = vadd.f32 %v4512_v7, %v4478_v47  ;;  %v3922_v61 = vmul.u32 18, %v3921_v55  ;;  %v2033_v11 = vadd.f32 %v1988_v60, %v7429_v29  ;;  %v3987_v16 = vand.u32 65535, %v7175_v53  ;;  %v7430_v60 = vld [vmem:[#allocation4_spill] sm:$0xff]  ;;  %v2720_v55 = vpop.f32.mrf.mxu3 }
 0x311   : > { %v3948_v26 = vadd.s32 %v3947_v42, %v3937_v36  ;;  %v5188_v50 = vpack.c.bf16 %v7169_v17, %v7157_v25  ;;  %v3961_v24 = vmul.u32 14564, %v3958_v32  ;;  %v3962_v38 = vmul.u32 58254, %v3958_v32 }
 0x312   : > { %v3923_v21 = vsub.s32 %v7138_v43, %v3922_v61  ;;  %v3963_v41 = vmul.u32 14564, %v3959_v19  ;;  %v3964_v45 = vmul.u32 58254, %v3959_v19  ;;  %v2394_v1 = vadd.f32 %v2349_v5, %v2033_v11  ;;  %v2956_v19 = vpop.f32.mrf.mxu0 }
 0x313   : > { %v3949_v4 = vadd.s32 %v3948_v26, %v3939_v33  ;;  %5221 = vst [vmem:[%s5353_s27 + $0x70] sm:$0xff] %v5188_v50   ;;  %v3965_v54 = vshll.u32 %v3962_v38, 16  ;;  %v3966_v3 = vshrl.u32 %v3962_v38, 16  ;;  %v3988_v34 = vshrl.u32 %v7175_v53, 16  ;;  %v1993_v26 = vpop.f32.mrf.mxu1 }
 0x314   : > { %vm4185_vm13 = vcmp.ne.s32.totalorder %v3923_v21, 0  ;;  %vm4221_vm6 = vcmp.lt.s32.totalorder %v3923_v21, 0  ;;  %v4293_v15 = vadd.s32 18, %v3923_v21  ;;  %v3967_v63 = vshll.u32 %v3963_v41, 16 }
 0x315   : > { %vm4257_vm2 = vmand %vm4221_vm6, %vm4185_vm13  ;;  %v3950_v49 = vshrl.u32 %v3949_v4, 4  ;;  %v3968_v7 = vshrl.u32 %v3963_v41, 16  ;;  %vm3969_vm7 = vc.u32 %v3961_v24, %v3965_v54  ;;  %v3971_v43 = vadd.s32 %v3965_v54, %v3961_v24 }
 0x316   : > { %v4329_v57 = vsel %vm4257_vm2, %v4293_v15, %v3923_v21  ;;  %v3970_v62 = vsel %vm3969_vm7, 1, %v7341_v59  ;;  %v2763_v56 = vadd.f32 %v2718_v31, %v2394_v1  ;;  %v3990_v27 = vmul.u32 14564, %v3987_v16 }
 0x317   : > { %vm4365_vm14 = vcmp.lt.s32.totalorder %v4329_v57, 16  ;;  %v3951_v48 = vmul.u32 18, %v3950_v49  ;;  %v3972_v46 = vadd.s32 %v3970_v62, %v3964_v45  ;;  %vm3973_vm15 = vc.u32 %v3971_v43, %v3967_v63 }
 0x318   : > { %v4401_v23 = vsel %vm4365_vm14, %v7142_v9, 0.0  ;;  %v3974_v14 = vsel %vm3973_vm15, 1, %v7341_v59  ;;  %v7186_v22 = vadd.f32 %v2954_v51, %v2763_v56  ;;  %v3991_v40 = vmul.u32 58254, %v3987_v16 }
 0x319   : > { %v4436_v36 = vadd.f32 %v4435_v0, %v4401_v23  ;;  %v4479_v35 = vmul.f32 %v4401_v23, %v4401_v23  ;;  %v3952_v33 = vsub.s32 %v7149_v44, %v3951_v48  ;;  %v3976_v8 = vadd.s32 %v3974_v14, %v3972_v46  ;;  %v2723_v23 = vpop.f32.mrf.mxu3 }
 0x31a   : > { %v3992_v28 = vmul.u32 14564, %v3988_v34  ;;  %v3993_v18 = vmul.u32 58254, %v3988_v34  ;;  %v2034_v6 = vadd.f32 %v1990_v2, %v7430_v60  ;;  %v3994_v12 = vshll.u32 %v3991_v40, 16  ;;  %v7431_v2 = vld [vmem:[#allocation6_spill] sm:$0xff] }
 0x31b   : > { %v4514_v39 = vadd.f32 %v4513_v20, %v4479_v35  ;;  %vm4186_vm0 = vcmp.ne.s32.totalorder %v3952_v33, 0  ;;  %vm4222_vm1 = vcmp.lt.s32.totalorder %v3952_v33, 0  ;;  %v4294_v9 = vadd.s32 18, %v3952_v33  ;;  %v1995_v60 = vpop.f32.mrf.mxu1 }
 0x31c   : > { %vm4258_vm3 = vmand %vm4222_vm1, %vm4186_vm0  ;;  %v3977_v37 = vadd.s32 %v3976_v8, %v3966_v3  ;;  %v3995_v52 = vshrl.u32 %v3991_v40, 16  ;;  %v3996_v47 = vshll.u32 %v3992_v28, 16  ;;  %v3997_v13 = vshrl.u32 %v3992_v28, 16  ;;  %v2354_v3 = vpop.f32.mrf.mxu2 }
 0x31d   : > { %v4330_v0 = vsel %vm4258_vm3, %v4294_v9, %v3952_v33  ;;  %v2395_v5 = vadd.f32 %v2351_v30, %v2034_v6  ;;  %v7191_v44 = vadd.s32 248, %v6050_v58  ;;  %vm3998_vm8 = vc.u32 %v3990_v27, %v3994_v12  ;;  %v2959_v33 = vpop.f32.mrf.mxu0 }
 0x31e   : > { %vm4366_vm4 = vcmp.lt.s32.totalorder %v4330_v0, 16  ;;  %v3978_v42 = vadd.s32 %v3977_v37, %v3968_v7  ;;  %v4000_v32 = vadd.s32 %v3994_v12, %v3990_v27  ;;  %v3999_v61 = vsel %vm3998_vm8, 1, %v7341_v59 }
 0x31f   : > { %v4402_v20 = vsel %vm4366_vm4, %v7157_v25, 0.0  ;;  %v2764_v29 = vadd.f32 %v2720_v55, %v2395_v5  ;;  %v4016_v11 = vand.u32 65535, %v7191_v44  ;;  %v4001_v21 = vadd.s32 %v3999_v61, %v3993_v18 }
 0x320   : > { %v4437_v50 = vadd.f32 %v4436_v36, %v4402_v20  ;;  %v4480_v24 = vmul.f32 %v4402_v20, %v4402_v20  ;;  %v3979_v38 = vshrl.u32 %v3978_v42, 4  ;;  %vm4002_vm9 = vc.u32 %v4000_v32, %v3996_v47 }
 0x321   : > { %v7196_v41 = vadd.f32 %v2956_v19, %v2764_v29  ;;  %v4017_v45 = vshrl.u32 %v7191_v44, 16  ;;  %v4019_v31 = vmul.u32 14564, %v4016_v11  ;;  %v4003_v25 = vsel %vm4002_vm9, 1, %v7341_v59 }
 0x322   : > { %v4515_v1 = vadd.f32 %v4514_v39, %v4480_v24  ;;  %v3980_v4 = vmul.u32 18, %v3979_v38  ;;  %v4020_v54 = vmul.u32 58254, %v4016_v11  ;;  %v4005_v16 = vadd.s32 %v4003_v25, %v4001_v21  ;;  %v7432_v38 = vld [vmem:[#allocation5_spill] sm:$0xff]  ;;  %v7433_v21 = vld [vmem:[#allocation3_spill] sm:$0xff] }
 0x323   : > { %v5193_v15 = vpack.c.bf16 %v7196_v41, %v7186_v22  ;;  %v4021_v63 = vmul.u32 14564, %v4017_v45  ;;  %v4022_v51 = vmul.u32 58254, %v4017_v45  ;;  %v2035_v57 = vadd.f32 %v1993_v26, %v7431_v2 }
 0x324   : > { %v3981_v49 = vsub.s32 %v7165_v10, %v3980_v4  ;;  %v4023_v7 = vshll.u32 %v4020_v54, 16  ;;  %v4024_v43 = vshrl.u32 %v4020_v54, 16  ;;  %v4006_v62 = vadd.s32 %v4005_v16, %v3995_v52  ;;  %v2356_v42 = vpop.f32.mrf.mxu2 }
 0x325   : > { %5222 = vst [vmem:[%s5353_s27 + $0x78] sm:$0xff] %v5193_v15   ;;  %v4025_v56 = vshll.u32 %v4021_v63, 16  ;;  %v4026_v34 = vshrl.u32 %v4021_v63, 16  ;;  %v7206_v48 = vadd.s32 256, %v6050_v58  ;;  %v2396_v30 = vadd.f32 %v2354_v3, %v2035_v57  ;;  %v2961_v16 = vpop.f32.mrf.mxu0  ;;  %v1998_v2 = vpop.f32.mrf.mxu1 }
 0x326   : > { %vm4187_vm10 = vcmp.ne.s32.totalorder %v3981_v49, 0  ;;  %vm4223_vm5 = vcmp.lt.s32.totalorder %v3981_v49, 0  ;;  %v4295_v46 = vadd.s32 18, %v3981_v49  ;;  %vm4027_vm11 = vc.u32 %v4019_v31, %v4023_v7 }
 0x327   : > { %vm4259_vm12 = vmand %vm4223_vm5, %vm4187_vm10  ;;  %v4007_v14 = vadd.s32 %v4006_v62, %v3997_v13  ;;  %v4028_v10 = vsel %vm4027_vm11, 1, %v7341_v59  ;;  %v4029_v27 = vadd.s32 %v4023_v7, %v4019_v31  ;;  %v4045_v8 = vand.u32 65535, %v7206_v48  ;;  %v2725_v31 = vpop.f32.mrf.mxu3 }
 0x328   : > { %v4331_v36 = vsel %vm4259_vm12, %v4295_v46, %v3981_v49  ;;  %v4030_v35 = vadd.s32 %v4028_v10, %v4022_v51  ;;  %v4046_v40 = vshrl.u32 %v7206_v48, 16  ;;  %v2765_v18 = vadd.f32 %v2723_v23, %v2396_v30  ;;  %v7435_v46 = vld [vmem:[#allocation24_spill] sm:$0xff] }
 0x329   : > { %vm4367_vm13 = vcmp.lt.s32.totalorder %v4331_v36, 16  ;;  %v4008_v28 = vshrl.u32 %v4007_v14, 4  ;;  %vm4031_vm6 = vc.u32 %v4029_v27, %v4025_v56  ;;  %v4048_v9 = vmul.u32 14564, %v4045_v8 }
 0x32a   : > { %v4403_v6 = vsel %vm4367_vm13, %v7169_v17, 0.0  ;;  %v4032_v39 = vsel %vm4031_vm6, 1, %v7341_v59  ;;  %v4049_v37 = vmul.u32 58254, %v4045_v8  ;;  %v7213_v0 = vadd.f32 %v2959_v33, %v2765_v18 }
 0x32b   : > { %v4438_v12 = vadd.f32 %v4437_v50, %v4403_v6  ;;  %v4481_v52 = vmul.f32 %v4403_v6, %v4403_v6  ;;  %v4009_v47 = vmul.u32 18, %v4008_v28  ;;  %v4034_v55 = vadd.s32 %v4032_v39, %v4030_v35 }
 0x32c   : > { %v4050_v13 = vmul.u32 14564, %v4046_v40  ;;  %v4052_v5 = vshll.u32 %v4049_v37, 16  ;;  %v4051_v61 = vmul.u32 58254, %v4046_v40  ;;  %v4053_v29 = vshrl.u32 %v4049_v37, 16 }
 0x32d   : > { %v4516_v32 = vadd.f32 %v4515_v1, %v4481_v52  ;;  %v4010_v19 = vsub.s32 %v7175_v53, %v4009_v47  ;;  %v4035_v20 = vadd.s32 %v4034_v55, %v4024_v43  ;;  %v1800_v45 = vadd.f32 %v7433_v21, %v7432_v38  ;;  %v7436_v21 = vld [vmem:[#allocation7_spill] sm:$0xff] }
 0x32e   : > { %v4054_v17 = vshll.u32 %v4050_v13, 16  ;;  %vm4056_vm2 = vc.u32 %v4048_v9, %v4052_v5  ;;  %v4058_v11 = vadd.s32 %v4052_v5, %v4048_v9  ;;  %v7220_v53 = vadd.s32 264, %v6050_v58 }
 0x32f   : > { %vm4188_vm7 = vcmp.ne.s32.totalorder %v4010_v19, 0  ;;  %vm4224_vm14 = vcmp.lt.s32.totalorder %v4010_v19, 0  ;;  %v4296_v26 = vadd.s32 18, %v4010_v19  ;;  %v4036_v50 = vadd.s32 %v4035_v20, %v4026_v34  ;;  %v7434_v34 = vld [vmem:[#allocation25_spill] sm:$0xff]  ;;  %v2728_v55 = vpop.f32.mrf.mxu3 }
 0x330   : > { %vm4260_vm15 = vmand %vm4224_vm14, %vm4188_vm7  ;;  %v4057_v24 = vsel %vm4056_vm2, 1, %v7341_v59  ;;  %vm4060_vm0 = vc.u32 %v4058_v11, %v4054_v17  ;;  %v2036_v3 = vadd.f32 %v1995_v60, %v1800_v45  ;;  %v4074_v15 = vand.u32 65535, %v7220_v53  ;;  %v7437_v45 = vld [vmem:[#allocation26_spill] sm:$0xff] }
 0x331   : > { %v4332_v1 = vsel %vm4260_vm15, %v4296_v26, %v4010_v19  ;;  %v4037_v4 = vshrl.u32 %v4036_v50, 4  ;;  %v4059_v25 = vadd.s32 %v4057_v24, %v4051_v61  ;;  %v4061_v54 = vsel %vm4060_vm0, 1, %v7341_v59  ;;  %v2000_v24 = vpop.f32.mrf.mxu1 }
 0x332   : > { %vm4368_vm1 = vcmp.lt.s32.totalorder %v4332_v1, 16  ;;  %v4075_v63 = vshrl.u32 %v7220_v53, 16  ;;  %v4055_v7 = vshrl.u32 %v4050_v13, 16  ;;  %v2397_v56 = vadd.f32 %v2356_v42, %v2036_v3 }
 0x333   : > { %v4404_v51 = vsel %vm4368_vm1, %v7186_v22, 0.0  ;;  %v4038_v49 = vmul.u32 18, %v4037_v4  ;;  %v4063_v43 = vadd.s32 %v4061_v54, %v4059_v25  ;;  %v1801_v23 = vadd.f32 %v7435_v46, %v7434_v34  ;;  %v2359_v22 = vpop.f32.mrf.mxu2 }
 0x334   : > { %v4439_v57 = vadd.f32 %v4438_v12, %v4404_v51  ;;  %v4482_v62 = vmul.f32 %v4404_v51, %v4404_v51  ;;  %v4078_v27 = vmul.u32 58254, %v4074_v15  ;;  %v4079_v30 = vmul.u32 14564, %v4075_v63 }
 0x335   : > { %v4039_v14 = vsub.s32 %v7191_v44, %v4038_v49  ;;  %v4064_v10 = vadd.s32 %v4063_v43, %v4053_v29  ;;  %v2766_v35 = vadd.f32 %v2725_v31, %v2397_v56  ;;  %v4077_v33 = vmul.u32 14564, %v4074_v15  ;;  %v2964_v29 = vpop.f32.mrf.mxu0 }
 0x336   : > { %v4517_v36 = vadd.f32 %v4516_v32, %v4482_v62  ;;  %v2037_v8 = vadd.f32 %v1998_v2, %v1801_v23  ;;  %v4080_v60 = vmul.u32 58254, %v4075_v63  ;;  %v4081_v6 = vshll.u32 %v4078_v27, 16 }
 0x337   : > { %vm4189_vm3 = vcmp.ne.s32.totalorder %v4039_v14, 0  ;;  %vm4225_vm4 = vcmp.lt.s32.totalorder %v4039_v14, 0  ;;  %v4297_v40 = vadd.s32 18, %v4039_v14  ;;  %v4065_v28 = vadd.s32 %v4064_v10, %v4055_v7 }
 0x338   : > { %vm4261_vm8 = vmand %vm4225_vm4, %vm4189_vm3  ;;  %v7229_v18 = vadd.f32 %v2961_v16, %v2766_v35  ;;  %v4083_v39 = vshll.u32 %v4079_v30, 16  ;;  %v4082_v37 = vshrl.u32 %v4078_v27, 16  ;;  %v2398_v12 = vadd.f32 %v2359_v22, %v2037_v8  ;;  %v2730_v27 = vpop.f32.mrf.mxu3 }
 0x339   : > { %v4333_v44 = vsel %vm4261_vm8, %v4297_v40, %v4039_v14  ;;  %v4066_v9 = vshrl.u32 %v4065_v28, 4  ;;  %vm4085_vm10 = vc.u32 %v4077_v33, %v4081_v6  ;;  %v4087_v47 = vadd.s32 %v4081_v6, %v4077_v33 }
 0x33a   : > { %vm4369_vm9 = vcmp.lt.s32.totalorder %v4333_v44, 16  ;;  %v5198_v52 = vpack.c.bf16 %v7229_v18, %v7213_v0  ;;  %v4086_v42 = vsel %vm4085_vm10, 1, %v7341_v59  ;;  %v2767_v32 = vadd.f32 %v2728_v55, %v2398_v12 }
 0x33b   : > { %v4405_v13 = vsel %vm4369_vm9, %v7196_v41, 0.0  ;;  %v4067_v5 = vmul.u32 18, %v4066_v9  ;;  %v4088_v61 = vadd.s32 %v4086_v42, %v4080_v60  ;;  %vm4089_vm5 = vc.u32 %v4087_v47, %v4083_v39  ;;  %v2361_v15 = vpop.f32.mrf.mxu2 }
 0x33c   : > { %v4440_v19 = vadd.f32 %v4439_v57, %v4405_v13  ;;  %v4483_v20 = vmul.f32 %v4405_v13, %v4405_v13  ;;  %5223 = vst [vmem:[%s5353_s27 + $0x80] sm:$0xff] %v5198_v52   ;;  %v4084_v11 = vshrl.u32 %v4079_v30, 16  ;;  %v4090_v26 = vsel %vm4089_vm5, 1, %v7341_v59 }
 0x33d   : > { %v4068_v17 = vsub.s32 %v7206_v48, %v4067_v5  ;;  %v7239_v50 = vadd.s32 272, %v6050_v58  ;;  %v4092_v38 = vadd.s32 %v4090_v26, %v4088_v61  ;;  %v1802_v31 = vadd.f32 %v7437_v45, %v7436_v21  ;;  %v2966_v40 = vpop.f32.mrf.mxu0 }
 0x33e   : > { %v4518_v41 = vadd.f32 %v4517_v36, %v4483_v20  ;;  %v7244_v1 = vadd.s32 280, %v6050_v58  ;;  %v7247_v54 = vadd.f32 %v2964_v29, %v2767_v32 }
 0x33f   : > { %vm4190_vm11 = vcmp.ne.s32.totalorder %v4068_v17, 0  ;;  %vm4226_vm12 = vcmp.lt.s32.totalorder %v4068_v17, 0  ;;  %v4298_v4 = vadd.s32 18, %v4068_v17  ;;  %v4103_v48 = vand.u32 65535, %v7239_v50 }
 0x340   : > { %vm4262_vm13 = vmand %vm4226_vm12, %vm4190_vm11  ;;  %v4093_v25 = vadd.s32 %v4092_v38, %v4082_v37  ;;  %v4104_v3 = vshrl.u32 %v7239_v50, 16  ;;  %v2038_v16 = vadd.f32 %v2000_v24, %v1802_v31  ;;  %v4132_v7 = vand.u32 65535, %v7244_v1 }
 0x341   : > { %v4334_v63 = vsel %vm4262_vm13, %v4298_v4, %v4068_v17  ;;  %v4106_v51 = vmul.u32 14564, %v4103_v48  ;;  %v4107_v49 = vmul.u32 58254, %v4103_v48  ;;  %v4133_v2 = vshrl.u32 %v7244_v1, 16 }
 0x342   : > { %vm4370_vm6 = vcmp.lt.s32.totalorder %v4334_v63, 16  ;;  %v4094_v58 = vadd.s32 %v4093_v25, %v4084_v11  ;;  %v4108_v43 = vmul.u32 14564, %v4104_v3  ;;  %v4109_v62 = vmul.u32 58254, %v4104_v3 }
 0x343   : > { %v4406_v57 = vsel %vm4370_vm6, %v7213_v0, 0.0  ;;  %v4110_v56 = vshll.u32 %v4107_v49, 16  ;;  %v2399_v34 = vadd.f32 %v2361_v15, %v2038_v16  ;;  %v4111_v30 = vshrl.u32 %v4107_v49, 16 }
 0x344   : > { %v4441_v46 = vadd.f32 %v4440_v19, %v4406_v57  ;;  %v4484_v23 = vmul.f32 %v4406_v57, %v4406_v57  ;;  %v4095_v14 = vshrl.u32 %v4094_v58, 4  ;;  %v4112_v10 = vshll.u32 %v4108_v43, 16 }
 0x345   : > { %vm4114_vm2 = vc.u32 %v4106_v51, %v4110_v56  ;;  %v4116_v36 = vadd.s32 %v4110_v56, %v4106_v51  ;;  %v2768_v35 = vadd.f32 %v2730_v27, %v2399_v34  ;;  %v4135_v28 = vmul.u32 14564, %v4132_v7 }
 0x346   : > { %v4519_v33 = vadd.f32 %v4518_v41, %v4484_v23  ;;  %v4096_v8 = vmul.u32 18, %v4095_v14  ;;  %v4115_v22 = vsel %vm4114_vm2, 1, %v7341_v59  ;;  %v4136_v6 = vmul.u32 58254, %v4132_v7 }
 0x347   : > { %v4117_v60 = vadd.s32 %v4115_v22, %v4109_v62  ;;  %vm4118_vm7 = vc.u32 %v4116_v36, %v4112_v10  ;;  %v3004_v0 = vadd.f32 %v2966_v40, %v2768_v35  ;;  %v4113_v44 = vshrl.u32 %v4108_v43, 16 }
 0x348   : > { %v4097_v39 = vsub.s32 %v7220_v53, %v4096_v8  ;;  %v4119_v9 = vsel %vm4118_vm7, 1, %v7341_v59  ;;  %v4137_v37 = vmul.u32 14564, %v4133_v2  ;;  %v4138_v47 = vmul.u32 58254, %v4133_v2 }
 0x349   : > { %v4121_v12 = vadd.s32 %v4119_v9, %v4117_v60  ;;  %v5203_v52 = vpack.c.bf16 %v3004_v0, %v7247_v54  ;;  %v4139_v55 = vshll.u32 %v4136_v6, 16  ;;  %v4140_v53 = vshrl.u32 %v4136_v6, 16 }
 0x34a   : > { %vm4191_vm14 = vcmp.ne.s32.totalorder %v4097_v39, 0  ;;  %vm4227_vm15 = vcmp.lt.s32.totalorder %v4097_v39, 0  ;;  %v4299_v13 = vadd.s32 18, %v4097_v39  ;;  %v4141_v5 = vshll.u32 %v4137_v37, 16 }
 0x34b   : > { %vm4263_vm0 = vmand %vm4227_vm15, %vm4191_vm14  ;;  %v4122_v42 = vadd.s32 %v4121_v12, %v4111_v30  ;;  %5224 = vst [vmem:[%s5353_s27 + $0x88] sm:$0xff] %v5203_v52   ;;  %vm4143_vm1 = vc.u32 %v4135_v28, %v4139_v55  ;;  %v4145_v32 = vadd.s32 %v4139_v55, %v4135_v28  ;;  %v4142_v11 = vshrl.u32 %v4137_v37, 16  ;;  %v4530_v30 = vld [vmem:[%s7288_s3] sm:$0x1] }
 0x34c   : > { %v4335_v19 = vsel %vm4263_vm0, %v4299_v13, %v4097_v39  ;;  %v4144_v20 = vsel %vm4143_vm1, 1, %v7341_v59 }
 0x34d   : > { %vm4371_vm3 = vcmp.lt.s32.totalorder %v4335_v19, 16  ;;  %v4123_v61 = vadd.s32 %v4122_v42, %v4113_v44  ;;  %v4146_v29 = vadd.s32 %v4144_v20, %v4138_v47  ;;  %vm4147_vm4 = vc.u32 %v4145_v32, %v4141_v5 }
 0x34e   : > { %v4407_v17 = vsel %vm4371_vm3, %v7229_v18, 0.0  ;;  %v4148_v26 = vsel %vm4147_vm4, 1, %v7341_v59 }
 0x34f   : > { %v4442_v24 = vadd.f32 %v4441_v46, %v4407_v17  ;;  %v4485_v41 = vmul.f32 %v4407_v17, %v4407_v17  ;;  %v4124_v38 = vshrl.u32 %v4123_v61, 4  ;;  %v4150_v21 = vadd.s32 %v4148_v26, %v4146_v29 }
 0x351   : > { %v4520_v45 = vadd.f32 %v4519_v33, %v4485_v41  ;;  %v4125_v31 = vmul.u32 18, %v4124_v38  ;;  %v4151_v4 = vadd.s32 %v4150_v21, %v4140_v53  ;;  %v4533_v33 = vld [vmem:[%s7289_s4] sm:$0x1] }
 0x353   : > { %v4126_v48 = vsub.s32 %v7239_v50, %v4125_v31  ;;  %v4152_v25 = vadd.s32 %v4151_v4, %v4142_v11 }
 0x355   : > { %vm4192_vm8 = vcmp.ne.s32.totalorder %v4126_v48, 0  ;;  %vm4228_vm9 = vcmp.lt.s32.totalorder %v4126_v48, 0  ;;  %v4300_v3 = vadd.s32 18, %v4126_v48  ;;  %v4153_v16 = vshrl.u32 %v4152_v25, 4 }
 0x356   : > { %vm4264_vm10 = vmand %vm4228_vm9, %vm4192_vm8 }
 0x357   : > { %v4336_v15 = vsel %vm4264_vm10, %v4300_v3, %v4126_v48  ;;  %v4154_v18 = vmul.u32 18, %v4153_v16 }
 0x358   : > { %vm4372_vm5 = vcmp.lt.s32.totalorder %v4336_v15, 16 }
 0x359   : > { %v4408_v59 = vsel %vm4372_vm5, %v7247_v54, 0.0  ;;  %v4155_v63 = vsub.s32 %v7244_v1, %v4154_v18 }
 0x35a   : > { %v4443_v51 = vadd.f32 %v4442_v24, %v4408_v59  ;;  %v4486_v49 = vmul.f32 %v4408_v59, %v4408_v59 }
 0x35b   : > { %vm4193_vm11 = vcmp.ne.s32.totalorder %v4155_v63, 0  ;;  %vm4229_vm12 = vcmp.lt.s32.totalorder %v4155_v63, 0  ;;  %v4301_v7 = vadd.s32 18, %v4155_v63 }
 0x35c   : > { %v4521_v58 = vadd.f32 %v4520_v45, %v4486_v49  ;;  %vm4265_vm13 = vmand %vm4229_vm12, %vm4193_vm11 }
 0x35d   : > { %v4337_v50 = vsel %vm4265_vm13, %v4301_v7, %v4155_v63 }
 0x35e   : > { %vm4373_vm6 = vcmp.lt.s32.totalorder %v4337_v50, 16 }
 0x35f   : > { %v4409_v43 = vsel %vm4373_vm6, %v3004_v0, 0.0 }
 0x360   : > { %v4444_v2 = vadd.f32 %v4443_v51, %v4409_v43  ;;  %v4487_v57 = vmul.f32 %v4409_v43, %v4409_v43 }
 0x362   : > { %v4445_v62 = vrot.slane %v4444_v2, 4  ;;  %v4522_v56 = vadd.f32 %v4521_v58, %v4487_v57 }
 0x364   : > { %v4446_v34 = vadd.f32 %v4445_v62, %v4444_v2  ;;  %v4523_v46 = vrot.slane %v4522_v56, 4 }
 0x366   : > { %v4447_v23 = vrot.slane %v4446_v34, 2  ;;  %v4524_v54 = vadd.f32 %v4523_v46, %v4522_v56 }
 0x368   : > { %v4448_v14 = vadd.f32 %v4447_v23, %v4446_v34  ;;  %v4525_v1 = vrot.slane %v4524_v54, 2 }
 0x36a   : > { %v4449_v10 = vrot.slane %v4448_v14, 1  ;;  %v4526_v27 = vadd.f32 %v4525_v1, %v4524_v54 }
 0x36c   : > { %v4450_v36 = vadd.f32 %v4449_v10, %v4448_v14  ;;  %v4527_v35 = vrot.slane %v4526_v27, 1 }
 0x36e   : > { %v4528_v8 = vadd.f32 %v4527_v35, %v4526_v27  ;;  %v4531_v22 = vadd.f32 %v4530_v30, %v4450_v36 }
 0x370   : > { %4532 = vst [vmem:[%s7288_s3] sm:$0x1] %v4531_v22  ;;  %v4534_v40 = vadd.f32 %v4533_v33, %v4528_v8 }
 0x372   : > { %4535 = vst [vmem:[%s7289_s4] sm:$0x1] %v4534_v40 }
 0x373 PF: > { %s15_s17 = sadd.s32 1, %s5298_s17   ;;  %s7438_s15 = smov %s5294_s16 }
 0x374   : > { %p12_p6 = scmp.ge.s32.totalorder %s15_s17, 4   ;;  %s7439_s16 = smov %s7441_s18 }
 0x376   :  { %14 = sbr.rel (!%p12_p6) target bundleno = 2 (0x2), region = 97 }

</bundles_post_ra>
